<compile_context>
chip_gen: v7x
topology: tpu7x:2x2x1
jax: 0.10.0
libtpu: 0.0.40
codegen_flags: <defaults>
</compile_context>

<pallas_src>
import functools

import jax
import jax.numpy as jnp
from jax.experimental import pallas as pl
from jax.experimental.pallas import tpu as pltpu


def _classifier_kernel(x_ref, w1_ref, b1_ref, w2_ref, b2_ref, o_ref):
    # x_ref : (TB, fp_dim)      VMEM  bf16
    # w1_ref: (fp_dim, h_dim)   VMEM  bf16
    # b1_ref: (1, h_dim)        VMEM  f32
    # w2_ref: (h_dim, out_dim)  VMEM  bf16
    # b2_ref: (1, out_dim)      VMEM  f32
    # o_ref : (TB, out_dim)     VMEM  f32
    # lin_i: x @ W1 + b1   (MXU bf16, f32 accumulation; bias added in f32)
    h = jnp.dot(x_ref[...], w1_ref[...], preferred_element_type=jnp.float32)
    h = h + b1_ref[...]
    # dropout (eval mode) -> identity
    # TODO(synk): training-mode dropout (stateful PRNG mask) not implemented; eval semantics used.
    # relu
    h = jnp.maximum(h, jnp.float32(0.0))
    # lin_o: h @ W2 + b2   (downcast h to bf16 for the MXU, accumulate f32)
    out = jnp.dot(h.astype(w2_ref.dtype), w2_ref[...],
                  preferred_element_type=jnp.float32)
    out = out + b2_ref[...]
    o_ref[...] = out.astype(o_ref.dtype)


@functools.partial(jax.jit, static_argnames=("batch_tile",))
def classifier_forward(x, w1, b1, w2, b2, *, batch_tile=256):
    """x: (B, fp_dim); w1: (fp_dim, h_dim); b1: (h_dim,);
       w2: (h_dim, out_dim); b2: (out_dim,). Returns (B, out_dim) float32."""
    B, fp_dim = x.shape
    h_dim = w1.shape[1]
    out_dim = w2.shape[1]

    # Pad batch up to a multiple of the tile (masked/extra rows are discarded).
    num_tiles = pl.cdiv(B, batch_tile)
    padded_B = num_tiles * batch_tile
    if padded_B != B:
        x = jnp.pad(x, ((0, padded_B - B), (0, 0)))

    # bf16 compute, f32 accumulation.
    x_bf = x.astype(jnp.bfloat16)
    w1_bf = w1.astype(jnp.bfloat16)
    w2_bf = w2.astype(jnp.bfloat16)
    b1_2d = b1.reshape(1, h_dim).astype(jnp.float32)
    b2_2d = b2.reshape(1, out_dim).astype(jnp.float32)

    cost = pl.CostEstimate(
        flops=2 * padded_B * (fp_dim * h_dim + h_dim * out_dim),
        transcendentals=0,
        bytes_accessed=(
            padded_B * fp_dim * 2          # x (bf16)
            + fp_dim * h_dim * 2           # w1 (bf16)
            + h_dim * 4                    # b1 (f32)
            + h_dim * out_dim * 2          # w2 (bf16)
            + out_dim * 4                  # b2 (f32)
            + padded_B * out_dim * 4       # out (f32)
        ),
    )

    out = pl.pallas_call(
        _classifier_kernel,
        out_shape=jax.ShapeDtypeStruct((padded_B, out_dim), jnp.float32),
        grid_spec=pltpu.PrefetchScalarGridSpec(
            num_scalar_prefetch=0,
            grid=(num_tiles,),
            in_specs=[
                pl.BlockSpec((batch_tile, fp_dim), lambda i: (i, 0)),
                pl.BlockSpec((fp_dim, h_dim), lambda i: (0, 0)),
                pl.BlockSpec((1, h_dim), lambda i: (0, 0)),
                pl.BlockSpec((h_dim, out_dim), lambda i: (0, 0)),
                pl.BlockSpec((1, out_dim), lambda i: (0, 0)),
            ],
            out_specs=pl.BlockSpec((batch_tile, out_dim), lambda i: (i, 0)),
        ),
        compiler_params=pltpu.CompilerParams(
            dimension_semantics=("parallel",),
        ),
        cost_estimate=cost,
    )(x_bf, w1_bf, b1_2d, w2_bf, b2_2d)

    return out[:B]


def _init_params(key, fp_dim, h_dim, out_dim, dtype=jnp.float32):
    """Deterministic init mimicking nn.Linear's uniform(-1/sqrt(fan_in), 1/sqrt(fan_in))."""
    k1, k2, k3, k4 = jax.random.split(key, 4)
    bound1 = 1.0 / jnp.sqrt(fp_dim)
    bound2 = 1.0 / jnp.sqrt(h_dim)
    # stored transposed relative to PyTorch: (in, out)
    w1 = jax.random.uniform(k1, (fp_dim, h_dim), dtype, -bound1, bound1)
    b1 = jax.random.uniform(k2, (h_dim,), dtype, -bound1, bound1)
    w2 = jax.random.uniform(k3, (h_dim, out_dim), dtype, -bound2, bound2)
    b2 = jax.random.uniform(k4, (out_dim,), dtype, -bound2, bound2)
    return w1, b1, w2, b2


if __name__ == "__main__":
    # Module's default dims; batch chosen so the grid has 2 parallel tiles
    # (lets v7x's two TensorCores both work).
    fp_dim, h_dim, out_dim = 256, 1024, 128
    batch = 512
    batch_tile = 256

    key = jax.random.PRNGKey(0)
    kx, kp = jax.random.split(key)
    x = jax.random.normal(kx, (batch, fp_dim), jnp.float32)
    w1, b1, w2, b2 = _init_params(kp, fp_dim, h_dim, out_dim)

    out = classifier_forward(x, w1, b1, w2, b2, batch_tile=batch_tile)
    out = jax.block_until_ready(out)
    assert out.shape == (batch, out_dim)

    # Matched-precision reference (bf16 inputs, f32 accumulation) in plain JAX.
    xb = x.astype(jnp.bfloat16)
    w1b = w1.astype(jnp.bfloat16)
    w2b = w2.astype(jnp.bfloat16)
    h_ref = jnp.dot(xb, w1b, preferred_element_type=jnp.float32) + b1
    h_ref = jnp.maximum(h_ref, 0.0)
    ref = jnp.dot(h_ref.astype(jnp.bfloat16), w2b,
                  preferred_element_type=jnp.float32) + b2
    assert jnp.allclose(out, ref, atol=1e-2, rtol=1e-2)

    # Loose sanity check against the full-f32 reference.
    ref_f32 = jnp.maximum(x @ w1 + b1, 0.0) @ w2 + b2
    assert jnp.allclose(out, ref_f32, atol=5e-2, rtol=5e-2)

    print("KERNEL_OK")
</pallas_src>

<mosaic_0001>
module attributes {stable_mosaic.version = 11 : i64} {
  func.func @_classifier_kernel(%arg0: i32, %arg1: memref<256x256xbf16, #tpu.memory_space<vmem>>, %arg2: memref<256x1024xbf16, #tpu.memory_space<vmem>>, %arg3: memref<1x1024xf32, #tpu.memory_space<vmem>>, %arg4: memref<1024x128xbf16, #tpu.memory_space<vmem>>, %arg5: memref<1x128xf32, #tpu.memory_space<vmem>>, %arg6: memref<256x128xf32, #tpu.memory_space<vmem>>) attributes {dimension_semantics = [#tpu.dimension_semantics<parallel>], iteration_bounds = array<i64: 2>, scalar_prefetch = 0 : i64, scratch_operands = 0 : i64, tpu.core_type = #tpu.core_type<tc>, window_params = [{transform_indices = @transform_0, window_bounds = array<i64: 256, 256>}, {pipeline_mode = #tpu.pipeline_mode<synchronous>, transform_indices = @transform_1, window_bounds = array<i64: 256, 1024>}, {pipeline_mode = #tpu.pipeline_mode<synchronous>, transform_indices = @transform_2, window_bounds = array<i64: 1, 1024>}, {pipeline_mode = #tpu.pipeline_mode<synchronous>, transform_indices = @transform_3, window_bounds = array<i64: 1024, 128>}, {pipeline_mode = #tpu.pipeline_mode<synchronous>, transform_indices = @transform_4, window_bounds = array<i64: 1, 128>}, {transform_indices = @transform_5, window_bounds = array<i64: 256, 128>}]} {
    %c0 = arith.constant 0 : index
    %c0_0 = arith.constant 0 : index
    %0 = vector.load %arg1[%c0, %c0_0] : memref<256x256xbf16, #tpu.memory_space<vmem>>, vector<256x256xbf16>
    %c0_1 = arith.constant 0 : index
    %c0_2 = arith.constant 0 : index
    %1 = vector.load %arg2[%c0_1, %c0_2] : memref<256x1024xbf16, #tpu.memory_space<vmem>>, vector<256x1024xbf16>
    %cst = arith.constant dense<0.000000e+00> : vector<256x1024xf32>
    %2 = tpu.matmul %0, %1, %cst {dimension_numbers = #tpu.dot_dimension_numbers<[1], [0], [0], [1], [0, 0, 1, 1], [], []>} : vector<256x256xbf16>, vector<256x1024xbf16>, vector<256x1024xf32> -> vector<256x1024xf32>
    %c0_3 = arith.constant 0 : index
    %c0_4 = arith.constant 0 : index
    %3 = vector.load %arg3[%c0_3, %c0_4] : memref<1x1024xf32, #tpu.memory_space<vmem>>, vector<1x1024xf32>
    %4 = vector.broadcast %3 : vector<1x1024xf32> to vector<256x1024xf32>
    %5 = arith.addf %2, %4 : vector<256x1024xf32>
    %cst_5 = arith.constant 0.000000e+00 : f32
    %6 = vector.broadcast %cst_5 : f32 to vector<256x1024xf32>
    %7 = arith.maximumf %5, %6 : vector<256x1024xf32>
    %8 = arith.truncf %7 : vector<256x1024xf32> to vector<256x1024xbf16>
    %c0_6 = arith.constant 0 : index
    %c0_7 = arith.constant 0 : index
    %9 = vector.load %arg4[%c0_6, %c0_7] : memref<1024x128xbf16, #tpu.memory_space<vmem>>, vector<1024x128xbf16>
    %cst_8 = arith.constant dense<0.000000e+00> : vector<256x128xf32>
    %10 = tpu.matmul %8, %9, %cst_8 {dimension_numbers = #tpu.dot_dimension_numbers<[1], [0], [0], [1], [0, 0, 1, 1], [], []>} : vector<256x1024xbf16>, vector<1024x128xbf16>, vector<256x128xf32> -> vector<256x128xf32>
    %c0_9 = arith.constant 0 : index
    %c0_10 = arith.constant 0 : index
    %11 = vector.load %arg5[%c0_9, %c0_10] : memref<1x128xf32, #tpu.memory_space<vmem>>, vector<1x128xf32>
    %12 = vector.broadcast %11 : vector<1x128xf32> to vector<256x128xf32>
    %13 = arith.addf %10, %12 : vector<256x128xf32>
    %c0_11 = arith.constant 0 : index
    %c0_12 = arith.constant 0 : index
    %14 = vector.load %arg6[%c0_11, %c0_12] : memref<256x128xf32, #tpu.memory_space<vmem>>, vector<256x128xf32>
    tpu.vector_store %arg6[%c0_11, %c0_12], %13 {strides = array<i32>} : memref<256x128xf32, #tpu.memory_space<vmem>>, vector<256x128xf32>,
    return
  }
  func.func @transform_0(%arg0: i32) -> (i32, i32) {
    %c0_i32 = arith.constant 0 : i32
    %c0_i32_0 = arith.constant 0 : i32
    return %arg0, %c0_i32 : i32, i32
  }
  func.func @transform_1(%arg0: i32) -> (i32, i32) {
    %c0_i32 = arith.constant 0 : i32
    %c0_i32_0 = arith.constant 0 : i32
    %c0_i32_1 = arith.constant 0 : i32
    return %c0_i32, %c0_i32_0 : i32, i32
  }
  func.func @transform_2(%arg0: i32) -> (i32, i32) {
    %c0_i32 = arith.constant 0 : i32
    %c0_i32_0 = arith.constant 0 : i32
    %c0_i32_1 = arith.constant 0 : i32
    return %c0_i32, %c0_i32_0 : i32, i32
  }
  func.func @transform_3(%arg0: i32) -> (i32, i32) {
    %c0_i32 = arith.constant 0 : i32
    %c0_i32_0 = arith.constant 0 : i32
    %c0_i32_1 = arith.constant 0 : i32
    return %c0_i32, %c0_i32_0 : i32, i32
  }
  func.func @transform_4(%arg0: i32) -> (i32, i32) {
    %c0_i32 = arith.constant 0 : i32
    %c0_i32_0 = arith.constant 0 : i32
    %c0_i32_1 = arith.constant 0 : i32
    return %c0_i32, %c0_i32_0 : i32, i32
  }
  func.func @transform_5(%arg0: i32) -> (i32, i32) {
    %c0_i32 = arith.constant 0 : i32
    %c0_i32_0 = arith.constant 0 : i32
    return %arg0, %c0_i32 : i32, i32
  }
}

</mosaic_0001>

<bundles_post_ra>
// kernel: classifier_forward.1
= control target key start
LH: loop header
LB: loop body
LE: loop exit
PB: predicated region body
PF: predicated region fallthrough
CT: control target
= control target key end

     0   :  { %10 = vsyncpa [#allocation3], 0  ;;  %s6342_s0 = inlined_call_operand.vmem [shape: bf16[512,256], index: 0, kind: input, shape index: {}]   ;;  %s6343_s1 = inlined_call_operand.vmem [shape: bf16[256,1024], index: 1, kind: input, shape index: {}]   ;;  %s6344_s2 = inlined_call_operand.vmem [shape: f32[1,1024], index: 2, kind: input, shape index: {}]   ;;  %s6345_s3 = inlined_call_operand.vmem [shape: bf16[1024,128], index: 3, kind: input, shape index: {}]   ;;  %s6346_s4 = inlined_call_operand.vmem [shape: f32[1,128], index: 4, kind: input, shape index: {}]   ;;  %s6347_s5 = inlined_call_operand.hbm [shape: f32[512,128], index: 5, kind: output, shape index: {}]  }
   0x1   :  { %12 = vsyncpa [#allocation3 + $0x1], 0  ;;  %s4599_s18 = smov 0   ;;  %s4601_s19 = smov 0  }
   0x2   :  { %s4603_s20 = smov 0   ;;  %s4605_s21 = smov 0  }
   0x3 LB: > { %s4620_s22 = sadd.s32 4294967295, %s4564_s21   ;;  %s3659_s23 = sadd.s32 4294967294, %s4564_s21   ;;  %s4564_s21 = sphi %s4605_s21, %s6353_s21   ;;  %s4560_s20 = sphi %s4603_s20, %s6352_s20   ;;  %s4556_s19 = sphi %s4601_s19, %s6351_s19   ;;  %s4552_s18 = sphi %s4599_s18, %s6350_s18  }
   0x4   : > { %s4624_s24 = sadd.s32 1, %s4564_s21   ;;  %s135_s25 = sadd.s32 1, %s4560_s20 }
   0x5   : > { %s132_s26 = ssub.s32 %s4564_s21, %s4624_s24  ;;  %p145_p0 = scmp.ne.s32.totalorder %s4560_s20, %s4556_s19 }
   0x6   : > { %p133_p1 = scmp.eq.s32.totalorder %s132_s26, 0  ;;  %p146_p2 = scmp.eq.s32.totalorder %s4620_s22, 1 }
   0x7   : > { %p151_p3 = scmp.ne.s32.totalorder %s4556_s19, %s4552_s18  ;;  %p152_p4 = scmp.eq.s32.totalorder %s3659_s23, 1 }
   0x8   : > { %s4635_s27 = scalar_select %p133_p1, %s4560_s20, %s135_s25  }
   0x9   : > { %p4637_p5 = por %p146_p2, %p145_p0  ;;  %p4641_p6 = por %p152_p4, %p151_p3 }
   0xa   : > { %p3662_p7 = scmp.ge.s32.totalorder %s4564_s21, 1  ;;  %p192_p8 = scmp.lt.s32.totalorder %s4564_s21, 3 }
   0xc   : > { %p193_p9 = pnand %p3662_p7, %p192_p8 }
   0xd   : > { %v262_v0 = vld [vmem:[%s6343_s1] sm:$0xff] (!%p193_p9)  ;;  %v263_v2 = vld [vmem:[%s6343_s1 + $0x8] sm:$0xff] (!%p193_p9)  ;;  %s3664_s13 = sshll.u32 (!%p193_p9), %s4620_s22, 5  ;;  %s218_s15 = sand.u32 (!%p193_p9), 1, %s4556_s19  }
   0xe   : > { %196 = sbr.rel (%p193_p9) target bundleno = 821 (0x335), region = 40  ;;  %v266_v1 = vld [vmem:[%s6343_s1 + $0x20] sm:$0xff] (!%p193_p9)  ;;  %v267_v4 = vld [vmem:[%s6343_s1 + $0x28] sm:$0xff] (!%p193_p9)  ;;  %p222_p10 = scmp.lt.s32.totalorder (!%p193_p9), %s3664_s13, 63 }
   0xf   : > { %v3700_v3 = vcombine.high (!%p193_p9), %v262_v0, %v266_v1  ;;  %v3699_v5 = vcombine.low (!%p193_p9), %v262_v0, %v266_v1  ;;  %v270_v6 = vld [vmem:[%s6343_s1 + $0x40] sm:$0xff] (!%p193_p9)  ;;  %v3702_v8 = vcombine.high (!%p193_p9), %v263_v2, %v267_v4  ;;  %v3701_v9 = vcombine.low (!%p193_p9), %v263_v2, %v267_v4  ;;  %v271_v11 = vld [vmem:[%s6343_s1 + $0x48] sm:$0xff] (!%p193_p9)  ;;  %s3898_s17 = sshll.u32 (!%p193_p9), %s4620_s22, 12  ;;  %s6301_s22 = scalar_lea.sflag (!%p193_p9), [#allocation3], %s218_s15 }
  0x10   : > { %v274_v7 = vld [vmem:[%s6343_s1 + $0x60] sm:$0xff] (!%p193_p9)  ;;  %v275_v12 = vld [vmem:[%s6343_s1 + $0x68] sm:$0xff] (!%p193_p9)  ;;  %s6293_s30 = scalar_lea.hbm (!%p193_p9), %s6347_s5, %s3898_s17 }
  0x11   : > { %v3708_v10 = vcombine.high (!%p193_p9), %v270_v6, %v274_v7  ;;  %v278_v13 = vld [vmem:[%s6343_s1 + $0x80] sm:$0xff] (!%p193_p9)  ;;  %1232 = vmatprep.subr.bf16.mxu0 (!%p193_p9), %v3700_v3  ;;  %v3710_v14 = vcombine.high (!%p193_p9), %v271_v11, %v275_v12  ;;  %v279_v16 = vld [vmem:[%s6343_s1 + $0x88] sm:$0xff] (!%p193_p9)  ;;  %1425 = vmatprep.subr.bf16.mxu1 (!%p193_p9), %v3702_v8  ;;  %v3707_v18 = vcombine.low (!%p193_p9), %v270_v6, %v274_v7 }
  0x12   : > { %v282_v15 = vld [vmem:[%s6343_s1 + $0xa0] sm:$0xff] (!%p193_p9)  ;;  %v283_v17 = vld [vmem:[%s6343_s1 + $0xa8] sm:$0xff] (!%p193_p9)  ;;  %1233 = vmatpush1.bf16.msra.mxu0 (!%p193_p9), %v3699_v5  ;;  %1426 = vmatpush1.bf16.msra.mxu1 (!%p193_p9), %v3701_v9  ;;  %v3709_v19 = vcombine.low (!%p193_p9), %v271_v11, %v275_v12 }
  0x13   : > { %1234 = vmatprep.subr.bf16.mxu0 (!%p193_p9), %v3708_v10  ;;  %v3716_v20 = vcombine.high (!%p193_p9), %v278_v13, %v282_v15  ;;  %1427 = vmatprep.subr.bf16.mxu1 (!%p193_p9), %v3710_v14  ;;  %v3718_v21 = vcombine.high (!%p193_p9), %v279_v16, %v283_v17  ;;  %v286_v22 = vld [vmem:[%s6343_s1 + $0xc0] sm:$0xff] (!%p193_p9)  ;;  %v287_v24 = vld [vmem:[%s6343_s1 + $0xc8] sm:$0xff] (!%p193_p9)  ;;  %v3715_v26 = vcombine.low (!%p193_p9), %v278_v13, %v282_v15 }
  0x14   : > { %v290_v23 = vld [vmem:[%s6343_s1 + $0xe0] sm:$0xff] (!%p193_p9)  ;;  %v291_v25 = vld [vmem:[%s6343_s1 + $0xe8] sm:$0xff] (!%p193_p9)  ;;  %v3717_v27 = vcombine.low (!%p193_p9), %v279_v16, %v283_v17 }
  0x15   : > { %v3724_v28 = vcombine.high %v286_v22, %v290_v23  ;;  %v3726_v29 = vcombine.high %v287_v24, %v291_v25  ;;  %v294_v30 = vld [vmem:[%s6343_s1 + $0x100] sm:$0xff]  ;;  %v295_v32 = vld [vmem:[%s6343_s1 + $0x108] sm:$0xff]  ;;  %v3723_v34 = vcombine.low %v286_v22, %v290_v23  ;;  %s6355_s13 = smov (!%p222_p10, %s3664_s13), 63  ;;  %v3725_v35 = vcombine.low %v287_v24, %v291_v25 }
  0x16   : > { %1235 = vmatpush1.bf16.msra.mxu0 %v3707_v18  ;;  %1428 = vmatpush1.bf16.msra.mxu1 %v3709_v19  ;;  %v298_v31 = vld [vmem:[%s6343_s1 + $0x120] sm:$0xff]  ;;  %v299_v33 = vld [vmem:[%s6343_s1 + $0x128] sm:$0xff]  ;;  %s3897_s7 = sshll.u32 %s6355_s13, 3  ;;  %s3663_s13 = sshll.u32 %s218_s15, 8 }
  0x17   : > { %1236 = vmatprep.subr.bf16.mxu0 %v3716_v20  ;;  %1429 = vmatprep.subr.bf16.mxu1 %v3718_v21  ;;  %v3732_v36 = vcombine.high %v294_v30, %v298_v31  ;;  %v3734_v37 = vcombine.high %v295_v32, %v299_v33  ;;  %v302_v38 = vld [vmem:[%s6343_s1 + $0x140] sm:$0xff]  ;;  %v303_v40 = vld [vmem:[%s6343_s1 + $0x148] sm:$0xff]  ;;  %v3731_v42 = vcombine.low %v294_v30, %v298_v31  ;;  %s4735_s23 = scalar_lea.vmem %s6342_s0, %s3897_s7  ;;  %s6226_s16 = scalar_lea.vmem [#allocation2], %s3663_s13 }
  0x18   : > { %v306_v39 = vld [vmem:[%s6343_s1 + $0x160] sm:$0xff]  ;;  %v307_v41 = vld [vmem:[%s6343_s1 + $0x168] sm:$0xff]  ;;  %v3733_v43 = vcombine.low %v295_v32, %v299_v33  ;;  %s3597_s25 = sshll.u32 %s6226_s16, 4  ;;  %s4566_s7 = smov [#allocation2]   ;;  %s6295_s25 = int_to_ptr.vmem [resolvable:$true] %s3597_s25 }
  0x19   : > { %v3740_v44 = vcombine.high %v302_v38, %v306_v39  ;;  %v3742_v45 = vcombine.high %v303_v40, %v307_v41  ;;  %v310_v46 = vld [vmem:[%s6343_s1 + $0x180] sm:$0xff]  ;;  %v311_v48 = vld [vmem:[%s6343_s1 + $0x188] sm:$0xff]  ;;  %v3739_v50 = vcombine.low %v302_v38, %v306_v39  ;;  %v3741_v51 = vcombine.low %v303_v40, %v307_v41  ;;  %s4502_s6 = scalar_lea.vmem %s6295_s25, 4096  ;;  %s4506_s8 = sshll.u32 %s4566_s7, 4  ;;  %s4507_s8 = int_to_ptr.vmem [resolvable:$false] %s4506_s8 }
  0x1a   : > { %1237 = vmatpush1.bf16.msra.mxu0 %v3715_v26  ;;  %1430 = vmatpush1.bf16.msra.mxu1 %v3717_v27  ;;  %v314_v47 = vld [vmem:[%s6343_s1 + $0x1a0] sm:$0xff]  ;;  %v315_v49 = vld [vmem:[%s6343_s1 + $0x1a8] sm:$0xff]  ;;  %p4503_p11 = scmp.ne.s32.totalorder %s6295_s25, %s4502_s6  ;;  %s4508_s9 = scalar_lea.vmem %s4507_s8, 8192 }
  0x1b   : > { %1238 = vmatprep.subr.bf16.mxu0 %v3724_v28  ;;  %1431 = vmatprep.subr.bf16.mxu1 %v3726_v29  ;;  %v3748_v52 = vcombine.high %v310_v46, %v314_v47  ;;  %v3750_v53 = vcombine.high %v311_v48, %v315_v49  ;;  %v318_v54 = vld [vmem:[%s6343_s1 + $0x1c0] sm:$0xff]  ;;  %v319_v57 = vld [vmem:[%s6343_s1 + $0x1c8] sm:$0xff]  ;;  %v3747_v59 = vcombine.low %v310_v46, %v314_v47  ;;  %p4509_p0 = scmp.lt.s32.totalorder %s6295_s25, %s4507_s8  ;;  %p4510_p1 = scmp.lt.s32.totalorder %s4508_s9, %s4502_s6 }
  0x1c   : > { %v322_v55 = vld [vmem:[%s6343_s1 + $0x1e0] sm:$0xff]  ;;  %v323_v58 = vld [vmem:[%s6343_s1 + $0x1e8] sm:$0xff]  ;;  %v3749_v60 = vcombine.low %v311_v48, %v315_v49  ;;  %p4504_p12 = pnand %p4503_p11, %p4637_p5 }
  0x1d   : > { %v4388_v56 = vld [vmem:[%s4735_s23 + $0x4] ss:$8 sps:$4 sm:$0xff]   ;;  %v3756_v61 = vcombine.high %v318_v54, %v322_v55  ;;  %v3758_v62 = vcombine.high %v319_v57, %v323_v58  ;;  %v3755_v3 = vcombine.low %v318_v54, %v322_v55  ;;  %v3757_v4 = vcombine.low %v319_v57, %v323_v58  ;;  %p4511_p2 = por %p4510_p1, %p4509_p0 }
  0x1e   : > { %1239 = vmatpush1.bf16.msra.mxu0 %v3723_v34  ;;  %1432 = vmatpush1.bf16.msra.mxu1 %v3725_v35  ;;  %v326_v63 = vld [vmem:[%s6343_s1 + $0x200] sm:$0xff]  ;;  %v327_v1 = vld [vmem:[%s6343_s1 + $0x208] sm:$0xff]  ;;  %p4505_p13 = pneg %p4504_p12 }
  0x1f   : > { %1240 = vmatprep.subr.bf16.mxu0 %v3732_v36  ;;  %1433 = vmatprep.subr.bf16.mxu1 %v3734_v37  ;;  %v330_v0 = vld [vmem:[%s6343_s1 + $0x220] sm:$0xff]  ;;  %v331_v2 = vld [vmem:[%s6343_s1 + $0x228] sm:$0xff] }
  0x20   : > { %1264 = vmatprep.mubr.bf16.mxu0 %v4388_v56  ;;  %1457 = vmatprep.mubr.bf16.mxu1 %v4388_v56  ;;  %v3764_v5 = vcombine.high %v326_v63, %v330_v0  ;;  %v3766_v6 = vcombine.high %v327_v1, %v331_v2  ;;  %v334_v7 = vld [vmem:[%s6343_s1 + $0x240] sm:$0xff]  ;;  %v335_v9 = vld [vmem:[%s6343_s1 + $0x248] sm:$0xff]  ;;  %v3763_v11 = vcombine.low %v326_v63, %v330_v0  ;;  %v264_v63 = vld [vmem:[%s6343_s1 + $0x10] sm:$0xff]  ;;  %p4512_p3 = pnand %p4511_p2, %p4505_p13 }
  0x21   : > { %v338_v8 = vld [vmem:[%s6343_s1 + $0x260] sm:$0xff]  ;;  %v339_v10 = vld [vmem:[%s6343_s1 + $0x268] sm:$0xff]  ;;  %v3765_v12 = vcombine.low %v327_v1, %v331_v2  ;;  %v268_v0 = vld [vmem:[%s6343_s1 + $0x30] sm:$0xff] }
  0x22   : > { %1241 = vmatpush1.bf16.msra.mxu0 %v3731_v42  ;;  %1434 = vmatpush1.bf16.msra.mxu1 %v3733_v43  ;;  %v3772_v13 = vcombine.high %v334_v7, %v338_v8  ;;  %v3774_v14 = vcombine.high %v335_v9, %v339_v10  ;;  %v342_v15 = vld [vmem:[%s6343_s1 + $0x280] sm:$0xff]  ;;  %v343_v17 = vld [vmem:[%s6343_s1 + $0x288] sm:$0xff]  ;;  %v3771_v19 = vcombine.low %v334_v7, %v338_v8  ;;  %v265_v1 = vld [vmem:[%s6343_s1 + $0x18] sm:$0xff] }
  0x23   : > { %1242 = vmatprep.subr.bf16.mxu0 %v3740_v44  ;;  %1435 = vmatprep.subr.bf16.mxu1 %v3742_v45  ;;  %v346_v16 = vld [vmem:[%s6343_s1 + $0x2a0] sm:$0xff]  ;;  %v347_v18 = vld [vmem:[%s6343_s1 + $0x2a8] sm:$0xff]  ;;  %v3773_v20 = vcombine.low %v335_v9, %v339_v10  ;;  %v269_v2 = vld [vmem:[%s6343_s1 + $0x38] sm:$0xff] }
  0x24   : > { %v3780_v21 = vcombine.high %v342_v15, %v346_v16  ;;  %v3782_v22 = vcombine.high %v343_v17, %v347_v18  ;;  %v350_v23 = vld [vmem:[%s6343_s1 + $0x2c0] sm:$0xff]  ;;  %v351_v25 = vld [vmem:[%s6343_s1 + $0x2c8] sm:$0xff]  ;;  %v3779_v27 = vcombine.low %v342_v15, %v346_v16  ;;  %v3781_v28 = vcombine.low %v343_v17, %v347_v18  ;;  %v272_v8 = vld [vmem:[%s6343_s1 + $0x50] sm:$0xff] }
  0x25   : > { %v354_v24 = vld [vmem:[%s6343_s1 + $0x2e0] sm:$0xff]  ;;  %v355_v26 = vld [vmem:[%s6343_s1 + $0x2e8] sm:$0xff]  ;;  %v3706_v7 = vcombine.high %v265_v1, %v269_v2  ;;  %v4865_v9 = vld [vmem:[%s4735_s23 + $0x14] ss:$8 sps:$4 sm:$0xff]   ;;  %v3705_v16 = vcombine.low %v265_v1, %v269_v2 }
  0x26   : > { %1243 = vmatpush1.bf16.msra.mxu0 %v3739_v50  ;;  %1436 = vmatpush1.bf16.msra.mxu1 %v3741_v51  ;;  %v3788_v29 = vcombine.high %v350_v23, %v354_v24  ;;  %v3790_v30 = vcombine.high %v351_v25, %v355_v26  ;;  %v358_v31 = vld [vmem:[%s6343_s1 + $0x300] sm:$0xff]  ;;  %v359_v33 = vld [vmem:[%s6343_s1 + $0x308] sm:$0xff]  ;;  %v3787_v35 = vcombine.low %v350_v23, %v354_v24  ;;  %v276_v10 = vld [vmem:[%s6343_s1 + $0x70] sm:$0xff] }
  0x27   : > { %1244 = vmatprep.subr.bf16.mxu0 %v3748_v52  ;;  %1437 = vmatprep.subr.bf16.mxu1 %v3750_v53  ;;  %v362_v32 = vld [vmem:[%s6343_s1 + $0x320] sm:$0xff]  ;;  %v363_v34 = vld [vmem:[%s6343_s1 + $0x328] sm:$0xff]  ;;  %v3789_v36 = vcombine.low %v351_v25, %v355_v26  ;;  %v284_v15 = vld [vmem:[%s6343_s1 + $0xb0] sm:$0xff] }
  0x28   : > { %v3796_v37 = vcombine.high %v358_v31, %v362_v32  ;;  %v3798_v38 = vcombine.high %v359_v33, %v363_v34  ;;  %v366_v39 = vld [vmem:[%s6343_s1 + $0x340] sm:$0xff]  ;;  %v367_v41 = vld [vmem:[%s6343_s1 + $0x348] sm:$0xff]  ;;  %v3795_v43 = vcombine.low %v358_v31, %v362_v32  ;;  %v3797_v44 = vcombine.low %v359_v33, %v363_v34  ;;  %v281_v17 = vld [vmem:[%s6343_s1 + $0x98] sm:$0xff] }
  0x29   : > { %v370_v40 = vld [vmem:[%s6343_s1 + $0x360] sm:$0xff]  ;;  %v371_v42 = vld [vmem:[%s6343_s1 + $0x368] sm:$0xff]  ;;  %v285_v18 = vld [vmem:[%s6343_s1 + $0xb8] sm:$0xff] }
  0x2a   : > { %1245 = vmatpush1.bf16.msra.mxu0 %v3747_v59  ;;  %1438 = vmatpush1.bf16.msra.mxu1 %v3749_v60  ;;  %v3804_v45 = vcombine.high %v366_v39, %v370_v40  ;;  %v3806_v46 = vcombine.high %v367_v41, %v371_v42  ;;  %v374_v47 = vld [vmem:[%s6343_s1 + $0x380] sm:$0xff]  ;;  %v375_v49 = vld [vmem:[%s6343_s1 + $0x388] sm:$0xff]  ;;  %v3803_v51 = vcombine.low %v366_v39, %v370_v40  ;;  %v288_v25 = vld [vmem:[%s6343_s1 + $0xd0] sm:$0xff] }
  0x2b   : > { %1246 = vmatprep.subr.bf16.mxu0 %v3756_v61  ;;  %1439 = vmatprep.subr.bf16.mxu1 %v3758_v62  ;;  %v378_v48 = vld [vmem:[%s6343_s1 + $0x3a0] sm:$0xff]  ;;  %v379_v50 = vld [vmem:[%s6343_s1 + $0x3a8] sm:$0xff]  ;;  %v3805_v52 = vcombine.low %v367_v41, %v371_v42  ;;  %v292_v26 = vld [vmem:[%s6343_s1 + $0xf0] sm:$0xff]  ;;  %v3721_v34 = vcombine.low %v281_v17, %v285_v18 }
  0x2c   : > { %v3812_v53 = vcombine.high %v374_v47, %v378_v48  ;;  %v3814_v54 = vcombine.high %v375_v49, %v379_v50  ;;  %v382_v55 = vld [vmem:[%s6343_s1 + $0x3c0] sm:$0xff]  ;;  %v383_v57 = vld [vmem:[%s6343_s1 + $0x3c8] sm:$0xff]  ;;  %v3811_v59 = vcombine.low %v374_v47, %v378_v48  ;;  %v3813_v60 = vcombine.low %v375_v49, %v379_v50  ;;  %v296_v32 = vld [vmem:[%s6343_s1 + $0x110] sm:$0xff] }
  0x2d   : > { %v386_v56 = vld [vmem:[%s6343_s1 + $0x3e0] sm:$0xff]  ;;  %v387_v58 = vld [vmem:[%s6343_s1 + $0x3e8] sm:$0xff]  ;;  %v300_v33 = vld [vmem:[%s6343_s1 + $0x130] sm:$0xff]  ;;  %v3727_v40 = vcombine.low %v288_v25, %v292_v26 }
  0x2e   : > { %1247 = vmatpush1.bf16.msra.mxu0 %v3755_v3  ;;  %1440 = vmatpush1.bf16.msra.mxu1 %v3757_v4  ;;  %v3820_v61 = vcombine.high %v382_v55, %v386_v56  ;;  %v3822_v62 = vcombine.high %v383_v57, %v387_v58  ;;  %v3819_v3 = vcombine.low %v382_v55, %v386_v56  ;;  %v4927_v39 = vld [vmem:[%s4735_s23 + $0x20] ss:$8 sps:$4 sm:$0xff]   ;;  %v304_v41 = vld [vmem:[%s6343_s1 + $0x150] sm:$0xff]  ;;  %v309_v47 = vld [vmem:[%s6343_s1 + $0x178] sm:$0xff] }
  0x2f   : > { %1248 = vmatprep.subr.bf16.mxu0 %v3764_v5  ;;  %1441 = vmatprep.subr.bf16.mxu1 %v3766_v6  ;;  %v3821_v4 = vcombine.low %v383_v57, %v387_v58  ;;  %v3704_v5 = vcombine.high %v264_v63, %v268_v0  ;;  %v4859_v6 = vld [vmem:[%s4735_s23] ss:$8 sps:$4 sm:$0xff]   ;;  %v308_v42 = vld [vmem:[%s6343_s1 + $0x170] sm:$0xff]  ;;  %v3735_v49 = vcombine.low %v296_v32, %v300_v33  ;;  %v313_v55 = vld [vmem:[%s6343_s1 + $0x198] sm:$0xff] }
  0x30   : > { %v312_v50 = vld [vmem:[%s6343_s1 + $0x190] sm:$0xff]  ;;  %v317_v56 = vld [vmem:[%s6343_s1 + $0x1b8] sm:$0xff]  ;;  %v3743_v58 = vcombine.low %v304_v41, %v308_v42 }
  0x31   : > { %v4961_v57 = vld [vmem:[%s4735_s23 + $0x30] ss:$8 sps:$4 sm:$0xff]   ;;  %v3754_v2 = vcombine.high %v313_v55, %v317_v56 }
  0x32   : > { %1249 = vmatpush1.bf16.msra.mxu0 %v3763_v11  ;;  %1442 = vmatpush1.bf16.msra.mxu1 %v3765_v12  ;;  %v273_v11 = vld [vmem:[%s6343_s1 + $0x58] sm:$0xff] }
  0x33   : > { %1250 = vmatprep.subr.bf16.mxu0 %v3772_v13  ;;  %1443 = vmatprep.subr.bf16.mxu1 %v3774_v14  ;;  %v277_v12 = vld [vmem:[%s6343_s1 + $0x78] sm:$0xff]  ;;  %v3703_v13 = vcombine.low %v264_v63, %v268_v0  ;;  %v280_v14 = vld [vmem:[%s6343_s1 + $0x90] sm:$0xff] }
  0x34   : > { %v3713_v23 = vcombine.low %v273_v11, %v277_v12  ;;  %v3720_v24 = vcombine.high %v280_v14, %v284_v15  ;;  %v3719_v31 = vcombine.low %v280_v14, %v284_v15  ;;  %v321_v0 = vld [vmem:[%s6343_s1 + $0x1d8] sm:$0xff]  ;;  %v336_v15 = vld [vmem:[%s6343_s1 + $0x250] sm:$0xff] }
  0x35   : > { %v325_v1 = vld [vmem:[%s6343_s1 + $0x1f8] sm:$0xff] }
  0x36   : > { %1251 = vmatpush1.bf16.msra.mxu0 %v3771_v19  ;;  %1444 = vmatpush1.bf16.msra.mxu1 %v3773_v20  ;;  %v3712_v19 = vcombine.high %v272_v8, %v276_v10  ;;  %v3714_v20 = vcombine.high %v273_v11, %v277_v12  ;;  %v333_v11 = vld [vmem:[%s6343_s1 + $0x238] sm:$0xff]  ;;  %v3762_v12 = vcombine.high %v321_v0, %v325_v1 }
  0x37   : > { %1252 = vmatprep.subr.bf16.mxu0 %v3780_v21  ;;  %1445 = vmatprep.subr.bf16.mxu1 %v3782_v22  ;;  %v3711_v21 = vcombine.low %v272_v8, %v276_v10  ;;  %v4892_v22 = vld [vmem:[%s4735_s23 + $0x10] ss:$8 sps:$4 sm:$0xff]  }
  0x38   : > { %v329_v10 = vld [vmem:[%s6343_s1 + $0x218] sm:$0xff] }
  0x3a   : > { %1253 = vmatpush1.bf16.msra.mxu0 %v3779_v27  ;;  %1446 = vmatpush1.bf16.msra.mxu1 %v3781_v28  ;;  %v4902_v27 = vld [vmem:[%s4735_s23 + $0x24] ss:$8 sps:$4 sm:$0xff]   ;;  %v3722_v28 = vcombine.high %v281_v17, %v285_v18  ;;  %v5004_v17 = vld [vmem:[%s4735_s23 + $0x54] ss:$8 sps:$4 sm:$0xff]   ;;  %v3761_v18 = vcombine.low %v321_v0, %v325_v1 }
  0x3b   : > { %1254 = vmatprep.subr.bf16.mxu0 %v3788_v29  ;;  %1447 = vmatprep.subr.bf16.mxu1 %v3790_v30  ;;  %v289_v29 = vld [vmem:[%s6343_s1 + $0xd8] sm:$0xff] }
  0x3c   : > { %v293_v30 = vld [vmem:[%s6343_s1 + $0xf8] sm:$0xff] }
  0x3d   : > { %v373_v0 = vld [vmem:[%s6343_s1 + $0x378] sm:$0xff] }
  0x3e   : > { %1255 = vmatpush1.bf16.msra.mxu0 %v3787_v35  ;;  %1448 = vmatpush1.bf16.msra.mxu1 %v3789_v36  ;;  %v3728_v35 = vcombine.high %v288_v25, %v292_v26  ;;  %v297_v36 = vld [vmem:[%s6343_s1 + $0x118] sm:$0xff]  ;;  %v344_v25 = vld [vmem:[%s6343_s1 + $0x290] sm:$0xff] }
  0x3f   : > { %1256 = vmatprep.subr.bf16.mxu0 %v3796_v37  ;;  %1449 = vmatprep.subr.bf16.mxu1 %v3798_v38  ;;  %v301_v37 = vld [vmem:[%s6343_s1 + $0x138] sm:$0xff]  ;;  %v3730_v38 = vcombine.high %v289_v29, %v293_v30  ;;  %v348_v26 = vld [vmem:[%s6343_s1 + $0x2b0] sm:$0xff] }
  0x40   : > { %v3738_v48 = vcombine.high %v297_v36, %v301_v37 }
  0x42   : > { %1257 = vmatpush1.bf16.msra.mxu0 %v3795_v43  ;;  %1450 = vmatpush1.bf16.msra.mxu1 %v3797_v44  ;;  %v4936_v43 = vld [vmem:[%s4735_s23 + $0x34] ss:$8 sps:$4 sm:$0xff]   ;;  %v3729_v44 = vcombine.low %v289_v29, %v293_v30 }
  0x43   : > { %1258 = vmatprep.subr.bf16.mxu0 %v3804_v45  ;;  %1451 = vmatprep.subr.bf16.mxu1 %v3806_v46  ;;  %v3736_v45 = vcombine.high %v296_v32, %v300_v33  ;;  %v305_v46 = vld [vmem:[%s6343_s1 + $0x158] sm:$0xff] }
  0x44   : > { %v349_v32 = vld [vmem:[%s6343_s1 + $0x2b8] sm:$0xff] }
  0x45   : > { %v5029_v33 = vld [vmem:[%s4735_s23 + $0x50] ss:$8 sps:$4 sm:$0xff]  }
  0x46   : > { %1259 = vmatpush1.bf16.msra.mxu0 %v3803_v51  ;;  %1452 = vmatpush1.bf16.msra.mxu1 %v3805_v52  ;;  %v316_v51 = vld [vmem:[%s6343_s1 + $0x1b0] sm:$0xff]  ;;  %v3737_v52 = vcombine.low %v297_v36, %v301_v37  ;;  %v5038_v37 = vld [vmem:[%s4735_s23 + $0x64] ss:$8 sps:$4 sm:$0xff]  }
  0x47   : > { %1260 = vmatprep.subr.bf16.mxu0 %v3812_v53  ;;  %1453 = vmatprep.subr.bf16.mxu1 %v3814_v54  ;;  %v3744_v53 = vcombine.high %v304_v41, %v308_v42  ;;  %v3746_v54 = vcombine.high %v305_v46, %v309_v47  ;;  %v3752_v63 = vcombine.high %v312_v50, %v316_v51  ;;  %v356_v36 = vld [vmem:[%s6343_s1 + $0x2f0] sm:$0xff]  ;;  %v353_v41 = vld [vmem:[%s6343_s1 + $0x2d8] sm:$0xff] }
  0x48   : > { %v357_v42 = vld [vmem:[%s6343_s1 + $0x2f8] sm:$0xff] }
  0x4a   : > { %1261 = vmatpush1.bf16.msra.mxu0 %v3811_v59  ;;  %1454 = vmatpush1.bf16.msra.mxu1 %v3813_v60  ;;  %v320_v59 = vld [vmem:[%s6343_s1 + $0x1d0] sm:$0xff] }
  0x4b   : > { %1262 = vmatprep.subr.bf16.mxu0 %v3820_v61  ;;  %1455 = vmatprep.subr.bf16.mxu1 %v3822_v62  ;;  %v324_v60 = vld [vmem:[%s6343_s1 + $0x1f0] sm:$0xff]  ;;  %v4970_v61 = vld [vmem:[%s4735_s23 + $0x44] ss:$8 sps:$4 sm:$0xff]   ;;  %v3745_v62 = vcombine.low %v305_v46, %v309_v47 }
  0x4c   : > { %v3760_v8 = vcombine.high %v320_v59, %v324_v60  ;;  %v3759_v14 = vcombine.low %v320_v59, %v324_v60  ;;  %v360_v46 = vld [vmem:[%s6343_s1 + $0x310] sm:$0xff] }
  0x4d   : > { %v364_v47 = vld [vmem:[%s6343_s1 + $0x330] sm:$0xff] }
  0x4e   : > { %1263 = vmatpush1.bf16.msra.mxu0 %v3819_v3  ;;  %1456 = vmatpush1.bf16.msra.mxu1 %v3821_v4  ;;  %v3751_v3 = vcombine.low %v312_v50, %v316_v51  ;;  %v328_v4 = vld [vmem:[%s6343_s1 + $0x210] sm:$0xff]  ;;  %v361_v50 = vld [vmem:[%s6343_s1 + $0x318] sm:$0xff]  ;;  %v3799_v1 = vcombine.low %v360_v46, %v364_v47 }
  0x4f   : > { %1618 = vmatprep.subr.bf16.mxu0 %v3704_v5  ;;  %1811 = vmatprep.subr.bf16.mxu1 %v3706_v7  ;;  %v332_v5 = vld [vmem:[%s6343_s1 + $0x230] sm:$0xff]  ;;  %v3753_v7 = vcombine.low %v313_v55, %v317_v56  ;;  %v365_v51 = vld [vmem:[%s6343_s1 + $0x338] sm:$0xff]  ;;  %v3800_v55 = vcombine.high %v360_v46, %v364_v47  ;;  %v5063_v56 = vld [vmem:[%s4735_s23 + $0x60] ss:$8 sps:$4 sm:$0xff]  }
  0x50   : > { %v368_v59 = vld [vmem:[%s6343_s1 + $0x350] sm:$0xff] }
  0x51   : > { %1265 = vmatmul.mubr.bf16.vlgmr.msra.gmra.mrb[0].mxu0 %v4859_v6  ;;  %1458 = vmatmul.mubr.bf16.vlgmr.msra.gmra.mrb[0].mxu1 %v4859_v6  ;;  %v372_v60 = vld [vmem:[%s6343_s1 + $0x370] sm:$0xff] }
  0x52   : > { %1619 = vmatpush1.bf16.msra.mxu0 %v3703_v13  ;;  %1812 = vmatpush1.bf16.msra.mxu1 %v3705_v16  ;;  %v4995_v13 = vld [vmem:[%s4735_s23 + $0x40] ss:$8 sps:$4 sm:$0xff]   ;;  %v340_v16 = vld [vmem:[%s6343_s1 + $0x270] sm:$0xff] }
  0x53   : > { %1274 = vmatprep.mubr.bf16.mxu0 %v4865_v9  ;;  %1467 = vmatprep.mubr.bf16.mxu1 %v4865_v9  ;;  %v3776_v29 = vcombine.high %v336_v15, %v340_v16  ;;  %v5168_v46 = vld [vmem:[%s4735_s23 + $0xd4] ss:$8 sps:$4 sm:$0xff]   ;;  %v5175_v47 = vld [vmem:[%s4735_s23 + $0xd0] ss:$8 sps:$4 sm:$0xff]  }
  0x54   : > { %1620 = vmatprep.subr.bf16.mxu0 %v3712_v19  ;;  %1813 = vmatprep.subr.bf16.mxu1 %v3714_v20  ;;  %v3768_v19 = vcombine.high %v328_v4, %v332_v5  ;;  %v337_v20 = vld [vmem:[%s6343_s1 + $0x258] sm:$0xff] }
  0x56   : > { %1621 = vmatpush1.bf16.msra.mxu0 %v3711_v21  ;;  %1814 = vmatpush1.bf16.msra.mxu1 %v3713_v23  ;;  %v341_v21 = vld [vmem:[%s6343_s1 + $0x278] sm:$0xff]  ;;  %v3770_v23 = vcombine.high %v329_v10, %v333_v11 }
  0x57   : > { %1622 = vmatprep.subr.bf16.mxu0 %v3720_v24  ;;  %1815 = vmatprep.subr.bf16.mxu1 %v3722_v28  ;;  %v3767_v24 = vcombine.low %v328_v4, %v332_v5  ;;  %v3769_v28 = vcombine.low %v329_v10, %v333_v11  ;;  %v3778_v30 = vcombine.high %v337_v20, %v341_v21  ;;  %v376_v5 = vld [vmem:[%s6343_s1 + $0x390] sm:$0xff]  ;;  %v381_v10 = vld [vmem:[%s6343_s1 + $0x3b8] sm:$0xff] }
  0x58   : > { %v3807_v11 = vcombine.low %v368_v59, %v372_v60 }
  0x59   : > { %1275 = vmatmul.mubr.bf16.gmra.mrb[4].mxu0 %v4892_v22  ;;  %1468 = vmatmul.mubr.bf16.gmra.mrb[4].mxu1 %v4892_v22 }
  0x5a   : > { %1284 = vmatprep.mubr.bf16.mxu0 %v4902_v27  ;;  %1477 = vmatprep.mubr.bf16.mxu1 %v4902_v27 }
  0x5b   : > { %1623 = vmatpush1.bf16.msra.mxu0 %v3719_v31  ;;  %1816 = vmatpush1.bf16.msra.mxu1 %v3721_v34  ;;  %v345_v31 = vld [vmem:[%s6343_s1 + $0x298] sm:$0xff]  ;;  %v3775_v34 = vcombine.low %v336_v15, %v340_v16 }
  0x5c   : > { %1624 = vmatprep.subr.bf16.mxu0 %v3728_v35  ;;  %1817 = vmatprep.subr.bf16.mxu1 %v3730_v38  ;;  %v352_v35 = vld [vmem:[%s6343_s1 + $0x2d0] sm:$0xff]  ;;  %v3777_v38 = vcombine.low %v337_v20, %v341_v21  ;;  %v5106_v20 = vld [vmem:[%s4735_s23 + $0x84] ss:$8 sps:$4 sm:$0xff]   ;;  %v385_v21 = vld [vmem:[%s6343_s1 + $0x3d8] sm:$0xff] }
  0x5d   : > { %v5097_v15 = vld [vmem:[%s4735_s23 + $0x70] ss:$8 sps:$4 sm:$0xff]  }
  0x5f   : > { %1625 = vmatpush1.bf16.msra.mxu0 %v3727_v40  ;;  %1818 = vmatpush1.bf16.msra.mxu1 %v3729_v44  ;;  %v3784_v40 = vcombine.high %v344_v25, %v348_v26  ;;  %v3786_v44 = vcombine.high %v345_v31, %v349_v32 }
  0x60   : > { %1626 = vmatprep.subr.bf16.mxu0 %v3736_v45  ;;  %1819 = vmatprep.subr.bf16.mxu1 %v3738_v48  ;;  %v3783_v45 = vcombine.low %v344_v25, %v348_v26  ;;  %v3785_v48 = vcombine.low %v345_v31, %v349_v32  ;;  %v4436_v31 = vld [vmem:[%s6345_s3 + $0x40] sm:$0xff]  }
  0x61   : > { %1285 = vmatmul.mubr.bf16.gmra.mrb[8].mxu0 %v4927_v39  ;;  %1478 = vmatmul.mubr.bf16.gmra.mrb[8].mxu1 %v4927_v39  ;;  %v5122_v32 = vld [vmem:[%s4735_s23 + $0x80] ss:$8 sps:$4 sm:$0xff]  }
  0x62   : > { %1294 = vmatprep.mubr.bf16.mxu0 %v4936_v43  ;;  %1487 = vmatprep.mubr.bf16.mxu1 %v4936_v43 }
  0x63   : > { %1627 = vmatpush1.bf16.msra.mxu0 %v3735_v49  ;;  %1820 = vmatpush1.bf16.msra.mxu1 %v3737_v52  ;;  %v3792_v49 = vcombine.high %v352_v35, %v356_v36  ;;  %v3794_v52 = vcombine.high %v353_v41, %v357_v42 }
  0x64   : > { %1628 = vmatprep.subr.bf16.mxu0 %v3744_v53  ;;  %1821 = vmatprep.subr.bf16.mxu1 %v3746_v54  ;;  %v3791_v53 = vcombine.low %v352_v35, %v356_v36  ;;  %v3793_v54 = vcombine.low %v353_v41, %v357_v42  ;;  %v5128_v35 = vld [vmem:[%s4735_s23 + $0x94] ss:$8 sps:$4 sm:$0xff]   ;;  %v5135_v36 = vld [vmem:[%s4735_s23 + $0x90] ss:$8 sps:$4 sm:$0xff]  }
  0x65   : > { %v5148_v41 = vld [vmem:[%s4735_s23 + $0xb4] ss:$8 sps:$4 sm:$0xff]   ;;  %v5155_v42 = vld [vmem:[%s4735_s23 + $0xb0] ss:$8 sps:$4 sm:$0xff]  }
  0x67   : > { %1629 = vmatpush1.bf16.msra.mxu0 %v3743_v58  ;;  %1822 = vmatpush1.bf16.msra.mxu1 %v3745_v62  ;;  %v3802_v58 = vcombine.high %v361_v50, %v365_v51  ;;  %v5072_v62 = vld [vmem:[%s4735_s23 + $0x74] ss:$8 sps:$4 sm:$0xff]  }
  0x68   : > { %1630 = vmatprep.subr.bf16.mxu0 %v3752_v63  ;;  %1823 = vmatprep.subr.bf16.mxu1 %v3754_v2  ;;  %v369_v63 = vld [vmem:[%s6343_s1 + $0x358] sm:$0xff]  ;;  %v3801_v2 = vcombine.low %v361_v50, %v365_v51 }
  0x69   : > { %1295 = vmatmul.mubr.bf16.gmra.mrb[12].mxu0 %v4961_v57  ;;  %1488 = vmatmul.mubr.bf16.gmra.mrb[12].mxu1 %v4961_v57  ;;  %v3810_v4 = vcombine.high %v369_v63, %v373_v0  ;;  %v5188_v50 = vld [vmem:[%s4735_s23 + $0xf4] ss:$8 sps:$4 sm:$0xff]   ;;  %v5195_v51 = vld [vmem:[%s4735_s23 + $0xf0] ss:$8 sps:$4 sm:$0xff]  }
  0x6a   : > { %1304 = vmatprep.mubr.bf16.mxu0 %v4970_v61  ;;  %1497 = vmatprep.mubr.bf16.mxu1 %v4970_v61 }
  0x6b   : > { %1631 = vmatpush1.bf16.msra.mxu0 %v3751_v3  ;;  %1824 = vmatpush1.bf16.msra.mxu1 %v3753_v7  ;;  %v3808_v3 = vcombine.high %v368_v59, %v372_v60  ;;  %v380_v7 = vld [vmem:[%s6343_s1 + $0x3b0] sm:$0xff]  ;;  %v4441_v59 = vld [vmem:[%s6345_s3 + $0x8] sm:$0xff]  }
  0x6c   : > { %1632 = vmatprep.subr.bf16.mxu0 %v3760_v8  ;;  %1825 = vmatprep.subr.bf16.mxu1 %v3762_v12  ;;  %v377_v8 = vld [vmem:[%s6343_s1 + $0x398] sm:$0xff]  ;;  %v3809_v12 = vcombine.low %v369_v63, %v373_v0  ;;  %v4443_v60 = vld [vmem:[%s6345_s3 + $0x88] sm:$0xff]   ;;  %v4444_v63 = vld [vmem:[%s6345_s3 + $0x50] sm:$0xff]  }
  0x6d   : > { %v3818_v16 = vcombine.high %v377_v8, %v381_v10  ;;  %v3817_v25 = vcombine.low %v377_v8, %v381_v10  ;;  %v4445_v0 = vld [vmem:[%s6345_s3 + $0x10] sm:$0xff]   ;;  %v4456_v8 = vld [vmem:[%s6345_s3 + $0x68] sm:$0xff]  }
  0x6e   : > { %v4458_v10 = vld [vmem:[%s6345_s3 + $0xe8] sm:$0xff]  }
  0x6f   : > { %1633 = vmatpush1.bf16.msra.mxu0 %v3759_v14  ;;  %1826 = vmatpush1.bf16.msra.mxu1 %v3761_v18  ;;  %v3816_v14 = vcombine.high %v376_v5, %v380_v7  ;;  %v384_v18 = vld [vmem:[%s6343_s1 + $0x3d0] sm:$0xff] }
  0x70   : > { %1634 = vmatprep.subr.bf16.mxu0 %v3768_v19  ;;  %1827 = vmatprep.subr.bf16.mxu1 %v3770_v23  ;;  %v388_v19 = vld [vmem:[%s6343_s1 + $0x3f0] sm:$0xff]  ;;  %v389_v23 = vld [vmem:[%s6343_s1 + $0x3f8] sm:$0xff] }
  0x71   : > { %1305 = vmatmul.mubr.bf16.gmra.mrb[16].mxu0 %v4995_v13  ;;  %1498 = vmatmul.mubr.bf16.gmra.mrb[16].mxu1 %v4995_v13  ;;  %v3824_v26 = vcombine.high %v384_v18, %v388_v19 }
  0x72   : > { %1314 = vmatprep.mubr.bf16.mxu0 %v5004_v17  ;;  %1507 = vmatprep.mubr.bf16.mxu1 %v5004_v17 }
  0x73   : > { %1635 = vmatpush1.bf16.msra.mxu0 %v3767_v24  ;;  %1828 = vmatpush1.bf16.msra.mxu1 %v3769_v28  ;;  %v3815_v24 = vcombine.low %v376_v5, %v380_v7  ;;  %v3826_v28 = vcombine.high %v385_v21, %v389_v23  ;;  %v4452_v5 = vld [vmem:[%s6345_s3 + $0x60] sm:$0xff]  }
  0x74   : > { %1636 = vmatprep.subr.bf16.mxu0 %v3776_v29  ;;  %1829 = vmatprep.subr.bf16.mxu1 %v3778_v30  ;;  %v3823_v29 = vcombine.low %v384_v18, %v388_v19  ;;  %v3825_v30 = vcombine.low %v385_v21, %v389_v23  ;;  %v4455_v7 = vld [vmem:[%s6345_s3 + $0xa0] sm:$0xff]   ;;  %v4464_v18 = vld [vmem:[%s6345_s3 + $0x78] sm:$0xff]  }
  0x75   : > { %v4466_v19 = vld [vmem:[%s6345_s3 + $0xf8] sm:$0xff]  }
  0x76   : > { %v4465_v21 = vld [vmem:[%s6345_s3 + $0x38] sm:$0xff]  }
  0x77   : > { %1637 = vmatpush1.bf16.msra.mxu0 %v3775_v34  ;;  %1830 = vmatpush1.bf16.msra.mxu1 %v3777_v38  ;;  %v4438_v34 = vld [vmem:[%s6345_s3 + $0xc0] sm:$0xff]   ;;  %v4467_v23 = vld [vmem:[%s6345_s3 + $0xb8] sm:$0xff]  }
  0x78   : > { %1638 = vmatprep.subr.bf16.mxu0 %v3784_v40  ;;  %1831 = vmatprep.subr.bf16.mxu1 %v3786_v44  ;;  %v5138_v38 = vld [vmem:[%s4735_s23 + $0xa4] ss:$8 sps:$4 sm:$0xff]   ;;  %v5145_v40 = vld [vmem:[%s4735_s23 + $0xa0] ss:$8 sps:$4 sm:$0xff]  }
  0x79   : > { %1315 = vmatmul.mubr.bf16.gmra.mrb[20].mxu0 %v5029_v33  ;;  %1508 = vmatmul.mubr.bf16.gmra.mrb[20].mxu1 %v5029_v33  ;;  %v5158_v44 = vld [vmem:[%s4735_s23 + $0xc4] ss:$8 sps:$4 sm:$0xff]  }
  0x7a   : > { %1324 = vmatprep.mubr.bf16.mxu0 %v5038_v37  ;;  %1517 = vmatprep.mubr.bf16.mxu1 %v5038_v37 }
  0x7b   : > { %1639 = vmatpush1.bf16.msra.mxu0 %v3783_v45  ;;  %1832 = vmatpush1.bf16.msra.mxu1 %v3785_v48  ;;  %v5165_v45 = vld [vmem:[%s4735_s23 + $0xc0] ss:$8 sps:$4 sm:$0xff]   ;;  %v5178_v48 = vld [vmem:[%s4735_s23 + $0xe4] ss:$8 sps:$4 sm:$0xff]  }
  0x7c   : > { %1640 = vmatprep.subr.bf16.mxu0 %v3792_v49  ;;  %1833 = vmatprep.subr.bf16.mxu1 %v3794_v52  ;;  %v5185_v49 = vld [vmem:[%s4735_s23 + $0xe0] ss:$8 sps:$4 sm:$0xff]   ;;  %v4500_v52 = vld [vmem:[%s4735_s23 + $0x4] ss:$8 sps:$4 sm:$0xff]  }
  0x7f   : > { %1641 = vmatpush1.bf16.msra.mxu0 %v3791_v53  ;;  %1834 = vmatpush1.bf16.msra.mxu1 %v3793_v54  ;;  %v4437_v53 = vld [vmem:[%s6345_s3] sm:$0xff]  }
  0x80   : > { %1642 = vmatprep.subr.bf16.mxu0 %v3800_v55  ;;  %1835 = vmatprep.subr.bf16.mxu1 %v3802_v58  ;;  %v4439_v54 = vld [vmem:[%s6345_s3 + $0x80] sm:$0xff]   ;;  %v4440_v55 = vld [vmem:[%s6345_s3 + $0x48] sm:$0xff]  }
  0x81   : > { %1325 = vmatmul.mubr.bf16.gmra.mrb[24].mxu0 %v5063_v56  ;;  %1518 = vmatmul.mubr.bf16.gmra.mrb[24].mxu1 %v5063_v56  ;;  %v4442_v58 = vld [vmem:[%s6345_s3 + $0xc8] sm:$0xff]  }
  0x82   : > { %1334 = vmatprep.mubr.bf16.mxu0 %v5072_v62  ;;  %1527 = vmatprep.mubr.bf16.mxu1 %v5072_v62 }
  0x83   : > { %1643 = vmatpush1.bf16.msra.mxu0 %v3799_v1  ;;  %1836 = vmatpush1.bf16.msra.mxu1 %v3801_v2  ;;  %v4447_v1 = vld [vmem:[%s6345_s3 + $0x90] sm:$0xff]   ;;  %v4450_v2 = vld [vmem:[%s6345_s3 + $0xd8] sm:$0xff]  }
  0x84   : > { %1644 = vmatprep.subr.bf16.mxu0 %v3808_v3  ;;  %1837 = vmatprep.subr.bf16.mxu1 %v3810_v4  ;;  %v4449_v3 = vld [vmem:[%s6345_s3 + $0x18] sm:$0xff]  }
  0x85   : > { %v4451_v4 = vld [vmem:[%s6345_s3 + $0x98] sm:$0xff]  }
  0x87   : > { %1645 = vmatpush1.bf16.msra.mxu0 %v3807_v11  ;;  %1838 = vmatpush1.bf16.msra.mxu1 %v3809_v12  ;;  %v4457_v11 = vld [vmem:[%s6345_s3 + $0x28] sm:$0xff]  }
  0x88   : > { %1646 = vmatprep.subr.bf16.mxu0 %v3816_v14  ;;  %1839 = vmatprep.subr.bf16.mxu1 %v3818_v16  ;;  %v4459_v12 = vld [vmem:[%s6345_s3 + $0xa8] sm:$0xff]   ;;  %v4460_v14 = vld [vmem:[%s6345_s3 + $0x70] sm:$0xff]  }
  0x89   : > { %1335 = vmatmul.mubr.bf16.gmra.mrb[28].mxu0 %v5097_v15  ;;  %1528 = vmatmul.mubr.bf16.gmra.mrb[28].mxu1 %v5097_v15  ;;  %v4463_v16 = vld [vmem:[%s6345_s3 + $0xb0] sm:$0xff]  }
  0x8a   : > { %1344 = vmatprep.mubr.bf16.mxu0 %v5106_v20  ;;  %1537 = vmatprep.mubr.bf16.mxu1 %v5106_v20 }
  0x8b   : > { %1647 = vmatpush1.bf16.msra.mxu0 %v3815_v24  ;;  %1840 = vmatpush1.bf16.msra.mxu1 %v3817_v25  ;;  %v4468_v24 = vld [vmem:[%s6345_s3 + $0x140] sm:$0xff]  }
  0x8c   : > { %1648 = vmatprep.subr.bf16.mxu0 %v3824_v26  ;;  %1841 = vmatprep.subr.bf16.mxu1 %v3826_v28 }
  0x8f   : > { %1649 = vmatpush1.bf16.msra.mxu0 %v3823_v29  ;;  %1842 = vmatpush1.bf16.msra.mxu1 %v3825_v30 }
  0x90   : > { %3899 = vmatprep.subr.bf16.mxu0 %v4436_v31  ;;  %4011 = vmatprep.subr.bf16.mxu1 %v4438_v34 }
  0x91   : > { %1345 = vmatmul.mubr.bf16.gmra.mrb[32].mxu0 %v5122_v32  ;;  %1538 = vmatmul.mubr.bf16.gmra.mrb[32].mxu1 %v5122_v32 }
  0x92   : > { %1354 = vmatprep.mubr.bf16.mxu0 %v5128_v35  ;;  %1547 = vmatprep.mubr.bf16.mxu1 %v5128_v35 }
  0x99   : > { %1355 = vmatmul.mubr.bf16.gmra.mrb[36].mxu0 %v5135_v36  ;;  %1548 = vmatmul.mubr.bf16.gmra.mrb[36].mxu1 %v5135_v36 }
  0x9a   : > { %1364 = vmatprep.mubr.bf16.mxu0 %v5138_v38  ;;  %1557 = vmatprep.mubr.bf16.mxu1 %v5138_v38 }
  0xa1   : > { %1365 = vmatmul.mubr.bf16.gmra.mrb[40].mxu0 %v5145_v40  ;;  %1558 = vmatmul.mubr.bf16.gmra.mrb[40].mxu1 %v5145_v40 }
  0xa2   : > { %1374 = vmatprep.mubr.bf16.mxu0 %v5148_v41  ;;  %1567 = vmatprep.mubr.bf16.mxu1 %v5148_v41 }
  0xa9   : > { %1375 = vmatmul.mubr.bf16.gmra.mrb[44].mxu0 %v5155_v42  ;;  %1568 = vmatmul.mubr.bf16.gmra.mrb[44].mxu1 %v5155_v42 }
  0xaa   : > { %1384 = vmatprep.mubr.bf16.mxu0 %v5158_v44  ;;  %1577 = vmatprep.mubr.bf16.mxu1 %v5158_v44 }
  0xb1   : > { %1385 = vmatmul.mubr.bf16.gmra.mrb[48].mxu0 %v5165_v45  ;;  %1578 = vmatmul.mubr.bf16.gmra.mrb[48].mxu1 %v5165_v45 }
  0xb2   : > { %1394 = vmatprep.mubr.bf16.mxu0 %v5168_v46  ;;  %1587 = vmatprep.mubr.bf16.mxu1 %v5168_v46 }
  0xb9   : > { %1395 = vmatmul.mubr.bf16.gmra.mrb[52].mxu0 %v5175_v47  ;;  %1588 = vmatmul.mubr.bf16.gmra.mrb[52].mxu1 %v5175_v47 }
  0xba   : > { %1404 = vmatprep.mubr.bf16.mxu0 %v5178_v48  ;;  %1597 = vmatprep.mubr.bf16.mxu1 %v5178_v48 }
  0xc1   : > { %1405 = vmatmul.mubr.bf16.gmra.mrb[56].mxu0 %v5185_v49  ;;  %1598 = vmatmul.mubr.bf16.gmra.mrb[56].mxu1 %v5185_v49 }
  0xc2   : > { %1414 = vmatprep.mubr.bf16.mxu0 %v5188_v50  ;;  %1607 = vmatprep.mubr.bf16.mxu1 %v5188_v50 }
  0xc9   : > { %1415 = vmatmul.mubr.bf16.gmra.mrb[60].mxu0 %v5195_v51  ;;  %1608 = vmatmul.mubr.bf16.gmra.mrb[60].mxu1 %v5195_v51 }
  0xca   : > { %1650 = vmatprep.mubr.bf16.mxu0 %v4500_v52  ;;  %1843 = vmatprep.mubr.bf16.mxu1 %v4500_v52 }
  0xd1   : > { %1651 = vmatmul.mubr.bf16.vlgmr.msra.gmra.mrb[64].mxu0 %v4859_v6  ;;  %1844 = vmatmul.mubr.bf16.vlgmr.msra.gmra.mrb[64].mxu1 %v4859_v6  ;;  %v4446_v6 = vld [vmem:[%s6345_s3 + $0xd0] sm:$0xff]  }
  0xd2   : > { %3900 = vmatpush3.bf16.msra.mxu0 %v4437_v53  ;;  %4012 = vmatpush3.bf16.msra.mxu1 %v4439_v54 }
  0xd3   : > { %1660 = vmatprep.mubr.bf16.mxu0 %v4865_v9  ;;  %1853 = vmatprep.mubr.bf16.mxu1 %v4865_v9  ;;  %v4448_v9 = vld [vmem:[%s6345_s3 + $0x58] sm:$0xff]  }
  0xd4   : > { %3901 = vmatprep.subr.bf16.mxu0 %v4440_v55  ;;  %4013 = vmatprep.subr.bf16.mxu1 %v4442_v58 }
  0xd6   : > { %3902 = vmatpush3.bf16.msra.mxu0 %v4441_v59  ;;  %4014 = vmatpush3.bf16.msra.mxu1 %v4443_v60 }
  0xd7   : > { %3903 = vmatprep.subr.bf16.mxu0 %v4444_v63  ;;  %4015 = vmatprep.subr.bf16.mxu1 %v4446_v6 }
  0xd9   : > { %1661 = vmatmul.mubr.bf16.gmra.mrb[68].mxu0 %v4892_v22  ;;  %1854 = vmatmul.mubr.bf16.gmra.mrb[68].mxu1 %v4892_v22  ;;  %v4454_v22 = vld [vmem:[%s6345_s3 + $0xe0] sm:$0xff]  }
  0xda   : > { %1670 = vmatprep.mubr.bf16.mxu0 %v4902_v27  ;;  %1863 = vmatprep.mubr.bf16.mxu1 %v4902_v27  ;;  %v4453_v27 = vld [vmem:[%s6345_s3 + $0x20] sm:$0xff]  }
  0xdb   : > { %3904 = vmatpush3.bf16.msra.mxu0 %v4445_v0  ;;  %4016 = vmatpush3.bf16.msra.mxu1 %v4447_v1 }
  0xdc   : > { %3905 = vmatprep.subr.bf16.mxu0 %v4448_v9  ;;  %4017 = vmatprep.subr.bf16.mxu1 %v4450_v2 }
  0xdf   : > { %3906 = vmatpush3.bf16.msra.mxu0 %v4449_v3  ;;  %4018 = vmatpush3.bf16.msra.mxu1 %v4451_v4 }
  0xe0   : > { %3907 = vmatprep.subr.bf16.mxu0 %v4452_v5  ;;  %4019 = vmatprep.subr.bf16.mxu1 %v4454_v22 }
  0xe1   : > { %1671 = vmatmul.mubr.bf16.gmra.mrb[72].mxu0 %v4927_v39  ;;  %1864 = vmatmul.mubr.bf16.gmra.mrb[72].mxu1 %v4927_v39  ;;  %v4462_v39 = vld [vmem:[%s6345_s3 + $0xf0] sm:$0xff]  }
  0xe2   : > { %1680 = vmatprep.mubr.bf16.mxu0 %v4936_v43  ;;  %1873 = vmatprep.mubr.bf16.mxu1 %v4936_v43  ;;  %v4461_v43 = vld [vmem:[%s6345_s3 + $0x30] sm:$0xff]  }
  0xe3   : > { %3908 = vmatpush3.bf16.msra.mxu0 %v4453_v27  ;;  %4020 = vmatpush3.bf16.msra.mxu1 %v4455_v7 }
  0xe4   : > { %3909 = vmatprep.subr.bf16.mxu0 %v4456_v8  ;;  %4021 = vmatprep.subr.bf16.mxu1 %v4458_v10 }
  0xe7   : > { %3910 = vmatpush3.bf16.msra.mxu0 %v4457_v11  ;;  %4022 = vmatpush3.bf16.msra.mxu1 %v4459_v12 }
  0xe8   : > { %3911 = vmatprep.subr.bf16.mxu0 %v4460_v14  ;;  %4023 = vmatprep.subr.bf16.mxu1 %v4462_v39 }
  0xe9   : > { %1681 = vmatmul.mubr.bf16.gmra.mrb[76].mxu0 %v4961_v57  ;;  %1874 = vmatmul.mubr.bf16.gmra.mrb[76].mxu1 %v4961_v57  ;;  %v4470_v57 = vld [vmem:[%s6345_s3 + $0x1c0] sm:$0xff]  }
  0xea   : > { %1690 = vmatprep.mubr.bf16.mxu0 %v4970_v61  ;;  %1883 = vmatprep.mubr.bf16.mxu1 %v4970_v61  ;;  %v392_v61 = vlaneseq }
  0xeb   : > { %3912 = vmatpush3.bf16.msra.mxu0 %v4461_v43  ;;  %4024 = vmatpush3.bf16.msra.mxu1 %v4463_v16 }
  0xec   : > { %3913 = vmatprep.subr.bf16.mxu0 %v4464_v18  ;;  %4025 = vmatprep.subr.bf16.mxu1 %v4466_v19 }
  0xef   : > { %3914 = vmatpush3.bf16.msra.mxu0 %v4465_v21  ;;  %4026 = vmatpush3.bf16.msra.mxu1 %v4467_v23 }
  0xf0   : > { %4123 = vmatprep.subr.bf16.mxu0 %v4468_v24  ;;  %4235 = vmatprep.subr.bf16.mxu1 %v4470_v57 }
  0xf1   : > { %1691 = vmatmul.mubr.bf16.gmra.mrb[80].mxu0 %v4995_v13  ;;  %1884 = vmatmul.mubr.bf16.gmra.mrb[80].mxu1 %v4995_v13  ;;  %v5333_v13 = vshrl.u32 %v392_v61, 7 }
  0xf2   : > { %1700 = vmatprep.mubr.bf16.mxu0 %v5004_v17  ;;  %1893 = vmatprep.mubr.bf16.mxu1 %v5004_v17 }
  0xf3   : > { %v394_v17 = vsub.s32 0, %v5333_v13 }
  0xf9   : > { %1701 = vmatmul.mubr.bf16.gmra.mrb[84].mxu0 %v5029_v33  ;;  %1894 = vmatmul.mubr.bf16.gmra.mrb[84].mxu1 %v5029_v33  ;;  %v390_v33 = vld [vmem:[%s6344_s2] sm:$0xff] }
  0xfa   : > { %1710 = vmatprep.mubr.bf16.mxu0 %v5038_v37  ;;  %1903 = vmatprep.mubr.bf16.mxu1 %v5038_v37  ;;  %v402_v37 = vsub.s32 2, %v5333_v13 }
 0x101   : > { %1711 = vmatmul.mubr.bf16.gmra.mrb[88].mxu0 %v5063_v56  ;;  %1904 = vmatmul.mubr.bf16.gmra.mrb[88].mxu1 %v5063_v56  ;;  %v398_v56 = vsub.s32 1, %v5333_v13 }
 0x102   : > { %1720 = vmatprep.mubr.bf16.mxu0 %v5072_v62  ;;  %1913 = vmatprep.mubr.bf16.mxu1 %v5072_v62  ;;  %v406_v62 = vsub.s32 3, %v5333_v13 }
 0x103   : > { %v5351_v25 = vrot.slane %v390_v33, %v398_v56 }
 0x104   : > { %v5354_v26 = vrot.slane %v390_v33, %v406_v62 }
 0x109   : > { %1721 = vmatmul.mubr.bf16.gmra.mrb[92].mxu0 %v5097_v15  ;;  %1914 = vmatmul.mubr.bf16.gmra.mrb[92].mxu1 %v5097_v15  ;;  %v5346_v15 = vrot.slane %v390_v33, %v394_v17 }
 0x10a   : > { %1730 = vmatprep.mubr.bf16.mxu0 %v5106_v20  ;;  %1923 = vmatprep.mubr.bf16.mxu1 %v5106_v20  ;;  %v5349_v20 = vrot.slane %v390_v33, %v402_v37 }
 0x111   : > { %1731 = vmatmul.mubr.bf16.gmra.mrb[96].mxu0 %v5122_v32  ;;  %1924 = vmatmul.mubr.bf16.gmra.mrb[96].mxu1 %v5122_v32 }
 0x112   : > { %1740 = vmatprep.mubr.bf16.mxu0 %v5128_v35  ;;  %1933 = vmatprep.mubr.bf16.mxu1 %v5128_v35 }
 0x119   : > { %1741 = vmatmul.mubr.bf16.gmra.mrb[100].mxu0 %v5135_v36  ;;  %1934 = vmatmul.mubr.bf16.gmra.mrb[100].mxu1 %v5135_v36 }
 0x11a   : > { %1750 = vmatprep.mubr.bf16.mxu0 %v5138_v38  ;;  %1943 = vmatprep.mubr.bf16.mxu1 %v5138_v38 }
 0x121   : > { %1751 = vmatmul.mubr.bf16.gmra.mrb[104].mxu0 %v5145_v40  ;;  %1944 = vmatmul.mubr.bf16.gmra.mrb[104].mxu1 %v5145_v40 }
 0x122   : > { %1760 = vmatprep.mubr.bf16.mxu0 %v5148_v41  ;;  %1953 = vmatprep.mubr.bf16.mxu1 %v5148_v41 }
 0x124   : > { %v1266_v28 = vpop.f32.mrb[0].mxu0  ;;  %v1459_v30 = vpop.f32.mrb[0].mxu1 }
 0x125   : > { %v1267_v29 = vadd.f32 %v1266_v28, %v5346_v15  ;;  %v1268_v31 = vpop.f32.mrb[1].mxu0  ;;  %v1460_v32 = vadd.f32 %v1459_v30, %v5349_v20  ;;  %v1461_v35 = vpop.f32.mrb[1].mxu1 }
 0x126   : > { %v1269_v34 = vadd.f32 %v1268_v31, %v5351_v25  ;;  %v1270_v36 = vpop.f32.mrb[2].mxu0  ;;  %v1462_v38 = vadd.f32 %v1461_v35, %v5354_v26  ;;  %v1463_v52 = vpop.f32.mrb[2].mxu1 }
 0x127   : > { %v1271_v40 = vadd.f32 %v1270_v36, %v5346_v15  ;;  %v1272_v53 = vpop.f32.mrb[3].mxu0  ;;  %v2006_v54 = vmax.f32 %v1460_v32, 0.0  ;;  %v1464_v41 = vadd.f32 %v1463_v52, %v5349_v20  ;;  %v1465_v58 = vpop.f32.mrb[3].mxu1  ;;  %v2004_v59 = vmax.f32 %v1267_v29, 0.0 }
 0x128   : > { %v1273_v55 = vadd.f32 %v1272_v53, %v5351_v25  ;;  %v2007_v60 = vmax.f32 %v1462_v38, 0.0  ;;  %v1466_v6 = vadd.f32 %v1465_v58, %v5354_v26  ;;  %v2005_v0 = vmax.f32 %v1269_v34, 0.0 }
 0x129   : > { %v2012_v63 = vmax.f32 %v1271_v40, 0.0  ;;  %1761 = vmatmul.mubr.bf16.gmra.mrb[108].mxu0 %v5155_v42  ;;  %v2014_v1 = vmax.f32 %v1464_v41, 0.0  ;;  %1954 = vmatmul.mubr.bf16.gmra.mrb[108].mxu1 %v5155_v42 }
 0x12a   : > { %v2013_v9 = vmax.f32 %v1273_v55, 0.0  ;;  %1770 = vmatprep.mubr.bf16.mxu0 %v5158_v44  ;;  %v2015_v3 = vmax.f32 %v1466_v6, 0.0  ;;  %1963 = vmatprep.mubr.bf16.mxu1 %v5158_v44 }
 0x12b   : > { %v5368_v2 = vpack.c.bf16 %v2012_v63, %v2004_v59  ;;  %v5371_v4 = vpack.c.bf16 %v2014_v1, %v2006_v54 }
 0x12c   : > { %v5373_v5 = vpack.c.bf16 %v2013_v9, %v2005_v0  ;;  %v1276_v22 = vpop.f32.mrb[4].mxu0  ;;  %v5375_v27 = vpack.c.bf16 %v2015_v3, %v2007_v60  ;;  %v1469_v8 = vpop.f32.mrb[4].mxu1 }
 0x12d   : > { %v1277_v7 = vadd.f32 %v1276_v22, %v5346_v15  ;;  %v1278_v10 = vpop.f32.mrb[5].mxu0  ;;  %v1470_v42 = vadd.f32 %v1469_v8, %v5349_v20  ;;  %v1471_v12 = vpop.f32.mrb[5].mxu1 }
 0x12e   : > { %v1279_v11 = vadd.f32 %v1278_v10, %v5351_v25  ;;  %v1280_v14 = vpop.f32.mrb[6].mxu0  ;;  %v1472_v39 = vadd.f32 %v1471_v12, %v5354_v26  ;;  %v1473_v43 = vpop.f32.mrb[6].mxu1 }
 0x12f   : > { %v1281_v44 = vadd.f32 %v1280_v14, %v5346_v15  ;;  %v1282_v16 = vpop.f32.mrb[7].mxu0  ;;  %v2022_v18 = vmax.f32 %v1470_v42, 0.0  ;;  %v1474_v19 = vadd.f32 %v1473_v43, %v5349_v20  ;;  %v1475_v23 = vpop.f32.mrb[7].mxu1  ;;  %v2020_v24 = vmax.f32 %v1277_v7, 0.0 }
 0x130   : > { %v1283_v21 = vadd.f32 %v1282_v16, %v5351_v25  ;;  %v2023_v57 = vmax.f32 %v1472_v39, 0.0  ;;  %v1476_v17 = vadd.f32 %v1475_v23, %v5354_v26  ;;  %v2021_v33 = vmax.f32 %v1279_v11, 0.0 }
 0x131   : > { %v2028_v61 = vmax.f32 %v1281_v44, 0.0  ;;  %1771 = vmatmul.mubr.bf16.gmra.mrb[112].mxu0 %v5165_v45  ;;  %v2030_v37 = vmax.f32 %v1474_v19, 0.0  ;;  %1964 = vmatmul.mubr.bf16.gmra.mrb[112].mxu1 %v5165_v45 }
 0x132   : > { %v2029_v56 = vmax.f32 %v1283_v21, 0.0  ;;  %1780 = vmatprep.mubr.bf16.mxu0 %v5168_v46  ;;  %v2031_v28 = vmax.f32 %v1476_v17, 0.0  ;;  %1973 = vmatprep.mubr.bf16.mxu1 %v5168_v46 }
 0x133   : > { %v5388_v62 = vpack.c.bf16 %v2028_v61, %v2020_v24  ;;  %v5391_v29 = vpack.c.bf16 %v2030_v37, %v2022_v18 }
 0x134   : > { %v5393_v30 = vpack.c.bf16 %v2029_v56, %v2021_v33  ;;  %v1286_v31 = vpop.f32.mrb[8].mxu0  ;;  %v5395_v32 = vpack.c.bf16 %v2031_v28, %v2023_v57  ;;  %v1479_v35 = vpop.f32.mrb[8].mxu1 }
 0x135   : > { %v1287_v34 = vadd.f32 %v1286_v31, %v5346_v15  ;;  %v1288_v36 = vpop.f32.mrb[9].mxu0  ;;  %v1480_v45 = vadd.f32 %v1479_v35, %v5349_v20  ;;  %v1481_v40 = vpop.f32.mrb[9].mxu1 }
 0x136   : > { %v1289_v38 = vadd.f32 %v1288_v36, %v5351_v25  ;;  %v1290_v52 = vpop.f32.mrb[10].mxu0  ;;  %v1482_v53 = vadd.f32 %v1481_v40, %v5354_v26  ;;  %v1483_v54 = vpop.f32.mrb[10].mxu1 }
 0x137   : > { %v1291_v46 = vadd.f32 %v1290_v52, %v5346_v15  ;;  %v1292_v41 = vpop.f32.mrb[11].mxu0  ;;  %v2038_v55 = vmax.f32 %v1480_v45, 0.0  ;;  %v1484_v58 = vadd.f32 %v1483_v54, %v5349_v20  ;;  %v1485_v60 = vpop.f32.mrb[11].mxu1  ;;  %v2036_v63 = vmax.f32 %v1287_v34, 0.0 }
 0x138   : > { %v1293_v59 = vadd.f32 %v1292_v41, %v5351_v25  ;;  %v2039_v6 = vmax.f32 %v1482_v53, 0.0  ;;  %v1486_v1 = vadd.f32 %v1485_v60, %v5354_v26  ;;  %v2037_v9 = vmax.f32 %v1289_v38, 0.0 }
 0x139   : > { %v2044_v0 = vmax.f32 %v1291_v46, 0.0  ;;  %1781 = vmatmul.mubr.bf16.gmra.mrb[116].mxu0 %v5175_v47  ;;  %v2046_v3 = vmax.f32 %v1484_v58, 0.0  ;;  %1974 = vmatmul.mubr.bf16.gmra.mrb[116].mxu1 %v5175_v47 }
 0x13a   : > { %v2045_v22 = vmax.f32 %v1293_v59, 0.0  ;;  %1790 = vmatprep.mubr.bf16.mxu0 %v5178_v48  ;;  %v2047_v8 = vmax.f32 %v1486_v1, 0.0  ;;  %1983 = vmatprep.mubr.bf16.mxu1 %v5178_v48 }
 0x13b   : > { %v5408_v7 = vpack.c.bf16 %v2044_v0, %v2036_v63  ;;  %v5411_v10 = vpack.c.bf16 %v2046_v3, %v2038_v55 }
 0x13c   : > { %v5413_v42 = vpack.c.bf16 %v2045_v22, %v2037_v9  ;;  %v1296_v11 = vpop.f32.mrb[12].mxu0  ;;  %v5415_v12 = vpack.c.bf16 %v2047_v8, %v2039_v6  ;;  %v1489_v39 = vpop.f32.mrb[12].mxu1 }
 0x13d   : > { %v1297_v14 = vadd.f32 %v1296_v11, %v5346_v15  ;;  %v1298_v44 = vpop.f32.mrb[13].mxu0  ;;  %v1490_v47 = vadd.f32 %v1489_v39, %v5349_v20  ;;  %v1491_v16 = vpop.f32.mrb[13].mxu1 }
 0x13e   : > { %v1299_v43 = vadd.f32 %v1298_v44, %v5351_v25  ;;  %v1300_v18 = vpop.f32.mrb[14].mxu0  ;;  %v1492_v19 = vadd.f32 %v1491_v16, %v5354_v26  ;;  %v1493_v21 = vpop.f32.mrb[14].mxu1 }
 0x13f   : > { %v1301_v48 = vadd.f32 %v1300_v18, %v5346_v15  ;;  %v1302_v23 = vpop.f32.mrb[15].mxu0  ;;  %v2054_v24 = vmax.f32 %v1490_v47, 0.0  ;;  %v1494_v57 = vadd.f32 %v1493_v21, %v5349_v20  ;;  %v1495_v17 = vpop.f32.mrb[15].mxu1  ;;  %v2052_v33 = vmax.f32 %v1297_v14, 0.0 }
 0x140   : > { %v1303_v61 = vadd.f32 %v1302_v23, %v5351_v25  ;;  %v2055_v37 = vmax.f32 %v1492_v19, 0.0  ;;  %v1496_v28 = vadd.f32 %v1495_v17, %v5354_v26  ;;  %v2053_v31 = vmax.f32 %v1299_v43, 0.0 }
 0x141   : > { %v2060_v56 = vmax.f32 %v1301_v48, 0.0  ;;  %1791 = vmatmul.mubr.bf16.gmra.mrb[120].mxu0 %v5185_v49  ;;  %v2062_v34 = vmax.f32 %v1494_v57, 0.0  ;;  %1984 = vmatmul.mubr.bf16.gmra.mrb[120].mxu1 %v5185_v49 }
 0x142   : > { %v2061_v35 = vmax.f32 %v1303_v61, 0.0  ;;  %1800 = vmatprep.mubr.bf16.mxu0 %v5188_v50  ;;  %v2063_v45 = vmax.f32 %v1496_v28, 0.0  ;;  %1993 = vmatprep.mubr.bf16.mxu1 %v5188_v50  ;;  %v4469_v28 = vld [vmem:[%s6345_s3 + $0x100] sm:$0xff]  }
 0x143   : > { %v5428_v36 = vpack.c.bf16 %v2060_v56, %v2052_v33  ;;  %v5431_v38 = vpack.c.bf16 %v2062_v34, %v2054_v24 }
 0x144   : > { %v5433_v40 = vpack.c.bf16 %v2061_v35, %v2053_v31  ;;  %v1306_v52 = vpop.f32.mrb[16].mxu0  ;;  %v5435_v53 = vpack.c.bf16 %v2063_v45, %v2055_v37  ;;  %v1499_v54 = vpop.f32.mrb[16].mxu1 }
 0x145   : > { %v1307_v46 = vadd.f32 %v1306_v52, %v5346_v15  ;;  %v1308_v41 = vpop.f32.mrb[17].mxu0  ;;  %v1500_v49 = vadd.f32 %v1499_v54, %v5349_v20  ;;  %v1501_v58 = vpop.f32.mrb[17].mxu1  ;;  %v4471_v52 = vld [vmem:[%s6345_s3 + $0x180] sm:$0xff]  }
 0x146   : > { %v1309_v55 = vadd.f32 %v1308_v41, %v5351_v25  ;;  %v1310_v59 = vpop.f32.mrb[18].mxu0  ;;  %v1502_v60 = vadd.f32 %v1501_v58, %v5354_v26  ;;  %v1503_v63 = vpop.f32.mrb[18].mxu1  ;;  %v4474_v58 = vld [vmem:[%s6345_s3 + $0x1c8] sm:$0xff]  }
 0x147   : > { %v1311_v50 = vadd.f32 %v1310_v59, %v5346_v15  ;;  %v1312_v6 = vpop.f32.mrb[19].mxu0  ;;  %v2070_v0 = vmax.f32 %v1500_v49, 0.0  ;;  %v1504_v1 = vadd.f32 %v1503_v63, %v5349_v20  ;;  %v1505_v3 = vpop.f32.mrb[19].mxu1  ;;  %v2068_v22 = vmax.f32 %v1307_v46, 0.0  ;;  %v4472_v46 = vld [vmem:[%s6345_s3 + $0x148] sm:$0xff]  }
 0x148   : > { %v1313_v9 = vadd.f32 %v1312_v6, %v5351_v25  ;;  %v2071_v8 = vmax.f32 %v1502_v60, 0.0  ;;  %v1506_v14 = vadd.f32 %v1505_v3, %v5354_v26  ;;  %v2069_v39 = vmax.f32 %v1309_v55, 0.0 }
 0x149   : > { %v2076_v11 = vmax.f32 %v1311_v50, 0.0  ;;  %1801 = vmatmul.mubr.bf16.gmra.mrb[124].mxu0 %v5195_v51  ;;  %v2078_v44 = vmax.f32 %v1504_v1, 0.0  ;;  %1994 = vmatmul.mubr.bf16.gmra.mrb[124].mxu1 %v5195_v51 }
 0x14a   : > { %v2077_v47 = vmax.f32 %v1313_v9, 0.0  ;;  %2939 = vmatprep.mubr.bf16.mxu0 %v5373_v5  ;;  %v2079_v16 = vmax.f32 %v1506_v14, 0.0  ;;  %3100 = vmatprep.mubr.bf16.mxu1 %v5375_v27 }
 0x14b   : > { %v5448_v43 = vpack.c.bf16 %v2076_v11, %v2068_v22  ;;  %v5451_v18 = vpack.c.bf16 %v2078_v44, %v2070_v0  ;;  %v4478_v11 = vld [vmem:[%s6345_s3 + $0x1d0] sm:$0xff]  }
 0x14c   : > { %v5453_v19 = vpack.c.bf16 %v2077_v47, %v2069_v39  ;;  %v1316_v48 = vpop.f32.mrb[20].mxu0  ;;  %v5455_v21 = vpack.c.bf16 %v2079_v16, %v2071_v8  ;;  %v1509_v24 = vpop.f32.mrb[20].mxu1 }
 0x14d   : > { %v1317_v23 = vadd.f32 %v1316_v48, %v5346_v15  ;;  %v1318_v57 = vpop.f32.mrb[21].mxu0  ;;  %v1510_v51 = vadd.f32 %v1509_v24, %v5349_v20  ;;  %v1511_v61 = vpop.f32.mrb[21].mxu1 }
 0x14e   : > { %v1319_v5 = vadd.f32 %v1318_v57, %v5351_v25  ;;  %v1320_v17 = vpop.f32.mrb[22].mxu0  ;;  %v1512_v33 = vadd.f32 %v1511_v61, %v5354_v26  ;;  %v1513_v37 = vpop.f32.mrb[22].mxu1  ;;  %v4477_v57 = vld [vmem:[%s6345_s3 + $0x110] sm:$0xff]  }
 0x14f   : > { %v1321_v27 = vadd.f32 %v1320_v17, %v5346_v15  ;;  %v1322_v56 = vpop.f32.mrb[23].mxu0  ;;  %v2086_v31 = vmax.f32 %v1510_v51, 0.0  ;;  %v1514_v34 = vadd.f32 %v1513_v37, %v5349_v20  ;;  %v1515_v45 = vpop.f32.mrb[23].mxu1  ;;  %v2084_v54 = vmax.f32 %v1317_v23, 0.0 }
 0x150   : > { %v1323_v35 = vadd.f32 %v1322_v56, %v5351_v25  ;;  %v2087_v41 = vmax.f32 %v1512_v33, 0.0  ;;  %v1516_v55 = vadd.f32 %v1515_v45, %v5354_v26  ;;  %v2085_v59 = vmax.f32 %v1319_v5, 0.0  ;;  %v4479_v33 = vld [vmem:[%s6345_s3 + $0x190] sm:$0xff]  }
 0x151   : > { %v2092_v49 = vmax.f32 %v1321_v27, 0.0  ;;  %2940 = vmatmul.mubr.bf16.vlgmr.msra.gmra.mrb[128].mxu0 %v5368_v2  ;;  %v2094_v60 = vmax.f32 %v1514_v34, 0.0  ;;  %3101 = vmatmul.mubr.bf16.vlgmr.msra.gmra.mrb[128].mxu1 %v5371_v4  ;;  %v4473_v2 = vld [vmem:[%s6345_s3 + $0x108] sm:$0xff]   ;;  %v4480_v27 = vld [vmem:[%s6345_s3 + $0x158] sm:$0xff]  }
 0x152   : > { %v2093_v50 = vmax.f32 %v1323_v35, 0.0  ;;  %2947 = vmatprep.mubr.bf16.mxu0 %v5393_v30  ;;  %v2095_v6 = vmax.f32 %v1516_v55, 0.0  ;;  %3108 = vmatprep.mubr.bf16.mxu1 %v5395_v32  ;;  %v4475_v4 = vld [vmem:[%s6345_s3 + $0x188] sm:$0xff]   ;;  %v4476_v30 = vld [vmem:[%s6345_s3 + $0x150] sm:$0xff]   ;;  %v4482_v34 = vld [vmem:[%s6345_s3 + $0x1d8] sm:$0xff]  }
 0x153   : > { %v5480_v63 = vpack.c.bf16 %v2092_v49, %v2084_v54  ;;  %4124 = vmatpush3.bf16.msra.mxu0 %v4469_v28  ;;  %v5486_v0 = vpack.c.bf16 %v2094_v60, %v2086_v31  ;;  %4236 = vmatpush3.bf16.msra.mxu1 %v4471_v52 }
 0x154   : > { %v5488_v1 = vpack.c.bf16 %v2093_v50, %v2085_v59  ;;  %v1326_v9 = vpop.f32.mrb[24].mxu0  ;;  %4125 = vmatprep.subr.bf16.mxu0 %v4472_v46  ;;  %v5496_v32 = vpack.c.bf16 %v2095_v6, %v2087_v41  ;;  %v1519_v22 = vpop.f32.mrb[24].mxu1  ;;  %4237 = vmatprep.subr.bf16.mxu1 %v4474_v58  ;;  %v4486_v50 = vld [vmem:[%s6345_s3 + $0x1e0] sm:$0xff]  }
 0x155   : > { %v1327_v3 = vadd.f32 %v1326_v9, %v5346_v15  ;;  %v1328_v8 = vpop.f32.mrb[25].mxu0  ;;  %v1520_v14 = vadd.f32 %v1519_v22, %v5349_v20  ;;  %v1521_v44 = vpop.f32.mrb[25].mxu1 }
 0x156   : > { %v1329_v39 = vadd.f32 %v1328_v8, %v5351_v25  ;;  %v1330_v47 = vpop.f32.mrb[26].mxu0  ;;  %v1522_v16 = vadd.f32 %v1521_v44, %v5354_v26  ;;  %v1523_v23 = vpop.f32.mrb[26].mxu1 }
 0x157   : > { %v1331_v48 = vadd.f32 %v1330_v47, %v5346_v15  ;;  %v1332_v24 = vpop.f32.mrb[27].mxu0  ;;  %4126 = vmatpush3.bf16.msra.mxu0 %v4473_v2  ;;  %v2102_v51 = vmax.f32 %v1520_v14, 0.0  ;;  %v1524_v5 = vadd.f32 %v1523_v23, %v5349_v20  ;;  %v1525_v17 = vpop.f32.mrb[27].mxu1  ;;  %4238 = vmatpush3.bf16.msra.mxu1 %v4475_v4  ;;  %v2100_v37 = vmax.f32 %v1327_v3, 0.0 }
 0x158   : > { %v1333_v61 = vadd.f32 %v1332_v24, %v5351_v25  ;;  %4127 = vmatprep.subr.bf16.mxu0 %v4476_v30  ;;  %v2103_v56 = vmax.f32 %v1522_v16, 0.0  ;;  %v1526_v31 = vadd.f32 %v1525_v17, %v5354_v26  ;;  %4239 = vmatprep.subr.bf16.mxu1 %v4478_v11  ;;  %v2101_v35 = vmax.f32 %v1329_v39, 0.0  ;;  %v4485_v11 = vld [vmem:[%s6345_s3 + $0x120] sm:$0xff]  }
 0x159   : > { %v2108_v28 = vmax.f32 %v1331_v48, 0.0  ;;  %2948 = vmatmul.mubr.bf16.gmra.mrb[132].mxu0 %v5388_v62  ;;  %v2110_v45 = vmax.f32 %v1524_v5, 0.0  ;;  %3109 = vmatmul.mubr.bf16.gmra.mrb[132].mxu1 %v5391_v29  ;;  %v4481_v62 = vld [vmem:[%s6345_s3 + $0x118] sm:$0xff]   ;;  %v4487_v16 = vld [vmem:[%s6345_s3 + $0x1a0] sm:$0xff]   ;;  %v4488_v48 = vld [vmem:[%s6345_s3 + $0x168] sm:$0xff]  }
 0x15a   : > { %v2109_v52 = vmax.f32 %v1333_v61, 0.0  ;;  %2955 = vmatprep.mubr.bf16.mxu0 %v5413_v42  ;;  %v2111_v54 = vmax.f32 %v1526_v31, 0.0  ;;  %3116 = vmatprep.mubr.bf16.mxu1 %v5415_v12  ;;  %v4483_v29 = vld [vmem:[%s6345_s3 + $0x198] sm:$0xff]   ;;  %v4484_v42 = vld [vmem:[%s6345_s3 + $0x160] sm:$0xff]   ;;  %v4490_v5 = vld [vmem:[%s6345_s3 + $0x1e8] sm:$0xff]  }
 0x15b   : > { %v5524_v46 = vpack.c.bf16 %v2108_v28, %v2100_v37  ;;  %4128 = vmatpush3.bf16.msra.mxu0 %v4477_v57  ;;  %v5530_v41 = vpack.c.bf16 %v2110_v45, %v2102_v51  ;;  %4240 = vmatpush3.bf16.msra.mxu1 %v4479_v33 }
 0x15c   : > { %v5532_v49 = vpack.c.bf16 %v2109_v52, %v2101_v35  ;;  %v1336_v55 = vpop.f32.mrb[28].mxu0  ;;  %4129 = vmatprep.subr.bf16.mxu0 %v4480_v27  ;;  %v5540_v12 = vpack.c.bf16 %v2111_v54, %v2103_v56  ;;  %v1529_v59 = vpop.f32.mrb[28].mxu1  ;;  %4241 = vmatprep.subr.bf16.mxu1 %v4482_v34  ;;  %v4494_v52 = vld [vmem:[%s6345_s3 + $0x1f0] sm:$0xff]  }
 0x15d   : > { %v1337_v58 = vadd.f32 %v1336_v55, %v5346_v15  ;;  %v1338_v60 = vpop.f32.mrb[29].mxu0  ;;  %v1530_v6 = vadd.f32 %v1529_v59, %v5349_v20  ;;  %v1531_v9 = vpop.f32.mrb[29].mxu1 }
 0x15e   : > { %v1339_v2 = vadd.f32 %v1338_v60, %v5351_v25  ;;  %v1340_v4 = vpop.f32.mrb[30].mxu0  ;;  %v1532_v30 = vadd.f32 %v1531_v9, %v5354_v26  ;;  %v1533_v22 = vpop.f32.mrb[30].mxu1 }
 0x15f   : > { %v1341_v3 = vadd.f32 %v1340_v4, %v5346_v15  ;;  %v1342_v8 = vpop.f32.mrb[31].mxu0  ;;  %4130 = vmatpush3.bf16.msra.mxu0 %v4481_v62  ;;  %v2118_v14 = vmax.f32 %v1530_v6, 0.0  ;;  %v1534_v39 = vadd.f32 %v1533_v22, %v5349_v20  ;;  %v1535_v47 = vpop.f32.mrb[31].mxu1  ;;  %4242 = vmatpush3.bf16.msra.mxu1 %v4483_v29  ;;  %v2116_v23 = vmax.f32 %v1337_v58, 0.0 }
 0x160   : > { %v1343_v44 = vadd.f32 %v1342_v8, %v5351_v25  ;;  %4131 = vmatprep.subr.bf16.mxu0 %v4484_v42  ;;  %v2119_v24 = vmax.f32 %v1532_v30, 0.0  ;;  %v1536_v51 = vadd.f32 %v1535_v47, %v5354_v26  ;;  %4243 = vmatprep.subr.bf16.mxu1 %v4486_v50  ;;  %v2117_v61 = vmax.f32 %v1339_v2, 0.0  ;;  %v4493_v50 = vld [vmem:[%s6345_s3 + $0x130] sm:$0xff]  }
 0x161   : > { %v2124_v57 = vmax.f32 %v1341_v3, 0.0  ;;  %2956 = vmatmul.mubr.bf16.gmra.mrb[136].mxu0 %v5408_v7  ;;  %v2126_v17 = vmax.f32 %v1534_v39, 0.0  ;;  %3117 = vmatmul.mubr.bf16.gmra.mrb[136].mxu1 %v5411_v10  ;;  %v4489_v7 = vld [vmem:[%s6345_s3 + $0x128] sm:$0xff]   ;;  %v4495_v30 = vld [vmem:[%s6345_s3 + $0x1b0] sm:$0xff]   ;;  %v4496_v3 = vld [vmem:[%s6345_s3 + $0x178] sm:$0xff]  }
 0x162   : > { %v2125_v33 = vmax.f32 %v1343_v44, 0.0  ;;  %2963 = vmatprep.mubr.bf16.mxu0 %v5433_v40  ;;  %v2127_v37 = vmax.f32 %v1536_v51, 0.0  ;;  %3124 = vmatprep.mubr.bf16.mxu1 %v5435_v53  ;;  %v4491_v10 = vld [vmem:[%s6345_s3 + $0x1a8] sm:$0xff]   ;;  %v4492_v40 = vld [vmem:[%s6345_s3 + $0x170] sm:$0xff]   ;;  %v4498_v39 = vld [vmem:[%s6345_s3 + $0x1f8] sm:$0xff]  }
 0x163   : > { %v5568_v27 = vpack.c.bf16 %v2124_v57, %v2116_v23  ;;  %4132 = vmatpush3.bf16.msra.mxu0 %v4485_v11  ;;  %v5574_v56 = vpack.c.bf16 %v2126_v17, %v2118_v14  ;;  %4244 = vmatpush3.bf16.msra.mxu1 %v4487_v16 }
 0x164   : > { %v5576_v28 = vpack.c.bf16 %v2125_v33, %v2117_v61  ;;  %v1346_v31 = vpop.f32.mrb[32].mxu0  ;;  %4133 = vmatprep.subr.bf16.mxu0 %v4488_v48  ;;  %v5584_v53 = vpack.c.bf16 %v2127_v37, %v2119_v24  ;;  %v1539_v35 = vpop.f32.mrb[32].mxu1  ;;  %4245 = vmatprep.subr.bf16.mxu1 %v4490_v5 }
 0x165   : > { %v1347_v34 = vadd.f32 %v1346_v31, %v5346_v15  ;;  %v1348_v45 = vpop.f32.mrb[33].mxu0  ;;  %v1540_v54 = vadd.f32 %v1539_v35, %v5349_v20  ;;  %v1541_v55 = vpop.f32.mrb[33].mxu1 }
 0x166   : > { %v1349_v62 = vadd.f32 %v1348_v45, %v5351_v25  ;;  %v1350_v29 = vpop.f32.mrb[34].mxu0  ;;  %v1542_v42 = vadd.f32 %v1541_v55, %v5354_v26  ;;  %v1543_v59 = vpop.f32.mrb[34].mxu1 }
 0x167   : > { %v1351_v58 = vadd.f32 %v1350_v29, %v5346_v15  ;;  %v1352_v60 = vpop.f32.mrb[35].mxu0  ;;  %4134 = vmatpush3.bf16.msra.mxu0 %v4489_v7  ;;  %v2134_v6 = vmax.f32 %v1540_v54, 0.0  ;;  %v1544_v2 = vadd.f32 %v1543_v59, %v5349_v20  ;;  %v1545_v4 = vpop.f32.mrb[35].mxu1  ;;  %4246 = vmatpush3.bf16.msra.mxu1 %v4491_v10  ;;  %v2132_v22 = vmax.f32 %v1347_v34, 0.0 }
 0x168   : > { %v1353_v9 = vadd.f32 %v1352_v60, %v5351_v25  ;;  %4135 = vmatprep.subr.bf16.mxu0 %v4492_v40  ;;  %v2135_v8 = vmax.f32 %v1542_v42, 0.0  ;;  %v1546_v14 = vadd.f32 %v1545_v4, %v5354_v26  ;;  %4247 = vmatprep.subr.bf16.mxu1 %v4494_v52  ;;  %v2133_v44 = vmax.f32 %v1349_v62, 0.0 }
 0x169   : > { %v2140_v11 = vmax.f32 %v1351_v58, 0.0  ;;  %2964 = vmatmul.mubr.bf16.gmra.mrb[140].mxu0 %v5428_v36  ;;  %v2142_v47 = vmax.f32 %v1544_v2, 0.0  ;;  %3125 = vmatmul.mubr.bf16.gmra.mrb[140].mxu1 %v5431_v38  ;;  %v4497_v36 = vld [vmem:[%s6345_s3 + $0x138] sm:$0xff]  }
 0x16a   : > { %v2141_v16 = vmax.f32 %v1353_v9, 0.0  ;;  %2971 = vmatprep.mubr.bf16.mxu0 %v5453_v19  ;;  %v2143_v23 = vmax.f32 %v1546_v14, 0.0  ;;  %3132 = vmatprep.mubr.bf16.mxu1 %v5455_v21  ;;  %v4499_v38 = vld [vmem:[%s6345_s3 + $0x1b8] sm:$0xff]  }
 0x16b   : > { %v5612_v48 = vpack.c.bf16 %v2140_v11, %v2132_v22  ;;  %4136 = vmatpush3.bf16.msra.mxu0 %v4493_v50  ;;  %v5618_v24 = vpack.c.bf16 %v2142_v47, %v2134_v6  ;;  %4248 = vmatpush3.bf16.msra.mxu1 %v4495_v30 }
 0x16c   : > { %v5620_v57 = vpack.c.bf16 %v2141_v16, %v2133_v44  ;;  %v1356_v51 = vpop.f32.mrb[36].mxu0  ;;  %4137 = vmatprep.subr.bf16.mxu0 %v4496_v3  ;;  %v5625_v19 = vpack.c.bf16 %v2143_v23, %v2135_v8  ;;  %v1549_v5 = vpop.f32.mrb[36].mxu1  ;;  %4249 = vmatprep.subr.bf16.mxu1 %v4498_v39 }
 0x16d   : > { %v1357_v21 = vadd.f32 %v1356_v51, %v5346_v15  ;;  %v1358_v61 = vpop.f32.mrb[37].mxu0  ;;  %v1550_v17 = vadd.f32 %v1549_v5, %v5349_v20  ;;  %v1551_v37 = vpop.f32.mrb[37].mxu1 }
 0x16e   : > { %v1359_v33 = vadd.f32 %v1358_v61, %v5351_v25  ;;  %v1360_v7 = vpop.f32.mrb[38].mxu0  ;;  %v1552_v31 = vadd.f32 %v1551_v37, %v5354_v26  ;;  %v1553_v40 = vpop.f32.mrb[38].mxu1 }
 0x16f   : > { %v1361_v10 = vadd.f32 %v1360_v7, %v5346_v15  ;;  %v1362_v34 = vpop.f32.mrb[39].mxu0  ;;  %4138 = vmatpush3.bf16.msra.mxu0 %v4497_v36  ;;  %v2150_v35 = vmax.f32 %v1550_v17, 0.0  ;;  %v1554_v45 = vadd.f32 %v1553_v40, %v5349_v20  ;;  %v1555_v54 = vpop.f32.mrb[39].mxu1  ;;  %4250 = vmatpush3.bf16.msra.mxu1 %v4499_v38  ;;  %v2148_v62 = vmax.f32 %v1357_v21, 0.0 }
 0x170   : > { %v1363_v52 = vadd.f32 %v1362_v34, %v5351_v25  ;;  %v2151_v55 = vmax.f32 %v1552_v31, 0.0  ;;  %v1556_v42 = vadd.f32 %v1555_v54, %v5354_v26  ;;  %v2149_v58 = vmax.f32 %v1359_v33, 0.0 }
 0x171   : > { %v2156_v29 = vmax.f32 %v1361_v10, 0.0  ;;  %2972 = vmatmul.mubr.bf16.gmra.mrb[144].mxu0 %v5448_v43  ;;  %v2158_v59 = vmax.f32 %v1554_v45, 0.0  ;;  %3133 = vmatmul.mubr.bf16.gmra.mrb[144].mxu1 %v5451_v18 }
 0x172   : > { %v2157_v60 = vmax.f32 %v1363_v52, 0.0  ;;  %2979 = vmatprep.mubr.bf16.mxu0 %v5488_v1  ;;  %v2159_v6 = vmax.f32 %v1556_v42, 0.0  ;;  %3140 = vmatprep.mubr.bf16.mxu1 %v5496_v32 }
 0x173   : > { %v5638_v50 = vpack.c.bf16 %v2156_v29, %v2148_v62  ;;  %v5641_v2 = vpack.c.bf16 %v2158_v59, %v2150_v35 }
 0x174   : > { %v5643_v9 = vpack.c.bf16 %v2157_v60, %v2149_v58  ;;  %v1366_v4 = vpop.f32.mrb[40].mxu0  ;;  %v5645_v30 = vpack.c.bf16 %v2159_v6, %v2151_v55  ;;  %v1559_v3 = vpop.f32.mrb[40].mxu1 }
 0x175   : > { %v1367_v43 = vadd.f32 %v1366_v4, %v5346_v15  ;;  %v1368_v22 = vpop.f32.mrb[41].mxu0  ;;  %v1560_v18 = vadd.f32 %v1559_v3, %v5349_v20  ;;  %v1561_v8 = vpop.f32.mrb[41].mxu1 }
 0x176   : > { %v1369_v1 = vadd.f32 %v1368_v22, %v5351_v25  ;;  %v1370_v11 = vpop.f32.mrb[42].mxu0  ;;  %v1562_v14 = vadd.f32 %v1561_v8, %v5354_v26  ;;  %v1563_v39 = vpop.f32.mrb[42].mxu1 }
 0x177   : > { %v1371_v32 = vadd.f32 %v1370_v11, %v5346_v15  ;;  %v1372_v44 = vpop.f32.mrb[43].mxu0  ;;  %v2166_v47 = vmax.f32 %v1560_v18, 0.0  ;;  %v1564_v16 = vadd.f32 %v1563_v39, %v5349_v20  ;;  %v1565_v36 = vpop.f32.mrb[43].mxu1  ;;  %v2164_v51 = vmax.f32 %v1367_v43, 0.0 }
 0x178   : > { %v1373_v23 = vadd.f32 %v1372_v44, %v5351_v25  ;;  %v2167_v38 = vmax.f32 %v1562_v14, 0.0  ;;  %v1566_v5 = vadd.f32 %v1565_v36, %v5354_v26  ;;  %v2165_v61 = vmax.f32 %v1369_v1, 0.0 }
 0x179   : > { %v2172_v21 = vmax.f32 %v1371_v32, 0.0  ;;  %2980 = vmatmul.mubr.bf16.gmra.mrb[148].mxu0 %v5480_v63  ;;  %v2174_v17 = vmax.f32 %v1564_v16, 0.0  ;;  %3141 = vmatmul.mubr.bf16.gmra.mrb[148].mxu1 %v5486_v0 }
 0x17a   : > { %v2173_v33 = vmax.f32 %v1373_v23, 0.0  ;;  %2987 = vmatprep.mubr.bf16.mxu0 %v5532_v49  ;;  %v2175_v7 = vmax.f32 %v1566_v5, 0.0  ;;  %3148 = vmatprep.mubr.bf16.mxu1 %v5540_v12 }
 0x17b   : > { %v5658_v37 = vpack.c.bf16 %v2172_v21, %v2164_v51  ;;  %v5661_v31 = vpack.c.bf16 %v2174_v17, %v2166_v47 }
 0x17c   : > { %v5663_v10 = vpack.c.bf16 %v2173_v33, %v2165_v61  ;;  %v1376_v40 = vpop.f32.mrb[44].mxu0  ;;  %v5665_v34 = vpack.c.bf16 %v2175_v7, %v2167_v38  ;;  %v1569_v35 = vpop.f32.mrb[44].mxu1 }
 0x17d   : > { %v1377_v63 = vadd.f32 %v1376_v40, %v5346_v15  ;;  %v1378_v45 = vpop.f32.mrb[45].mxu0  ;;  %v1570_v0 = vadd.f32 %v1569_v35, %v5349_v20  ;;  %v1571_v52 = vpop.f32.mrb[45].mxu1 }
 0x17e   : > { %v1379_v49 = vadd.f32 %v1378_v45, %v5351_v25  ;;  %v1380_v54 = vpop.f32.mrb[46].mxu0  ;;  %v1572_v62 = vadd.f32 %v1571_v52, %v5354_v26  ;;  %v1573_v55 = vpop.f32.mrb[46].mxu1 }
 0x17f   : > { %v1381_v12 = vadd.f32 %v1380_v54, %v5346_v15  ;;  %v1382_v29 = vpop.f32.mrb[47].mxu0  ;;  %v2182_v42 = vmax.f32 %v1570_v0, 0.0  ;;  %v1574_v58 = vadd.f32 %v1573_v55, %v5349_v20  ;;  %v1575_v60 = vpop.f32.mrb[47].mxu1  ;;  %v2180_v6 = vmax.f32 %v1377_v63, 0.0 }
 0x180   : > { %v1383_v59 = vadd.f32 %v1382_v29, %v5351_v25  ;;  %v2183_v4 = vmax.f32 %v1572_v62, 0.0  ;;  %v1576_v3 = vadd.f32 %v1575_v60, %v5354_v26  ;;  %v2181_v22 = vmax.f32 %v1379_v49, 0.0 }
 0x181   : > { %v2188_v43 = vmax.f32 %v1381_v12, 0.0  ;;  %2988 = vmatmul.mubr.bf16.gmra.mrb[152].mxu0 %v5524_v46  ;;  %v2190_v18 = vmax.f32 %v1574_v58, 0.0  ;;  %3149 = vmatmul.mubr.bf16.gmra.mrb[152].mxu1 %v5530_v41 }
 0x182   : > { %v2189_v1 = vmax.f32 %v1383_v59, 0.0  ;;  %2995 = vmatprep.mubr.bf16.mxu0 %v5576_v28  ;;  %v2191_v11 = vmax.f32 %v1576_v3, 0.0  ;;  %3156 = vmatprep.mubr.bf16.mxu1 %v5584_v53 }
 0x183   : > { %v5678_v8 = vpack.c.bf16 %v2188_v43, %v2180_v6  ;;  %v5681_v14 = vpack.c.bf16 %v2190_v18, %v2182_v42 }
 0x184   : > { %v5683_v32 = vpack.c.bf16 %v2189_v1, %v2181_v22  ;;  %v1386_v39 = vpop.f32.mrb[48].mxu0  ;;  %v5685_v44 = vpack.c.bf16 %v2191_v11, %v2183_v4  ;;  %v1579_v47 = vpop.f32.mrb[48].mxu1 }
 0x185   : > { %v1387_v46 = vadd.f32 %v1386_v39, %v5346_v15  ;;  %v1388_v16 = vpop.f32.mrb[49].mxu0  ;;  %v1580_v41 = vadd.f32 %v1579_v47, %v5349_v20  ;;  %v1581_v23 = vpop.f32.mrb[49].mxu1 }
 0x186   : > { %v1389_v28 = vadd.f32 %v1388_v16, %v5351_v25  ;;  %v1390_v36 = vpop.f32.mrb[50].mxu0  ;;  %v1582_v51 = vadd.f32 %v1581_v23, %v5354_v26  ;;  %v1583_v38 = vpop.f32.mrb[50].mxu1 }
 0x187   : > { %v1391_v53 = vadd.f32 %v1390_v36, %v5346_v15  ;;  %v1392_v21 = vpop.f32.mrb[51].mxu0  ;;  %v2198_v5 = vmax.f32 %v1580_v41, 0.0  ;;  %v1584_v61 = vadd.f32 %v1583_v38, %v5349_v20  ;;  %v1585_v33 = vpop.f32.mrb[51].mxu1  ;;  %v2196_v7 = vmax.f32 %v1387_v46, 0.0 }
 0x188   : > { %v1393_v17 = vadd.f32 %v1392_v21, %v5351_v25  ;;  %v2199_v40 = vmax.f32 %v1582_v51, 0.0  ;;  %v1586_v35 = vadd.f32 %v1585_v33, %v5354_v26  ;;  %v2197_v45 = vmax.f32 %v1389_v28, 0.0 }
 0x189   : > { %v2204_v63 = vmax.f32 %v1391_v53, 0.0  ;;  %2996 = vmatmul.mubr.bf16.gmra.mrb[156].mxu0 %v5568_v27  ;;  %v2206_v0 = vmax.f32 %v1584_v61, 0.0  ;;  %3157 = vmatmul.mubr.bf16.gmra.mrb[156].mxu1 %v5574_v56 }
 0x18a   : > { %v2205_v49 = vmax.f32 %v1393_v17, 0.0  ;;  %3003 = vmatprep.mubr.bf16.mxu0 %v5620_v57  ;;  %v2207_v54 = vmax.f32 %v1586_v35, 0.0  ;;  %3164 = vmatprep.mubr.bf16.mxu1 %v5625_v19 }
 0x18b   : > { %v5698_v52 = vpack.c.bf16 %v2204_v63, %v2196_v7  ;;  %v5701_v62 = vpack.c.bf16 %v2206_v0, %v2198_v5 }
 0x18c   : > { %v5703_v12 = vpack.c.bf16 %v2205_v49, %v2197_v45  ;;  %v1396_v55 = vpop.f32.mrb[52].mxu0  ;;  %v5705_v29 = vpack.c.bf16 %v2207_v54, %v2199_v40  ;;  %v1589_v42 = vpop.f32.mrb[52].mxu1 }
 0x18d   : > { %v1397_v27 = vadd.f32 %v1396_v55, %v5346_v15  ;;  %v1398_v58 = vpop.f32.mrb[53].mxu0  ;;  %v1590_v56 = vadd.f32 %v1589_v42, %v5349_v20  ;;  %v1591_v59 = vpop.f32.mrb[53].mxu1 }
 0x18e   : > { %v1399_v57 = vadd.f32 %v1398_v58, %v5351_v25  ;;  %v1400_v60 = vpop.f32.mrb[54].mxu0  ;;  %v1592_v6 = vadd.f32 %v1591_v59, %v5354_v26  ;;  %v1593_v4 = vpop.f32.mrb[54].mxu1 }
 0x18f   : > { %v1401_v19 = vadd.f32 %v1400_v60, %v5346_v15  ;;  %v1402_v43 = vpop.f32.mrb[55].mxu0  ;;  %v2214_v3 = vmax.f32 %v1590_v56, 0.0  ;;  %v1594_v22 = vadd.f32 %v1593_v4, %v5349_v20  ;;  %v1595_v1 = vpop.f32.mrb[55].mxu1  ;;  %v2212_v11 = vmax.f32 %v1397_v27, 0.0 }
 0x190   : > { %v1403_v18 = vadd.f32 %v1402_v43, %v5351_v25  ;;  %v2215_v39 = vmax.f32 %v1592_v6, 0.0  ;;  %v1596_v47 = vadd.f32 %v1595_v1, %v5354_v26  ;;  %v2213_v16 = vmax.f32 %v1399_v57, 0.0 }
 0x191   : > { %v2220_v46 = vmax.f32 %v1401_v19, 0.0  ;;  %3004 = vmatmul.mubr.bf16.gmra.mrb[160].mxu0 %v5612_v48  ;;  %v2222_v41 = vmax.f32 %v1594_v22, 0.0  ;;  %3165 = vmatmul.mubr.bf16.gmra.mrb[160].mxu1 %v5618_v24  ;;  %v410_v6 = vsub.s32 4, %v5333_v13 }
 0x192   : > { %v2221_v28 = vmax.f32 %v1403_v18, 0.0  ;;  %3011 = vmatprep.mubr.bf16.mxu0 %v5643_v9  ;;  %v2223_v36 = vmax.f32 %v1596_v47, 0.0  ;;  %3172 = vmatprep.mubr.bf16.mxu1 %v5645_v30 }
 0x193   : > { %v5718_v23 = vpack.c.bf16 %v2220_v46, %v2212_v11  ;;  %v5721_v51 = vpack.c.bf16 %v2222_v41, %v2214_v3 }
 0x194   : > { %v5723_v53 = vpack.c.bf16 %v2221_v28, %v2213_v16  ;;  %v1406_v38 = vpop.f32.mrb[56].mxu0  ;;  %v5725_v21 = vpack.c.bf16 %v2223_v36, %v2215_v39  ;;  %v1599_v5 = vpop.f32.mrb[56].mxu1  ;;  %v418_v39 = vsub.s32 6, %v5333_v13  ;;  %v4501_v28 = vld [vmem:[%s6344_s2] sm:$0xff] }
 0x195   : > { %v1407_v48 = vadd.f32 %v1406_v38, %v5346_v15  ;;  %v1408_v61 = vpop.f32.mrb[57].mxu0  ;;  %v1600_v24 = vadd.f32 %v1599_v5, %v5349_v20  ;;  %v1601_v17 = vpop.f32.mrb[57].mxu1  ;;  %v5758_v36 = vrot.slane %v4501_v28, %v410_v6  ;;  %v422_v38 = vsub.s32 7, %v5333_v13 }
 0x196   : > { %v1409_v9 = vadd.f32 %v1408_v61, %v5351_v25  ;;  %v1410_v33 = vpop.f32.mrb[58].mxu0  ;;  %v1602_v7 = vadd.f32 %v1601_v17, %v5354_v26  ;;  %v1603_v40 = vpop.f32.mrb[58].mxu1 }
 0x197   : > { %v1411_v30 = vadd.f32 %v1410_v33, %v5346_v15  ;;  %v1412_v63 = vpop.f32.mrb[59].mxu0  ;;  %v2230_v35 = vmax.f32 %v1600_v24, 0.0  ;;  %v1604_v45 = vadd.f32 %v1603_v40, %v5349_v20  ;;  %v1605_v49 = vpop.f32.mrb[59].mxu1  ;;  %v2228_v54 = vmax.f32 %v1407_v48, 0.0 }
 0x198   : > { %v1413_v0 = vadd.f32 %v1412_v63, %v5351_v25  ;;  %v2231_v55 = vmax.f32 %v1602_v7, 0.0  ;;  %v1606_v42 = vadd.f32 %v1605_v49, %v5354_v26  ;;  %v2229_v58 = vmax.f32 %v1409_v9, 0.0 }
 0x199   : > { %v2236_v27 = vmax.f32 %v1411_v30, 0.0  ;;  %3012 = vmatmul.mubr.bf16.gmra.mrb[164].mxu0 %v5638_v50  ;;  %v2238_v56 = vmax.f32 %v1604_v45, 0.0  ;;  %3173 = vmatmul.mubr.bf16.gmra.mrb[164].mxu1 %v5641_v2  ;;  %v414_v50 = vsub.s32 5, %v5333_v13  ;;  %v5769_v13 = vrot.slane %v4501_v28, %v418_v39 }
 0x19a   : > { %v2237_v57 = vmax.f32 %v1413_v0, 0.0  ;;  %3019 = vmatprep.mubr.bf16.mxu0 %v5663_v10  ;;  %v2239_v60 = vmax.f32 %v1606_v42, 0.0  ;;  %3180 = vmatprep.mubr.bf16.mxu1 %v5665_v34 }
 0x19b   : > { %v5738_v59 = vpack.c.bf16 %v2236_v27, %v2228_v54  ;;  %v5742_v19 = vpack.c.bf16 %v2238_v56, %v2230_v35  ;;  %v5763_v9 = vrot.slane %v4501_v28, %v414_v50  ;;  %v5774_v35 = vrot.slane %v4501_v28, %v422_v38 }
 0x19c   : > { %v5744_v4 = vpack.c.bf16 %v2237_v57, %v2229_v58  ;;  %v1416_v43 = vpop.f32.mrb[60].mxu0  ;;  %v5747_v3 = vpack.c.bf16 %v2239_v60, %v2231_v55  ;;  %v1609_v22 = vpop.f32.mrb[60].mxu1 }
 0x19d   : > { %v1417_v2 = vadd.f32 %v1416_v43, %v5346_v15  ;;  %v1418_v10 = vpop.f32.mrb[61].mxu0  ;;  %v1610_v18 = vadd.f32 %v1609_v22, %v5349_v20  ;;  %v1611_v34 = vpop.f32.mrb[61].mxu1 }
 0x19e   : > { %v1419_v1 = vadd.f32 %v1418_v10, %v5351_v25  ;;  %v1420_v11 = vpop.f32.mrb[62].mxu0  ;;  %v1612_v46 = vadd.f32 %v1611_v34, %v5354_v26  ;;  %v1613_v16 = vpop.f32.mrb[62].mxu1 }
 0x19f   : > { %v1421_v47 = vadd.f32 %v1420_v11, %v5346_v15  ;;  %v1422_v41 = vpop.f32.mrb[63].mxu0  ;;  %v2246_v48 = vmax.f32 %v1610_v18, 0.0  ;;  %v1614_v5 = vadd.f32 %v1613_v16, %v5349_v20  ;;  %v1615_v24 = vpop.f32.mrb[63].mxu1  ;;  %v2244_v17 = vmax.f32 %v1417_v2, 0.0 }
 0x1a0   : > { %v1423_v61 = vadd.f32 %v1422_v41, %v5351_v25  ;;  %v2247_v15 = vmax.f32 %v1612_v46, 0.0  ;;  %v1616_v7 = vadd.f32 %v1615_v24, %v5354_v26  ;;  %v2245_v30 = vmax.f32 %v1419_v1, 0.0 }
 0x1a1   : > { %v2252_v33 = vmax.f32 %v1421_v47, 0.0  ;;  %3020 = vmatmul.mubr.bf16.gmra.mrb[168].mxu0 %v5658_v37  ;;  %v2254_v40 = vmax.f32 %v1614_v5, 0.0  ;;  %3181 = vmatmul.mubr.bf16.gmra.mrb[168].mxu1 %v5661_v31 }
 0x1a2   : > { %v2253_v63 = vmax.f32 %v1423_v61, 0.0  ;;  %3027 = vmatprep.mubr.bf16.mxu0 %v5683_v32  ;;  %v2255_v25 = vmax.f32 %v1616_v7, 0.0  ;;  %3188 = vmatprep.mubr.bf16.mxu1 %v5685_v44 }
 0x1a3   : > { %v5771_v20 = vpack.c.bf16 %v2252_v33, %v2244_v17  ;;  %v5776_v45 = vpack.c.bf16 %v2254_v40, %v2246_v48 }
 0x1a4   : > { %v5778_v26 = vpack.c.bf16 %v2253_v63, %v2245_v30  ;;  %v1652_v37 = vpop.f32.mrb[64].mxu0  ;;  %v5780_v0 = vpack.c.bf16 %v2255_v25, %v2247_v15  ;;  %v1845_v49 = vpop.f32.mrb[64].mxu1 }
 0x1a5   : > { %v1653_v31 = vadd.f32 %v1652_v37, %v5758_v36  ;;  %v1654_v32 = vpop.f32.mrb[65].mxu0  ;;  %v1846_v54 = vadd.f32 %v1845_v49, %v5769_v13  ;;  %v1847_v27 = vpop.f32.mrb[65].mxu1 }
 0x1a6   : > { %v1655_v55 = vadd.f32 %v1654_v32, %v5763_v9  ;;  %v1656_v42 = vpop.f32.mrb[66].mxu0  ;;  %v1848_v44 = vadd.f32 %v1847_v27, %v5774_v35  ;;  %v1849_v56 = vpop.f32.mrb[66].mxu1 }
 0x1a7   : > { %v1657_v58 = vadd.f32 %v1656_v42, %v5758_v36  ;;  %v1658_v57 = vpop.f32.mrb[67].mxu0  ;;  %v2010_v60 = vmax.f32 %v1846_v54, 0.0  ;;  %v1850_v6 = vadd.f32 %v1849_v56, %v5769_v13  ;;  %v1851_v50 = vpop.f32.mrb[67].mxu1  ;;  %v2008_v2 = vmax.f32 %v1653_v31, 0.0 }
 0x1a8   : > { %v1659_v43 = vadd.f32 %v1658_v57, %v5763_v9  ;;  %v2011_v22 = vmax.f32 %v1848_v44, 0.0  ;;  %v1852_v18 = vadd.f32 %v1851_v50, %v5774_v35  ;;  %v2009_v1 = vmax.f32 %v1655_v55, 0.0 }
 0x1a9   : > { %v2016_v10 = vmax.f32 %v1657_v58, 0.0  ;;  %3028 = vmatmul.mubr.bf16.gmra.mrb[172].mxu0 %v5678_v8  ;;  %v2018_v34 = vmax.f32 %v1850_v6, 0.0  ;;  %3189 = vmatmul.mubr.bf16.gmra.mrb[172].mxu1 %v5681_v14 }
 0x1aa   : > { %v2017_v11 = vmax.f32 %v1659_v43, 0.0  ;;  %3035 = vmatprep.mubr.bf16.mxu0 %v5703_v12  ;;  %v2019_v46 = vmax.f32 %v1852_v18, 0.0  ;;  %3196 = vmatprep.mubr.bf16.mxu1 %v5705_v29 }
 0x1ab   : > { %v5793_v39 = vpack.c.bf16 %v2016_v10, %v2008_v2  ;;  %v5796_v47 = vpack.c.bf16 %v2018_v34, %v2010_v60 }
 0x1ac   : > { %v5798_v16 = vpack.c.bf16 %v2017_v11, %v2009_v1  ;;  %v1662_v41 = vpop.f32.mrb[68].mxu0  ;;  %v5800_v28 = vpack.c.bf16 %v2019_v46, %v2011_v22  ;;  %v1855_v38 = vpop.f32.mrb[68].mxu1 }
 0x1ad   : > { %v1663_v8 = vadd.f32 %v1662_v41, %v5758_v36  ;;  %v1664_v48 = vpop.f32.mrb[69].mxu0  ;;  %v1856_v14 = vadd.f32 %v1855_v38, %v5769_v13  ;;  %v1857_v5 = vpop.f32.mrb[69].mxu1 }
 0x1ae   : > { %v1665_v12 = vadd.f32 %v1664_v48, %v5763_v9  ;;  %v1666_v61 = vpop.f32.mrb[70].mxu0  ;;  %v1858_v24 = vadd.f32 %v1857_v5, %v5774_v35  ;;  %v1859_v17 = vpop.f32.mrb[70].mxu1 }
 0x1af   : > { %v1667_v29 = vadd.f32 %v1666_v61, %v5758_v36  ;;  %v1668_v15 = vpop.f32.mrb[71].mxu0  ;;  %v2026_v33 = vmax.f32 %v1856_v14, 0.0  ;;  %v1860_v7 = vadd.f32 %v1859_v17, %v5769_v13  ;;  %v1861_v40 = vpop.f32.mrb[71].mxu1  ;;  %v2024_v63 = vmax.f32 %v1663_v8, 0.0 }
 0x1b0   : > { %v1669_v30 = vadd.f32 %v1668_v15, %v5763_v9  ;;  %v2027_v25 = vmax.f32 %v1858_v24, 0.0  ;;  %v1862_v31 = vadd.f32 %v1861_v40, %v5774_v35  ;;  %v2025_v49 = vmax.f32 %v1665_v12, 0.0 }
 0x1b1   : > { %v2032_v37 = vmax.f32 %v1667_v29, 0.0  ;;  %3036 = vmatmul.mubr.bf16.gmra.mrb[176].mxu0 %v5698_v52  ;;  %v2034_v32 = vmax.f32 %v1860_v7, 0.0  ;;  %3197 = vmatmul.mubr.bf16.gmra.mrb[176].mxu1 %v5701_v62 }
 0x1b2   : > { %v2033_v54 = vmax.f32 %v1669_v30, 0.0  ;;  %3043 = vmatprep.mubr.bf16.mxu0 %v5723_v53  ;;  %v2035_v27 = vmax.f32 %v1862_v31, 0.0  ;;  %3204 = vmatprep.mubr.bf16.mxu1 %v5725_v21 }
 0x1b3   : > { %v5813_v55 = vpack.c.bf16 %v2032_v37, %v2024_v63  ;;  %v5816_v42 = vpack.c.bf16 %v2034_v32, %v2026_v33 }
 0x1b4   : > { %v5818_v44 = vpack.c.bf16 %v2033_v54, %v2025_v49  ;;  %v1672_v58 = vpop.f32.mrb[72].mxu0  ;;  %v5820_v56 = vpack.c.bf16 %v2035_v27, %v2027_v25  ;;  %v1865_v57 = vpop.f32.mrb[72].mxu1 }
 0x1b5   : > { %v1673_v52 = vadd.f32 %v1672_v58, %v5758_v36  ;;  %v1674_v60 = vpop.f32.mrb[73].mxu0  ;;  %v1866_v62 = vadd.f32 %v1865_v57, %v5769_v13  ;;  %v1867_v6 = vpop.f32.mrb[73].mxu1 }
 0x1b6   : > { %v1675_v53 = vadd.f32 %v1674_v60, %v5763_v9  ;;  %v1676_v43 = vpop.f32.mrb[74].mxu0  ;;  %v1868_v50 = vadd.f32 %v1867_v6, %v5774_v35  ;;  %v1869_v2 = vpop.f32.mrb[74].mxu1 }
 0x1b7   : > { %v1677_v21 = vadd.f32 %v1676_v43, %v5758_v36  ;;  %v1678_v22 = vpop.f32.mrb[75].mxu0  ;;  %v2042_v10 = vmax.f32 %v1866_v62, 0.0  ;;  %v1870_v18 = vadd.f32 %v1869_v2, %v5769_v13  ;;  %v1871_v34 = vpop.f32.mrb[75].mxu1  ;;  %v2040_v11 = vmax.f32 %v1673_v52, 0.0 }
 0x1b8   : > { %v1679_v1 = vadd.f32 %v1678_v22, %v5763_v9  ;;  %v2043_v46 = vmax.f32 %v1868_v50, 0.0  ;;  %v1872_v8 = vadd.f32 %v1871_v34, %v5774_v35  ;;  %v2041_v38 = vmax.f32 %v1675_v53, 0.0 }
 0x1b9   : > { %v2048_v41 = vmax.f32 %v1677_v21, 0.0  ;;  %3044 = vmatmul.mubr.bf16.gmra.mrb[180].mxu0 %v5718_v23  ;;  %v2050_v48 = vmax.f32 %v1870_v18, 0.0  ;;  %3205 = vmatmul.mubr.bf16.gmra.mrb[180].mxu1 %v5721_v51 }
 0x1ba   : > { %v2049_v14 = vmax.f32 %v1679_v1, 0.0  ;;  %3051 = vmatprep.mubr.bf16.mxu0 %v5744_v4  ;;  %v2051_v5 = vmax.f32 %v1872_v8, 0.0  ;;  %3212 = vmatprep.mubr.bf16.mxu1 %v5747_v3 }
 0x1bb   : > { %v5833_v12 = vpack.c.bf16 %v2048_v41, %v2040_v11  ;;  %v5836_v61 = vpack.c.bf16 %v2050_v48, %v2042_v10 }
 0x1bc   : > { %v5838_v24 = vpack.c.bf16 %v2049_v14, %v2041_v38  ;;  %v1682_v29 = vpop.f32.mrb[76].mxu0  ;;  %v5840_v17 = vpack.c.bf16 %v2051_v5, %v2043_v46  ;;  %v1875_v15 = vpop.f32.mrb[76].mxu1 }
 0x1bd   : > { %v1683_v23 = vadd.f32 %v1682_v29, %v5758_v36  ;;  %v1684_v33 = vpop.f32.mrb[77].mxu0  ;;  %v1876_v51 = vadd.f32 %v1875_v15, %v5769_v13  ;;  %v1877_v7 = vpop.f32.mrb[77].mxu1 }
 0x1be   : > { %v1685_v4 = vadd.f32 %v1684_v33, %v5763_v9  ;;  %v1686_v30 = vpop.f32.mrb[78].mxu0  ;;  %v1878_v40 = vadd.f32 %v1877_v7, %v5774_v35  ;;  %v1879_v63 = vpop.f32.mrb[78].mxu1 }
 0x1bf   : > { %v1687_v3 = vadd.f32 %v1686_v30, %v5758_v36  ;;  %v1688_v25 = vpop.f32.mrb[79].mxu0  ;;  %v2058_v37 = vmax.f32 %v1876_v51, 0.0  ;;  %v1880_v31 = vadd.f32 %v1879_v63, %v5769_v13  ;;  %v1881_v32 = vpop.f32.mrb[79].mxu1  ;;  %v2056_v54 = vmax.f32 %v1683_v23, 0.0 }
 0x1c0   : > { %v1689_v49 = vadd.f32 %v1688_v25, %v5763_v9  ;;  %v2059_v27 = vmax.f32 %v1878_v40, 0.0  ;;  %v1882_v52 = vadd.f32 %v1881_v32, %v5774_v35  ;;  %v2057_v57 = vmax.f32 %v1685_v4, 0.0 }
 0x1c1   : > { %v2064_v58 = vmax.f32 %v1687_v3, 0.0  ;;  %3052 = vmatmul.mubr.bf16.gmra.mrb[184].mxu0 %v5738_v59  ;;  %v2066_v60 = vmax.f32 %v1880_v31, 0.0  ;;  %3213 = vmatmul.mubr.bf16.gmra.mrb[184].mxu1 %v5742_v19 }
 0x1c2   : > { %v2065_v62 = vmax.f32 %v1689_v49, 0.0  ;;  %3059 = vmatprep.mubr.bf16.mxu0 %v5778_v26  ;;  %v2067_v6 = vmax.f32 %v1882_v52, 0.0  ;;  %3220 = vmatprep.mubr.bf16.mxu1 %v5780_v0 }
 0x1c3   : > { %v5853_v53 = vpack.c.bf16 %v2064_v58, %v2056_v54  ;;  %v5856_v43 = vpack.c.bf16 %v2066_v60, %v2058_v37 }
 0x1c4   : > { %v5858_v50 = vpack.c.bf16 %v2065_v62, %v2057_v57  ;;  %v1692_v21 = vpop.f32.mrb[80].mxu0  ;;  %v5860_v2 = vpack.c.bf16 %v2067_v6, %v2059_v27  ;;  %v1885_v22 = vpop.f32.mrb[80].mxu1 }
 0x1c5   : > { %v1693_v59 = vadd.f32 %v1692_v21, %v5758_v36  ;;  %v1694_v10 = vpop.f32.mrb[81].mxu0  ;;  %v1886_v19 = vadd.f32 %v1885_v22, %v5769_v13  ;;  %v1887_v18 = vpop.f32.mrb[81].mxu1 }
 0x1c6   : > { %v1695_v26 = vadd.f32 %v1694_v10, %v5763_v9  ;;  %v1696_v1 = vpop.f32.mrb[82].mxu0  ;;  %v1888_v34 = vadd.f32 %v1887_v18, %v5774_v35  ;;  %v1889_v11 = vpop.f32.mrb[82].mxu1 }
 0x1c7   : > { %v1697_v0 = vadd.f32 %v1696_v1, %v5758_v36  ;;  %v1698_v46 = vpop.f32.mrb[83].mxu0  ;;  %v2074_v41 = vmax.f32 %v1886_v19, 0.0  ;;  %v1890_v8 = vadd.f32 %v1889_v11, %v5769_v13  ;;  %v1891_v48 = vpop.f32.mrb[83].mxu1  ;;  %v2072_v14 = vmax.f32 %v1693_v59, 0.0 }
 0x1c8   : > { %v1699_v38 = vadd.f32 %v1698_v46, %v5763_v9  ;;  %v2075_v5 = vmax.f32 %v1888_v34, 0.0  ;;  %v1892_v23 = vadd.f32 %v1891_v48, %v5774_v35  ;;  %v2073_v15 = vmax.f32 %v1695_v26, 0.0 }
 0x1c9   : > { %v2080_v29 = vmax.f32 %v1697_v0, 0.0  ;;  %3060 = vmatmul.mubr.bf16.gmra.mrb[188].mxu0 %v5771_v20  ;;  %v2082_v33 = vmax.f32 %v1890_v8, 0.0  ;;  %3221 = vmatmul.mubr.bf16.gmra.mrb[188].mxu1 %v5776_v45 }
 0x1ca   : > { %v2081_v51 = vmax.f32 %v1699_v38, 0.0  ;;  %3261 = vmatprep.mubr.bf16.mxu0 %v5798_v16  ;;  %v2083_v7 = vmax.f32 %v1892_v23, 0.0  ;;  %3422 = vmatprep.mubr.bf16.mxu1 %v5800_v28 }
 0x1cb   : > { %v5873_v4 = vpack.c.bf16 %v2080_v29, %v2072_v14  ;;  %v5876_v30 = vpack.c.bf16 %v2082_v33, %v2074_v41 }
 0x1cc   : > { %v5878_v40 = vpack.c.bf16 %v2081_v51, %v2073_v15  ;;  %v1702_v3 = vpop.f32.mrb[84].mxu0  ;;  %v5880_v63 = vpack.c.bf16 %v2083_v7, %v2075_v5  ;;  %v1895_v25 = vpop.f32.mrb[84].mxu1 }
 0x1cd   : > { %v1703_v20 = vadd.f32 %v1702_v3, %v5758_v36  ;;  %v1704_v37 = vpop.f32.mrb[85].mxu0  ;;  %v1896_v45 = vadd.f32 %v1895_v25, %v5769_v13  ;;  %v1897_v31 = vpop.f32.mrb[85].mxu1 }
 0x1ce   : > { %v1705_v16 = vadd.f32 %v1704_v37, %v5763_v9  ;;  %v1706_v49 = vpop.f32.mrb[86].mxu0  ;;  %v1898_v32 = vadd.f32 %v1897_v31, %v5774_v35  ;;  %v1899_v54 = vpop.f32.mrb[86].mxu1 }
 0x1cf   : > { %v1707_v28 = vadd.f32 %v1706_v49, %v5758_v36  ;;  %v1708_v27 = vpop.f32.mrb[87].mxu0  ;;  %v2090_v58 = vmax.f32 %v1896_v45, 0.0  ;;  %v1900_v52 = vadd.f32 %v1899_v54, %v5769_v13  ;;  %v1901_v60 = vpop.f32.mrb[87].mxu1  ;;  %v2088_v62 = vmax.f32 %v1703_v20, 0.0 }
 0x1d0   : > { %v1709_v57 = vadd.f32 %v1708_v27, %v5763_v9  ;;  %v2091_v6 = vmax.f32 %v1898_v32, 0.0  ;;  %v1902_v59 = vadd.f32 %v1901_v60, %v5774_v35  ;;  %v2089_v22 = vmax.f32 %v1705_v16, 0.0 }
 0x1d1   : > { %v2096_v21 = vmax.f32 %v1707_v28, 0.0  ;;  %3262 = vmatmul.mubr.bf16.vlgmr.msra.gmra.mrb[192].mxu0 %v5793_v39  ;;  %v2098_v10 = vmax.f32 %v1900_v52, 0.0  ;;  %3423 = vmatmul.mubr.bf16.vlgmr.msra.gmra.mrb[192].mxu1 %v5796_v47 }
 0x1d2   : > { %v2097_v19 = vmax.f32 %v1709_v57, 0.0  ;;  %3269 = vmatprep.mubr.bf16.mxu0 %v5818_v44  ;;  %v2099_v18 = vmax.f32 %v1902_v59, 0.0  ;;  %3430 = vmatprep.mubr.bf16.mxu1 %v5820_v56 }
 0x1d3   : > { %v5893_v26 = vpack.c.bf16 %v2096_v21, %v2088_v62  ;;  %v5896_v1 = vpack.c.bf16 %v2098_v10, %v2090_v58 }
 0x1d4   : > { %v5898_v34 = vpack.c.bf16 %v2097_v19, %v2089_v22  ;;  %v1712_v0 = vpop.f32.mrb[88].mxu0  ;;  %v5900_v11 = vpack.c.bf16 %v2099_v18, %v2091_v6  ;;  %v1905_v46 = vpop.f32.mrb[88].mxu1 }
 0x1d5   : > { %v1713_v39 = vadd.f32 %v1712_v0, %v5758_v36  ;;  %v1714_v41 = vpop.f32.mrb[89].mxu0  ;;  %v1906_v47 = vadd.f32 %v1905_v46, %v5769_v13  ;;  %v1907_v8 = vpop.f32.mrb[89].mxu1 }
 0x1d6   : > { %v1715_v44 = vadd.f32 %v1714_v41, %v5763_v9  ;;  %v1716_v38 = vpop.f32.mrb[90].mxu0  ;;  %v1908_v48 = vadd.f32 %v1907_v8, %v5774_v35  ;;  %v1909_v14 = vpop.f32.mrb[90].mxu1 }
 0x1d7   : > { %v1717_v56 = vadd.f32 %v1716_v38, %v5758_v36  ;;  %v1718_v5 = vpop.f32.mrb[91].mxu0  ;;  %v2106_v29 = vmax.f32 %v1906_v47, 0.0  ;;  %v1910_v23 = vadd.f32 %v1909_v14, %v5769_v13  ;;  %v1911_v33 = vpop.f32.mrb[91].mxu1  ;;  %v2104_v51 = vmax.f32 %v1713_v39, 0.0 }
 0x1d8   : > { %v1719_v15 = vadd.f32 %v1718_v5, %v5763_v9  ;;  %v2107_v7 = vmax.f32 %v1908_v48, 0.0  ;;  %v1912_v20 = vadd.f32 %v1911_v33, %v5774_v35  ;;  %v2105_v25 = vmax.f32 %v1715_v44, 0.0 }
 0x1d9   : > { %v2112_v3 = vmax.f32 %v1717_v56, 0.0  ;;  %3270 = vmatmul.mubr.bf16.gmra.mrb[196].mxu0 %v5813_v55  ;;  %v2114_v37 = vmax.f32 %v1910_v23, 0.0  ;;  %3431 = vmatmul.mubr.bf16.gmra.mrb[196].mxu1 %v5816_v42 }
 0x1da   : > { %v2113_v45 = vmax.f32 %v1719_v15, 0.0  ;;  %3277 = vmatprep.mubr.bf16.mxu0 %v5838_v24  ;;  %v2115_v31 = vmax.f32 %v1912_v20, 0.0  ;;  %3438 = vmatprep.mubr.bf16.mxu1 %v5840_v17 }
 0x1db   : > { %v5913_v16 = vpack.c.bf16 %v2112_v3, %v2104_v51  ;;  %v5916_v49 = vpack.c.bf16 %v2114_v37, %v2106_v29 }
 0x1dc   : > { %v5918_v32 = vpack.c.bf16 %v2113_v45, %v2105_v25  ;;  %v1722_v28 = vpop.f32.mrb[92].mxu0  ;;  %v5920_v54 = vpack.c.bf16 %v2115_v31, %v2107_v7  ;;  %v1915_v27 = vpop.f32.mrb[92].mxu1 }
 0x1dd   : > { %v1723_v55 = vadd.f32 %v1722_v28, %v5758_v36  ;;  %v1724_v58 = vpop.f32.mrb[93].mxu0  ;;  %v1916_v42 = vadd.f32 %v1915_v27, %v5769_v13  ;;  %v1917_v52 = vpop.f32.mrb[93].mxu1 }
 0x1de   : > { %v1725_v24 = vadd.f32 %v1724_v58, %v5763_v9  ;;  %v1726_v57 = vpop.f32.mrb[94].mxu0  ;;  %v1918_v60 = vadd.f32 %v1917_v52, %v5774_v35  ;;  %v1919_v62 = vpop.f32.mrb[94].mxu1 }
 0x1df   : > { %v1727_v17 = vadd.f32 %v1726_v57, %v5758_v36  ;;  %v1728_v6 = vpop.f32.mrb[95].mxu0  ;;  %v2122_v21 = vmax.f32 %v1916_v42, 0.0  ;;  %v1920_v59 = vadd.f32 %v1919_v62, %v5769_v13  ;;  %v1921_v10 = vpop.f32.mrb[95].mxu1  ;;  %v2120_v19 = vmax.f32 %v1723_v55, 0.0 }
 0x1e0   : > { %v1729_v22 = vadd.f32 %v1728_v6, %v5763_v9  ;;  %v2123_v18 = vmax.f32 %v1918_v60, 0.0  ;;  %v1922_v39 = vadd.f32 %v1921_v10, %v5774_v35  ;;  %v2121_v46 = vmax.f32 %v1725_v24, 0.0 }
 0x1e1   : > { %v2128_v0 = vmax.f32 %v1727_v17, 0.0  ;;  %3278 = vmatmul.mubr.bf16.gmra.mrb[200].mxu0 %v5833_v12  ;;  %v2130_v41 = vmax.f32 %v1920_v59, 0.0  ;;  %3439 = vmatmul.mubr.bf16.gmra.mrb[200].mxu1 %v5836_v61 }
 0x1e2   : > { %v2129_v47 = vmax.f32 %v1729_v22, 0.0  ;;  %3285 = vmatprep.mubr.bf16.mxu0 %v5858_v50  ;;  %v2131_v8 = vmax.f32 %v1922_v39, 0.0  ;;  %3446 = vmatprep.mubr.bf16.mxu1 %v5860_v2 }
 0x1e3   : > { %v5933_v44 = vpack.c.bf16 %v2128_v0, %v2120_v19  ;;  %v5936_v38 = vpack.c.bf16 %v2130_v41, %v2122_v21 }
 0x1e4   : > { %v5938_v48 = vpack.c.bf16 %v2129_v47, %v2121_v46  ;;  %v1732_v56 = vpop.f32.mrb[96].mxu0  ;;  %v5940_v14 = vpack.c.bf16 %v2131_v8, %v2123_v18  ;;  %v1925_v5 = vpop.f32.mrb[96].mxu1 }
 0x1e5   : > { %v1733_v12 = vadd.f32 %v1732_v56, %v5758_v36  ;;  %v1734_v29 = vpop.f32.mrb[97].mxu0  ;;  %v1926_v61 = vadd.f32 %v1925_v5, %v5769_v13  ;;  %v1927_v23 = vpop.f32.mrb[97].mxu1 }
 0x1e6   : > { %v1735_v50 = vadd.f32 %v1734_v29, %v5763_v9  ;;  %v1736_v15 = vpop.f32.mrb[98].mxu0  ;;  %v1928_v33 = vadd.f32 %v1927_v23, %v5774_v35  ;;  %v1929_v51 = vpop.f32.mrb[98].mxu1 }
 0x1e7   : > { %v1737_v2 = vadd.f32 %v1736_v15, %v5758_v36  ;;  %v1738_v7 = vpop.f32.mrb[99].mxu0  ;;  %v2138_v3 = vmax.f32 %v1926_v61, 0.0  ;;  %v1930_v20 = vadd.f32 %v1929_v51, %v5769_v13  ;;  %v1931_v37 = vpop.f32.mrb[99].mxu1  ;;  %v2136_v45 = vmax.f32 %v1733_v12, 0.0 }
 0x1e8   : > { %v1739_v25 = vadd.f32 %v1738_v7, %v5763_v9  ;;  %v2139_v31 = vmax.f32 %v1928_v33, 0.0  ;;  %v1932_v55 = vadd.f32 %v1931_v37, %v5774_v35  ;;  %v2137_v27 = vmax.f32 %v1735_v50, 0.0 }
 0x1e9   : > { %v2144_v28 = vmax.f32 %v1737_v2, 0.0  ;;  %3286 = vmatmul.mubr.bf16.gmra.mrb[204].mxu0 %v5853_v53  ;;  %v2146_v58 = vmax.f32 %v1930_v20, 0.0  ;;  %3447 = vmatmul.mubr.bf16.gmra.mrb[204].mxu1 %v5856_v43 }
 0x1ea   : > { %v2145_v42 = vmax.f32 %v1739_v25, 0.0  ;;  %3293 = vmatprep.mubr.bf16.mxu0 %v5878_v40  ;;  %v2147_v52 = vmax.f32 %v1932_v55, 0.0  ;;  %3454 = vmatprep.mubr.bf16.mxu1 %v5880_v63 }
 0x1eb   : > { %v5953_v24 = vpack.c.bf16 %v2144_v28, %v2136_v45  ;;  %v5956_v57 = vpack.c.bf16 %v2146_v58, %v2138_v3 }
 0x1ec   : > { %v5958_v60 = vpack.c.bf16 %v2145_v42, %v2137_v27  ;;  %v1742_v17 = vpop.f32.mrb[100].mxu0  ;;  %v5960_v62 = vpack.c.bf16 %v2147_v52, %v2139_v31  ;;  %v1935_v6 = vpop.f32.mrb[100].mxu1 }
 0x1ed   : > { %v1743_v53 = vadd.f32 %v1742_v17, %v5758_v36  ;;  %v1744_v21 = vpop.f32.mrb[101].mxu0  ;;  %v1936_v43 = vadd.f32 %v1935_v6, %v5769_v13  ;;  %v1937_v59 = vpop.f32.mrb[101].mxu1 }
 0x1ee   : > { %v1745_v40 = vadd.f32 %v1744_v21, %v5763_v9  ;;  %v1746_v22 = vpop.f32.mrb[102].mxu0  ;;  %v1938_v10 = vadd.f32 %v1937_v59, %v5774_v35  ;;  %v1939_v19 = vpop.f32.mrb[102].mxu1 }
 0x1ef   : > { %v1747_v63 = vadd.f32 %v1746_v22, %v5758_v36  ;;  %v1748_v18 = vpop.f32.mrb[103].mxu0  ;;  %v2154_v0 = vmax.f32 %v1936_v43, 0.0  ;;  %v1940_v39 = vadd.f32 %v1939_v19, %v5769_v13  ;;  %v1941_v41 = vpop.f32.mrb[103].mxu1  ;;  %v2152_v47 = vmax.f32 %v1743_v53, 0.0 }
 0x1f0   : > { %v1749_v46 = vadd.f32 %v1748_v18, %v5763_v9  ;;  %v2155_v8 = vmax.f32 %v1938_v10, 0.0  ;;  %v1942_v12 = vadd.f32 %v1941_v41, %v5774_v35  ;;  %v2153_v5 = vmax.f32 %v1745_v40, 0.0 }
 0x1f1   : > { %v2160_v56 = vmax.f32 %v1747_v63, 0.0  ;;  %3294 = vmatmul.mubr.bf16.gmra.mrb[208].mxu0 %v5873_v4  ;;  %v2162_v29 = vmax.f32 %v1940_v39, 0.0  ;;  %3455 = vmatmul.mubr.bf16.gmra.mrb[208].mxu1 %v5876_v30 }
 0x1f2   : > { %v2161_v61 = vmax.f32 %v1749_v46, 0.0  ;;  %3301 = vmatprep.mubr.bf16.mxu0 %v5898_v34  ;;  %v2163_v23 = vmax.f32 %v1942_v12, 0.0  ;;  %3462 = vmatprep.mubr.bf16.mxu1 %v5900_v11 }
 0x1f3   : > { %v5973_v50 = vpack.c.bf16 %v2160_v56, %v2152_v47  ;;  %v5976_v15 = vpack.c.bf16 %v2162_v29, %v2154_v0 }
 0x1f4   : > { %v5978_v33 = vpack.c.bf16 %v2161_v61, %v2153_v5  ;;  %v1752_v2 = vpop.f32.mrb[104].mxu0  ;;  %v5980_v51 = vpack.c.bf16 %v2163_v23, %v2155_v8  ;;  %v1945_v7 = vpop.f32.mrb[104].mxu1 }
 0x1f5   : > { %v1753_v4 = vadd.f32 %v1752_v2, %v5758_v36  ;;  %v1754_v3 = vpop.f32.mrb[105].mxu0  ;;  %v1946_v30 = vadd.f32 %v1945_v7, %v5769_v13  ;;  %v1947_v20 = vpop.f32.mrb[105].mxu1 }
 0x1f6   : > { %v1755_v34 = vadd.f32 %v1754_v3, %v5763_v9  ;;  %v1756_v25 = vpop.f32.mrb[106].mxu0  ;;  %v1948_v37 = vadd.f32 %v1947_v20, %v5774_v35  ;;  %v1949_v45 = vpop.f32.mrb[106].mxu1 }
 0x1f7   : > { %v1757_v11 = vadd.f32 %v1756_v25, %v5758_v36  ;;  %v1758_v31 = vpop.f32.mrb[107].mxu0  ;;  %v2170_v28 = vmax.f32 %v1946_v30, 0.0  ;;  %v1950_v55 = vadd.f32 %v1949_v45, %v5769_v13  ;;  %v1951_v58 = vpop.f32.mrb[107].mxu1  ;;  %v2168_v42 = vmax.f32 %v1753_v4, 0.0 }
 0x1f8   : > { %v1759_v27 = vadd.f32 %v1758_v31, %v5763_v9  ;;  %v2171_v52 = vmax.f32 %v1948_v37, 0.0  ;;  %v1952_v53 = vadd.f32 %v1951_v58, %v5774_v35  ;;  %v2169_v6 = vmax.f32 %v1755_v34, 0.0 }
 0x1f9   : > { %v2176_v17 = vmax.f32 %v1757_v11, 0.0  ;;  %3302 = vmatmul.mubr.bf16.gmra.mrb[212].mxu0 %v5893_v26  ;;  %v2178_v21 = vmax.f32 %v1950_v55, 0.0  ;;  %3463 = vmatmul.mubr.bf16.gmra.mrb[212].mxu1 %v5896_v1 }
 0x1fa   : > { %v2177_v43 = vmax.f32 %v1759_v27, 0.0  ;;  %3309 = vmatprep.mubr.bf16.mxu0 %v5918_v32  ;;  %v2179_v59 = vmax.f32 %v1952_v53, 0.0  ;;  %3470 = vmatprep.mubr.bf16.mxu1 %v5920_v54 }
 0x1fb   : > { %v5993_v40 = vpack.c.bf16 %v2176_v17, %v2168_v42  ;;  %v5996_v22 = vpack.c.bf16 %v2178_v21, %v2170_v28 }
 0x1fc   : > { %v5998_v10 = vpack.c.bf16 %v2177_v43, %v2169_v6  ;;  %v1762_v63 = vpop.f32.mrb[108].mxu0  ;;  %v6000_v19 = vpack.c.bf16 %v2179_v59, %v2171_v52  ;;  %v1955_v18 = vpop.f32.mrb[108].mxu1 }
 0x1fd   : > { %v1763_v26 = vadd.f32 %v1762_v63, %v5758_v36  ;;  %v1764_v0 = vpop.f32.mrb[109].mxu0  ;;  %v1956_v1 = vadd.f32 %v1955_v18, %v5769_v13  ;;  %v1957_v39 = vpop.f32.mrb[109].mxu1 }
 0x1fe   : > { %v1765_v32 = vadd.f32 %v1764_v0, %v5763_v9  ;;  %v1766_v46 = vpop.f32.mrb[110].mxu0  ;;  %v1958_v41 = vadd.f32 %v1957_v39, %v5774_v35  ;;  %v1959_v47 = vpop.f32.mrb[110].mxu1 }
 0x1ff   : > { %v1767_v54 = vadd.f32 %v1766_v46, %v5758_v36  ;;  %v1768_v8 = vpop.f32.mrb[111].mxu0  ;;  %v2186_v56 = vmax.f32 %v1956_v1, 0.0  ;;  %v1960_v12 = vadd.f32 %v1959_v47, %v5769_v13  ;;  %v1961_v29 = vpop.f32.mrb[111].mxu1  ;;  %v2184_v61 = vmax.f32 %v1763_v26, 0.0 }
 0x200   : > { %v1769_v5 = vadd.f32 %v1768_v8, %v5763_v9  ;;  %v2187_v23 = vmax.f32 %v1958_v41, 0.0  ;;  %v1962_v4 = vadd.f32 %v1961_v29, %v5774_v35  ;;  %v2185_v7 = vmax.f32 %v1765_v32, 0.0 }
 0x201   : > { %v2192_v2 = vmax.f32 %v1767_v54, 0.0  ;;  %3310 = vmatmul.mubr.bf16.gmra.mrb[216].mxu0 %v5913_v16  ;;  %v2194_v3 = vmax.f32 %v1960_v12, 0.0  ;;  %3471 = vmatmul.mubr.bf16.gmra.mrb[216].mxu1 %v5916_v49 }
 0x202   : > { %v2193_v30 = vmax.f32 %v1769_v5, 0.0  ;;  %3317 = vmatprep.mubr.bf16.mxu0 %v5938_v48  ;;  %v2195_v20 = vmax.f32 %v1962_v4, 0.0  ;;  %3478 = vmatprep.mubr.bf16.mxu1 %v5940_v14 }
 0x203   : > { %v6013_v34 = vpack.c.bf16 %v2192_v2, %v2184_v61  ;;  %v6016_v25 = vpack.c.bf16 %v2194_v3, %v2186_v56 }
 0x204   : > { %v6018_v37 = vpack.c.bf16 %v2193_v30, %v2185_v7  ;;  %v1772_v11 = vpop.f32.mrb[112].mxu0  ;;  %v6020_v45 = vpack.c.bf16 %v2195_v20, %v2187_v23  ;;  %v1965_v31 = vpop.f32.mrb[112].mxu1 }
 0x205   : > { %v1773_v16 = vadd.f32 %v1772_v11, %v5758_v36  ;;  %v1774_v28 = vpop.f32.mrb[113].mxu0  ;;  %v1966_v49 = vadd.f32 %v1965_v31, %v5769_v13  ;;  %v1967_v55 = vpop.f32.mrb[113].mxu1 }
 0x206   : > { %v1775_v48 = vadd.f32 %v1774_v28, %v5763_v9  ;;  %v1776_v27 = vpop.f32.mrb[114].mxu0  ;;  %v1968_v58 = vadd.f32 %v1967_v55, %v5774_v35  ;;  %v1969_v42 = vpop.f32.mrb[114].mxu1 }
 0x207   : > { %v1777_v14 = vadd.f32 %v1776_v27, %v5758_v36  ;;  %v1778_v52 = vpop.f32.mrb[115].mxu0  ;;  %v2202_v17 = vmax.f32 %v1966_v49, 0.0  ;;  %v1970_v53 = vadd.f32 %v1969_v42, %v5769_v13  ;;  %v1971_v21 = vpop.f32.mrb[115].mxu1  ;;  %v2200_v43 = vmax.f32 %v1773_v16, 0.0 }
 0x208   : > { %v1779_v6 = vadd.f32 %v1778_v52, %v5763_v9  ;;  %v2203_v59 = vmax.f32 %v1968_v58, 0.0  ;;  %v1972_v26 = vadd.f32 %v1971_v21, %v5774_v35  ;;  %v2201_v18 = vmax.f32 %v1775_v48, 0.0 }
 0x209   : > { %v2208_v63 = vmax.f32 %v1777_v14, 0.0  ;;  %3318 = vmatmul.mubr.bf16.gmra.mrb[220].mxu0 %v5933_v44  ;;  %v2210_v0 = vmax.f32 %v1970_v53, 0.0  ;;  %3479 = vmatmul.mubr.bf16.gmra.mrb[220].mxu1 %v5936_v38 }
 0x20a   : > { %v2209_v1 = vmax.f32 %v1779_v6, 0.0  ;;  %3325 = vmatprep.mubr.bf16.mxu0 %v5958_v60  ;;  %v2211_v39 = vmax.f32 %v1972_v26, 0.0  ;;  %3486 = vmatprep.mubr.bf16.mxu1 %v5960_v62 }
 0x20b   : > { %v6033_v32 = vpack.c.bf16 %v2208_v63, %v2200_v43  ;;  %v6036_v46 = vpack.c.bf16 %v2210_v0, %v2202_v17 }
 0x20c   : > { %v6038_v41 = vpack.c.bf16 %v2209_v1, %v2201_v18  ;;  %v1782_v54 = vpop.f32.mrb[116].mxu0  ;;  %v6040_v47 = vpack.c.bf16 %v2211_v39, %v2203_v59  ;;  %v1975_v8 = vpop.f32.mrb[116].mxu1 }
 0x20d   : > { %v1783_v44 = vadd.f32 %v1782_v54, %v5758_v36  ;;  %v1784_v56 = vpop.f32.mrb[117].mxu0  ;;  %v1976_v38 = vadd.f32 %v1975_v8, %v5769_v13  ;;  %v1977_v12 = vpop.f32.mrb[117].mxu1 }
 0x20e   : > { %v1785_v60 = vadd.f32 %v1784_v56, %v5763_v9  ;;  %v1786_v5 = vpop.f32.mrb[118].mxu0  ;;  %v1978_v29 = vadd.f32 %v1977_v12, %v5774_v35  ;;  %v1979_v61 = vpop.f32.mrb[118].mxu1 }
 0x20f   : > { %v1787_v62 = vadd.f32 %v1786_v5, %v5758_v36  ;;  %v1788_v23 = vpop.f32.mrb[119].mxu0  ;;  %v2218_v2 = vmax.f32 %v1976_v38, 0.0  ;;  %v1980_v4 = vadd.f32 %v1979_v61, %v5769_v13  ;;  %v1981_v3 = vpop.f32.mrb[119].mxu1  ;;  %v2216_v30 = vmax.f32 %v1783_v44, 0.0 }
 0x210   : > { %v1789_v7 = vadd.f32 %v1788_v23, %v5763_v9  ;;  %v2219_v20 = vmax.f32 %v1978_v29, 0.0  ;;  %v1982_v16 = vadd.f32 %v1981_v3, %v5774_v35  ;;  %v2217_v31 = vmax.f32 %v1785_v60, 0.0 }
 0x211   : > { %v2224_v11 = vmax.f32 %v1787_v62, 0.0  ;;  %3326 = vmatmul.mubr.bf16.gmra.mrb[224].mxu0 %v5953_v24  ;;  %v2226_v28 = vmax.f32 %v1980_v4, 0.0  ;;  %3487 = vmatmul.mubr.bf16.gmra.mrb[224].mxu1 %v5956_v57 }
 0x212   : > { %v2225_v49 = vmax.f32 %v1789_v7, 0.0  ;;  %3333 = vmatprep.mubr.bf16.mxu0 %v5978_v33  ;;  %v2227_v55 = vmax.f32 %v1982_v16, 0.0  ;;  %3494 = vmatprep.mubr.bf16.mxu1 %v5980_v51 }
 0x213   : > { %v6053_v48 = vpack.c.bf16 %v2224_v11, %v2216_v30  ;;  %v6056_v27 = vpack.c.bf16 %v2226_v28, %v2218_v2 }
 0x214   : > { %v6058_v58 = vpack.c.bf16 %v2225_v49, %v2217_v31  ;;  %v1792_v14 = vpop.f32.mrb[120].mxu0  ;;  %v6060_v42 = vpack.c.bf16 %v2227_v55, %v2219_v20  ;;  %v1985_v52 = vpop.f32.mrb[120].mxu1 }
 0x215   : > { %v1793_v24 = vadd.f32 %v1792_v14, %v5758_v36  ;;  %v1794_v17 = vpop.f32.mrb[121].mxu0  ;;  %v1986_v57 = vadd.f32 %v1985_v52, %v5769_v13  ;;  %v1987_v53 = vpop.f32.mrb[121].mxu1 }
 0x216   : > { %v1795_v33 = vadd.f32 %v1794_v17, %v5763_v9  ;;  %v1796_v6 = vpop.f32.mrb[122].mxu0  ;;  %v1988_v21 = vadd.f32 %v1987_v53, %v5774_v35  ;;  %v1989_v43 = vpop.f32.mrb[122].mxu1 }
 0x217   : > { %v1797_v51 = vadd.f32 %v1796_v6, %v5758_v36  ;;  %v1798_v59 = vpop.f32.mrb[123].mxu0  ;;  %v2234_v63 = vmax.f32 %v1986_v57, 0.0  ;;  %v1990_v26 = vadd.f32 %v1989_v43, %v5769_v13  ;;  %v1991_v0 = vpop.f32.mrb[123].mxu1  ;;  %v2232_v1 = vmax.f32 %v1793_v24, 0.0  ;;  %v6105_v6 = vld [vmem:[%s6346_s4] ss:$0 sm:$0xff] }
 0x218   : > { %v1799_v18 = vadd.f32 %v1798_v59, %v5763_v9  ;;  %v2235_v39 = vmax.f32 %v1988_v21, 0.0  ;;  %v1992_v44 = vadd.f32 %v1991_v0, %v5774_v35  ;;  %v2233_v8 = vmax.f32 %v1795_v33, 0.0 }
 0x219   : > { %v2240_v54 = vmax.f32 %v1797_v51, 0.0  ;;  %3334 = vmatmul.mubr.bf16.gmra.mrb[228].mxu0 %v5973_v50  ;;  %v2242_v56 = vmax.f32 %v1990_v26, 0.0  ;;  %3495 = vmatmul.mubr.bf16.gmra.mrb[228].mxu1 %v5976_v15 }
 0x21a   : > { %v2241_v38 = vmax.f32 %v1799_v18, 0.0  ;;  %3341 = vmatprep.mubr.bf16.mxu0 %v5998_v10  ;;  %v2243_v12 = vmax.f32 %v1992_v44, 0.0  ;;  %3502 = vmatprep.mubr.bf16.mxu1 %v6000_v19 }
 0x21b   : > { %v6073_v60 = vpack.c.bf16 %v2240_v54, %v2232_v1  ;;  %v6076_v5 = vpack.c.bf16 %v2242_v56, %v2234_v63 }
 0x21c   : > { %v6078_v29 = vpack.c.bf16 %v2241_v38, %v2233_v8  ;;  %v1802_v62 = vpop.f32.mrb[124].mxu0  ;;  %v6080_v61 = vpack.c.bf16 %v2243_v12, %v2235_v39  ;;  %v1995_v23 = vpop.f32.mrb[124].mxu1 }
 0x21d   : > { %v1803_v50 = vadd.f32 %v1802_v62, %v5758_v36  ;;  %v1804_v2 = vpop.f32.mrb[125].mxu0  ;;  %v1996_v15 = vadd.f32 %v1995_v23, %v5769_v13  ;;  %v1997_v4 = vpop.f32.mrb[125].mxu1 }
 0x21e   : > { %v1805_v10 = vadd.f32 %v1804_v2, %v5763_v9  ;;  %v1806_v7 = vpop.f32.mrb[126].mxu0  ;;  %v1998_v3 = vadd.f32 %v1997_v4, %v5774_v35  ;;  %v1999_v30 = vpop.f32.mrb[126].mxu1 }
 0x21f   : > { %v1807_v19 = vadd.f32 %v1806_v7, %v5758_v36  ;;  %v1808_v20 = vpop.f32.mrb[127].mxu0  ;;  %v2250_v11 = vmax.f32 %v1996_v15, 0.0  ;;  %v2000_v16 = vadd.f32 %v1999_v30, %v5769_v13  ;;  %v2001_v28 = vpop.f32.mrb[127].mxu1  ;;  %v2248_v49 = vmax.f32 %v1803_v50, 0.0 }
 0x220   : > { %v1809_v31 = vadd.f32 %v1808_v20, %v5763_v9  ;;  %v2251_v55 = vmax.f32 %v1998_v3, 0.0  ;;  %v2002_v24 = vadd.f32 %v2001_v28, %v5774_v35  ;;  %v2249_v52 = vmax.f32 %v1805_v10, 0.0 }
 0x221   : > { %v2256_v14 = vmax.f32 %v1807_v19, 0.0  ;;  %3342 = vmatmul.mubr.bf16.gmra.mrb[232].mxu0 %v5993_v40  ;;  %v2258_v17 = vmax.f32 %v2000_v16, 0.0  ;;  %3503 = vmatmul.mubr.bf16.gmra.mrb[232].mxu1 %v5996_v22 }
 0x222   : > { %v2257_v57 = vmax.f32 %v1809_v31, 0.0  ;;  %3349 = vmatprep.mubr.bf16.mxu0 %v6018_v37  ;;  %v2259_v13 = vmax.f32 %v2002_v24, 0.0  ;;  %3510 = vmatprep.mubr.bf16.mxu1 %v6020_v45 }
 0x223   : > { %v6093_v36 = vpack.c.bf16 %v2256_v14, %v2248_v49  ;;  %v6096_v9 = vpack.c.bf16 %v2258_v17, %v2250_v11 }
 0x224   : > { %v6098_v33 = vpack.c.bf16 %v2257_v57, %v2249_v52  ;;  %v3915_v53 = vpop.f32.mrb[128].mxu0  ;;  %v6100_v35 = vpack.c.bf16 %v2259_v13, %v2251_v55  ;;  %v4027_v40 = vpop.f32.mrb[128].mxu1 }
 0x225   : > { %v3916_v22 = vpop.f32.mrb[129].mxu0  ;;  %v4028_v21 = vpop.f32.mrb[129].mxu1 }
 0x226   : > { %v3917_v37 = vadd.f32 %v3916_v22, %v3915_v53  ;;  %v3918_v51 = vpop.f32.mrb[130].mxu0  ;;  %v4029_v43 = vadd.f32 %v4028_v21, %v4027_v40  ;;  %v4030_v59 = vpop.f32.mrb[130].mxu1 }
 0x227   : > { %v3919_v45 = vpop.f32.mrb[131].mxu0  ;;  %v4031_v18 = vpop.f32.mrb[131].mxu1 }
 0x228   : > { %v2942_v63 = vadd.f32 %v3917_v37, %v6105_v6  ;;  %v3920_v26 = vadd.f32 %v3919_v45, %v3918_v51  ;;  %v4032_v0 = vadd.f32 %v4031_v18, %v4030_v59 }
 0x229   : > { %3350 = vmatmul.mubr.bf16.gmra.mrb[236].mxu0 %v6013_v34  ;;  %3511 = vmatmul.mubr.bf16.gmra.mrb[236].mxu1 %v6016_v25 }
 0x22a   : > { %v6109_v1 = vadd.f32 %v4029_v43, %v2942_v63  ;;  %v2945_v39 = vadd.f32 %v3920_v26, %v6105_v6  ;;  %3357 = vmatprep.mubr.bf16.mxu0 %v6038_v41  ;;  %3518 = vmatprep.mubr.bf16.mxu1 %v6040_v47 }
 0x22c   : > { %v6115_v54 = vadd.f32 %v4032_v0, %v2945_v39  ;;  %v3921_v44 = vpop.f32.mrb[132].mxu0  ;;  %v4033_v8 = vpop.f32.mrb[132].mxu1 }
 0x22d   : > { %v3922_v56 = vpop.f32.mrb[133].mxu0  ;;  %v4034_v12 = vpop.f32.mrb[133].mxu1 }
 0x22e   : > { %v3923_v38 = vadd.f32 %v3922_v56, %v3921_v44  ;;  %v3924_v62 = vpop.f32.mrb[134].mxu0  ;;  %v4035_v50 = vadd.f32 %v4034_v12, %v4033_v8  ;;  %v4036_v34 = vpop.f32.mrb[134].mxu1 }
 0x22f   : > { %v3925_v23 = vpop.f32.mrb[135].mxu0  ;;  %v4037_v10 = vpop.f32.mrb[135].mxu1 }
 0x230   : > { %v2950_v2 = vadd.f32 %v3923_v38, %v6105_v6  ;;  %v3926_v15 = vadd.f32 %v3925_v23, %v3924_v62  ;;  %v4038_v25 = vadd.f32 %v4037_v10, %v4036_v34 }
 0x231   : > { %3358 = vmatmul.mubr.bf16.gmra.mrb[240].mxu0 %v6033_v32  ;;  %3519 = vmatmul.mubr.bf16.gmra.mrb[240].mxu1 %v6036_v46 }
 0x232   : > { %v6119_v41 = vadd.f32 %v4035_v50, %v2950_v2  ;;  %v2953_v47 = vadd.f32 %v3926_v15, %v6105_v6  ;;  %3365 = vmatprep.mubr.bf16.mxu0 %v6058_v58  ;;  %3526 = vmatprep.mubr.bf16.mxu1 %v6060_v42 }
 0x234   : > { %v6125_v4 = vadd.f32 %v4038_v25, %v2953_v47  ;;  %v3927_v7 = vpop.f32.mrb[136].mxu0  ;;  %v4039_v3 = vpop.f32.mrb[136].mxu1 }
 0x235   : > { %v3928_v19 = vpop.f32.mrb[137].mxu0  ;;  %v4040_v20 = vpop.f32.mrb[137].mxu1 }
 0x236   : > { %v3929_v30 = vadd.f32 %v3928_v19, %v3927_v7  ;;  %v3930_v11 = vpop.f32.mrb[138].mxu0  ;;  %v4041_v16 = vadd.f32 %v4040_v20, %v4039_v3  ;;  %v4042_v32 = vpop.f32.mrb[138].mxu1 }
 0x237   : > { %v3931_v31 = vpop.f32.mrb[139].mxu0  ;;  %v4043_v55 = vpop.f32.mrb[139].mxu1 }
 0x238   : > { %v2958_v28 = vadd.f32 %v3929_v30, %v6105_v6  ;;  %v3932_v49 = vadd.f32 %v3931_v31, %v3930_v11  ;;  %v4044_v46 = vadd.f32 %v4043_v55, %v4042_v32 }
 0x239   : > { %3366 = vmatmul.mubr.bf16.gmra.mrb[244].mxu0 %v6053_v48  ;;  %3527 = vmatmul.mubr.bf16.gmra.mrb[244].mxu1 %v6056_v27 }
 0x23a   : > { %v6129_v58 = vadd.f32 %v4041_v16, %v2958_v28  ;;  %v2961_v42 = vadd.f32 %v3932_v49, %v6105_v6  ;;  %3373 = vmatprep.mubr.bf16.mxu0 %v6078_v29  ;;  %3534 = vmatprep.mubr.bf16.mxu1 %v6080_v61 }
 0x23c   : > { %v6135_v14 = vadd.f32 %v4044_v46, %v2961_v42  ;;  %v3933_v24 = vpop.f32.mrb[140].mxu0  ;;  %v4045_v52 = vpop.f32.mrb[140].mxu1 }
 0x23d   : > { %v3934_v17 = vpop.f32.mrb[141].mxu0  ;;  %v4046_v13 = vpop.f32.mrb[141].mxu1 }
 0x23e   : > { %v3935_v57 = vadd.f32 %v3934_v17, %v3933_v24  ;;  %v3936_v53 = vpop.f32.mrb[142].mxu0  ;;  %v4047_v40 = vadd.f32 %v4046_v13, %v4045_v52  ;;  %v4048_v48 = vpop.f32.mrb[142].mxu1 }
 0x23f   : > { %v3937_v22 = vpop.f32.mrb[143].mxu0  ;;  %v4049_v51 = vpop.f32.mrb[143].mxu1 }
 0x240   : > { %v2966_v37 = vadd.f32 %v3935_v57, %v6105_v6  ;;  %v3938_v21 = vadd.f32 %v3937_v22, %v3936_v53  ;;  %v4050_v27 = vadd.f32 %v4049_v51, %v4048_v48 }
 0x241   : > { %3374 = vmatmul.mubr.bf16.gmra.mrb[248].mxu0 %v6073_v60  ;;  %3535 = vmatmul.mubr.bf16.gmra.mrb[248].mxu1 %v6076_v5 }
 0x242   : > { %v6139_v29 = vadd.f32 %v4047_v40, %v2966_v37  ;;  %v2969_v61 = vadd.f32 %v3938_v21, %v6105_v6  ;;  %3381 = vmatprep.mubr.bf16.mxu0 %v6098_v33  ;;  %3542 = vmatprep.mubr.bf16.mxu1 %v6100_v35 }
 0x244   : > { %v6145_v43 = vadd.f32 %v4050_v27, %v2969_v61  ;;  %v3939_v59 = vpop.f32.mrb[144].mxu0  ;;  %v4051_v45 = vpop.f32.mrb[144].mxu1 }
 0x245   : > { %v3940_v63 = vpop.f32.mrb[145].mxu0  ;;  %v4052_v18 = vpop.f32.mrb[145].mxu1 }
 0x246   : > { %v3941_v26 = vadd.f32 %v3940_v63, %v3939_v59  ;;  %v3942_v0 = vpop.f32.mrb[146].mxu0  ;;  %v4053_v39 = vadd.f32 %v4052_v18, %v4051_v45  ;;  %v4054_v60 = vpop.f32.mrb[146].mxu1 }
 0x247   : > { %v3943_v44 = vpop.f32.mrb[147].mxu0  ;;  %v4055_v38 = vpop.f32.mrb[147].mxu1 }
 0x248   : > { %v2974_v8 = vadd.f32 %v3941_v26, %v6105_v6  ;;  %v3944_v56 = vadd.f32 %v3943_v44, %v3942_v0  ;;  %v4056_v5 = vadd.f32 %v4055_v38, %v4054_v60 }
 0x249   : > { %3382 = vmatmul.mubr.bf16.gmra.mrb[252].mxu0 %v6093_v36  ;;  %3543 = vmatmul.mubr.bf16.gmra.mrb[252].mxu1 %v6096_v9 }
 0x24a   : > { %v6149_v33 = vadd.f32 %v4053_v39, %v2974_v8  ;;  %v2977_v35 = vadd.f32 %v3944_v56, %v6105_v6 }
 0x24c   : > { %v6153_v12 = vadd.f32 %v4056_v5, %v2977_v35  ;;  %v3945_v62 = vpop.f32.mrb[148].mxu0  ;;  %v4057_v50 = vpop.f32.mrb[148].mxu1 }
 0x24d   : > { %v3946_v34 = vpop.f32.mrb[149].mxu0  ;;  %v4058_v2 = vpop.f32.mrb[149].mxu1 }
 0x24e   : > { %v3947_v23 = vadd.f32 %v3946_v34, %v3945_v62  ;;  %v3948_v15 = vpop.f32.mrb[150].mxu0  ;;  %v4059_v10 = vadd.f32 %v4058_v2, %v4057_v50  ;;  %v4060_v25 = vpop.f32.mrb[150].mxu1 }
 0x24f   : > { %v3949_v47 = vpop.f32.mrb[151].mxu0  ;;  %v4061_v3 = vpop.f32.mrb[151].mxu1 }
 0x250   : > { %v2982_v7 = vadd.f32 %v3947_v23, %v6105_v6  ;;  %v3950_v36 = vadd.f32 %v3949_v47, %v3948_v15  ;;  %v4062_v19 = vadd.f32 %v4061_v3, %v4060_v25 }
 0x252   : > { %v6156_v30 = vadd.f32 %v4059_v10, %v2982_v7  ;;  %v2985_v9 = vadd.f32 %v3950_v36, %v6105_v6 }
 0x254   : > { %v6159_v20 = vadd.f32 %v4062_v19, %v2985_v9  ;;  %v3951_v11 = vpop.f32.mrb[152].mxu0  ;;  %v4063_v16 = vpop.f32.mrb[152].mxu1 }
 0x255   : > { %v3952_v32 = vpop.f32.mrb[153].mxu0  ;;  %v4064_v28 = vpop.f32.mrb[153].mxu1 }
 0x256   : > { %v3953_v31 = vadd.f32 %v3952_v32, %v3951_v11  ;;  %v3954_v49 = vpop.f32.mrb[154].mxu0  ;;  %v4065_v55 = vadd.f32 %v4064_v28, %v4063_v16  ;;  %v4066_v46 = vpop.f32.mrb[154].mxu1 }
 0x257   : > { %v3955_v42 = vpop.f32.mrb[155].mxu0  ;;  %v4067_v17 = vpop.f32.mrb[155].mxu1 }
 0x258   : > { %v2990_v24 = vadd.f32 %v3953_v31, %v6105_v6  ;;  %v3956_v52 = vadd.f32 %v3955_v42, %v3954_v49  ;;  %v4068_v57 = vadd.f32 %v4067_v17, %v4066_v46 }
 0x25a   : > { %v6162_v13 = vadd.f32 %v4065_v55, %v2990_v24  ;;  %v2993_v53 = vadd.f32 %v3956_v52, %v6105_v6 }
 0x25c   : > { %v6165_v40 = vadd.f32 %v4068_v57, %v2993_v53  ;;  %v3957_v48 = vpop.f32.mrb[156].mxu0  ;;  %v4069_v22 = vpop.f32.mrb[156].mxu1 }
 0x25d   : > { %v3958_v37 = vpop.f32.mrb[157].mxu0  ;;  %v4070_v51 = vpop.f32.mrb[157].mxu1 }
 0x25e   : > { %v3959_v21 = vadd.f32 %v3958_v37, %v3957_v48  ;;  %v3960_v27 = vpop.f32.mrb[158].mxu0  ;;  %v4071_v61 = vadd.f32 %v4070_v51, %v4069_v22  ;;  %v4072_v59 = vpop.f32.mrb[158].mxu1 }
 0x25f   : > { %v3961_v45 = vpop.f32.mrb[159].mxu0  ;;  %v4073_v18 = vpop.f32.mrb[159].mxu1 }
 0x260   : > { %v2998_v63 = vadd.f32 %v3959_v21, %v6105_v6  ;;  %v3962_v26 = vadd.f32 %v3961_v45, %v3960_v27  ;;  %v4074_v0 = vadd.f32 %v4073_v18, %v4072_v59 }
 0x262   : > { %v6168_v39 = vadd.f32 %v4071_v61, %v2998_v63  ;;  %v3001_v60 = vadd.f32 %v3962_v26, %v6105_v6 }
 0x264   : > { %v6171_v44 = vadd.f32 %v4074_v0, %v3001_v60  ;;  %v3963_v8 = vpop.f32.mrb[160].mxu0  ;;  %v4075_v56 = vpop.f32.mrb[160].mxu1 }
 0x265   : > { %v3964_v38 = vpop.f32.mrb[161].mxu0  ;;  %v4076_v35 = vpop.f32.mrb[161].mxu1 }
 0x266   : > { %v3965_v5 = vadd.f32 %v3964_v38, %v3963_v8  ;;  %v3966_v62 = vpop.f32.mrb[162].mxu0  ;;  %v4077_v50 = vadd.f32 %v4076_v35, %v4075_v56  ;;  %v4078_v34 = vpop.f32.mrb[162].mxu1 }
 0x267   : > { %v3967_v23 = vpop.f32.mrb[163].mxu0  ;;  %v4079_v10 = vpop.f32.mrb[163].mxu1 }
 0x268   : > { %v3006_v2 = vadd.f32 %v3965_v5, %v6105_v6  ;;  %v3968_v15 = vadd.f32 %v3967_v23, %v3966_v62  ;;  %v4080_v25 = vadd.f32 %v4079_v10, %v4078_v34 }
 0x26a   : > { %v6174_v47 = vadd.f32 %v4077_v50, %v3006_v2  ;;  %v3009_v7 = vadd.f32 %v3968_v15, %v6105_v6 }
 0x26c   : > { %v6177_v36 = vadd.f32 %v4080_v25, %v3009_v7  ;;  %v3969_v3 = vpop.f32.mrb[164].mxu0  ;;  %v4081_v19 = vpop.f32.mrb[164].mxu1 }
 0x26d   : > { %v3970_v9 = vpop.f32.mrb[165].mxu0  ;;  %v4082_v16 = vpop.f32.mrb[165].mxu1 }
 0x26e   : > { %v3971_v11 = vadd.f32 %v3970_v9, %v3969_v3  ;;  %v3972_v32 = vpop.f32.mrb[166].mxu0  ;;  %v4083_v31 = vadd.f32 %v4082_v16, %v4081_v19  ;;  %v4084_v28 = vpop.f32.mrb[166].mxu1 }
 0x26f   : > { %v3973_v49 = vpop.f32.mrb[167].mxu0  ;;  %v4085_v42 = vpop.f32.mrb[167].mxu1 }
 0x270   : > { %v3014_v55 = vadd.f32 %v3971_v11, %v6105_v6  ;;  %v3974_v46 = vadd.f32 %v3973_v49, %v3972_v32  ;;  %v4086_v24 = vadd.f32 %v4085_v42, %v4084_v28 }
 0x272   : > { %v6180_v52 = vadd.f32 %v4083_v31, %v3014_v55  ;;  %v3017_v17 = vadd.f32 %v3974_v46, %v6105_v6 }
 0x274   : > { %v6183_v57 = vadd.f32 %v4086_v24, %v3017_v17  ;;  %v3975_v53 = vpop.f32.mrb[168].mxu0  ;;  %v4087_v48 = vpop.f32.mrb[168].mxu1 }
 0x275   : > { %v3976_v22 = vpop.f32.mrb[169].mxu0  ;;  %v4088_v21 = vpop.f32.mrb[169].mxu1 }
 0x276   : > { %v3977_v37 = vadd.f32 %v3976_v22, %v3975_v53  ;;  %v3978_v51 = vpop.f32.mrb[170].mxu0  ;;  %v4089_v27 = vadd.f32 %v4088_v21, %v4087_v48  ;;  %v4090_v61 = vpop.f32.mrb[170].mxu1 }
 0x277   : > { %v3979_v59 = vpop.f32.mrb[171].mxu0  ;;  %v4091_v26 = vpop.f32.mrb[171].mxu1 }
 0x278   : > { %v3022_v45 = vadd.f32 %v3977_v37, %v6105_v6  ;;  %v3980_v63 = vadd.f32 %v3979_v59, %v3978_v51  ;;  %v4092_v18 = vadd.f32 %v4091_v26, %v4090_v61 }
 0x27a   : > { %v6186_v0 = vadd.f32 %v4089_v27, %v3022_v45  ;;  %v3025_v60 = vadd.f32 %v3980_v63, %v6105_v6 }
 0x27c   : > { %v6189_v8 = vadd.f32 %v4092_v18, %v3025_v60  ;;  %v3981_v56 = vpop.f32.mrb[172].mxu0  ;;  %v4093_v38 = vpop.f32.mrb[172].mxu1 }
 0x27d   : > { %v3982_v5 = vpop.f32.mrb[173].mxu0  ;;  %v4094_v62 = vpop.f32.mrb[173].mxu1 }
 0x27e   : > { %v3983_v35 = vadd.f32 %v3982_v5, %v3981_v56  ;;  %v3984_v50 = vpop.f32.mrb[174].mxu0  ;;  %v4095_v34 = vadd.f32 %v4094_v62, %v4093_v38  ;;  %v4096_v23 = vpop.f32.mrb[174].mxu1 }
 0x27f   : > { %v3985_v2 = vpop.f32.mrb[175].mxu0  ;;  %v4097_v25 = vpop.f32.mrb[175].mxu1 }
 0x280   : > { %v3030_v15 = vadd.f32 %v3983_v35, %v6105_v6  ;;  %v3986_v10 = vadd.f32 %v3985_v2, %v3984_v50  ;;  %v4098_v7 = vadd.f32 %v4097_v25, %v4096_v23 }
 0x282   : > { %v6192_v3 = vadd.f32 %v4095_v34, %v3030_v15  ;;  %v3033_v19 = vadd.f32 %v3986_v10, %v6105_v6 }
 0x284   : > { %v6195_v9 = vadd.f32 %v4098_v7, %v3033_v19  ;;  %v3987_v11 = vpop.f32.mrb[176].mxu0  ;;  %v4099_v16 = vpop.f32.mrb[176].mxu1 }
 0x285   : > { %v3988_v32 = vpop.f32.mrb[177].mxu0  ;;  %v4100_v28 = vpop.f32.mrb[177].mxu1 }
 0x286   : > { %v3989_v31 = vadd.f32 %v3988_v32, %v3987_v11  ;;  %v3990_v49 = vpop.f32.mrb[178].mxu0  ;;  %v4101_v55 = vadd.f32 %v4100_v28, %v4099_v16  ;;  %v4102_v46 = vpop.f32.mrb[178].mxu1 }
 0x287   : > { %v3991_v42 = vpop.f32.mrb[179].mxu0  ;;  %v4103_v53 = vpop.f32.mrb[179].mxu1 }
 0x288   : > { %v3038_v24 = vadd.f32 %v3989_v31, %v6105_v6  ;;  %v3992_v17 = vadd.f32 %v3991_v42, %v3990_v49  ;;  %v4104_v48 = vadd.f32 %v4103_v53, %v4102_v46 }
 0x28a   : > { %v6198_v22 = vadd.f32 %v4101_v55, %v3038_v24  ;;  %v3041_v37 = vadd.f32 %v3992_v17, %v6105_v6 }
 0x28c   : > { %v6201_v21 = vadd.f32 %v4104_v48, %v3041_v37  ;;  %v3993_v51 = vpop.f32.mrb[180].mxu0  ;;  %v4105_v27 = vpop.f32.mrb[180].mxu1 }
 0x28d   : > { %v3994_v61 = vpop.f32.mrb[181].mxu0  ;;  %v4106_v45 = vpop.f32.mrb[181].mxu1 }
 0x28e   : > { %v3995_v59 = vadd.f32 %v3994_v61, %v3993_v51  ;;  %v3996_v63 = vpop.f32.mrb[182].mxu0  ;;  %v4107_v26 = vadd.f32 %v4106_v45, %v4105_v27  ;;  %v4108_v18 = vpop.f32.mrb[182].mxu1 }
 0x28f   : > { %v3997_v60 = vpop.f32.mrb[183].mxu0  ;;  %v4109_v5 = vpop.f32.mrb[183].mxu1 }
 0x290   : > { %v3046_v56 = vadd.f32 %v3995_v59, %v6105_v6  ;;  %v3998_v38 = vadd.f32 %v3997_v60, %v3996_v63  ;;  %v4110_v35 = vadd.f32 %v4109_v5, %v4108_v18 }
 0x292   : > { %v6204_v62 = vadd.f32 %v4107_v26, %v3046_v56  ;;  %v3049_v50 = vadd.f32 %v3998_v38, %v6105_v6 }
 0x294   : > { %v6207_v34 = vadd.f32 %v4110_v35, %v3049_v50  ;;  %v3999_v23 = vpop.f32.mrb[184].mxu0  ;;  %v4111_v2 = vpop.f32.mrb[184].mxu1 }
 0x295   : > { %v4000_v15 = vpop.f32.mrb[185].mxu0  ;;  %v4112_v25 = vpop.f32.mrb[185].mxu1 }
 0x296   : > { %v4001_v10 = vadd.f32 %v4000_v15, %v3999_v23  ;;  %v4002_v7 = vpop.f32.mrb[186].mxu0  ;;  %v4113_v19 = vadd.f32 %v4112_v25, %v4111_v2  ;;  %v4114_v11 = vpop.f32.mrb[186].mxu1 }
 0x297   : > { %v4003_v16 = vpop.f32.mrb[187].mxu0  ;;  %v4115_v28 = vpop.f32.mrb[187].mxu1 }
 0x298   : > { %v3054_v32 = vadd.f32 %v4001_v10, %v6105_v6  ;;  %v4004_v31 = vadd.f32 %v4003_v16, %v4002_v7  ;;  %v4116_v49 = vadd.f32 %v4115_v28, %v4114_v11 }
 0x29a   : > { %v6210_v55 = vadd.f32 %v4113_v19, %v3054_v32  ;;  %v3057_v46 = vadd.f32 %v4004_v31, %v6105_v6 }
 0x29c   : > { %v6213_v42 = vadd.f32 %v4116_v49, %v3057_v46  ;;  %v4005_v24 = vpop.f32.mrb[188].mxu0  ;;  %v4117_v17 = vpop.f32.mrb[188].mxu1 }
 0x29d   : > { %v4006_v53 = vpop.f32.mrb[189].mxu0  ;;  %v4118_v37 = vpop.f32.mrb[189].mxu1 }
 0x29e   : > { %v4007_v48 = vadd.f32 %v4006_v53, %v4005_v24  ;;  %v4008_v51 = vpop.f32.mrb[190].mxu0  ;;  %v4119_v27 = vadd.f32 %v4118_v37, %v4117_v17  ;;  %v4120_v61 = vpop.f32.mrb[190].mxu1 }
 0x29f   : > { %v4009_v59 = vpop.f32.mrb[191].mxu0  ;;  %v4121_v26 = vpop.f32.mrb[191].mxu1 }
 0x2a0   : > { %v3062_v45 = vadd.f32 %v4007_v48, %v6105_v6  ;;  %v4010_v63 = vadd.f32 %v4009_v59, %v4008_v51  ;;  %v4122_v18 = vadd.f32 %v4121_v26, %v4120_v61 }
 0x2a2   : > { %v6216_v60 = vadd.f32 %v4119_v27, %v3062_v45  ;;  %v3065_v56 = vadd.f32 %v4010_v63, %v6105_v6 }
 0x2a4   : > { %v6220_v38 = vadd.f32 %v4122_v18, %v3065_v56  ;;  %v4139_v5 = vpop.f32.mrb[192].mxu0  ;;  %v4251_v35 = vpop.f32.mrb[192].mxu1 }
 0x2a5   : > { %v4140_v50 = vpop.f32.mrb[193].mxu0  ;;  %v4252_v2 = vpop.f32.mrb[193].mxu1 }
 0x2a6   : > { %v4141_v23 = vadd.f32 %v4140_v50, %v4139_v5  ;;  %v4142_v15 = vpop.f32.mrb[194].mxu0  ;;  %v4253_v10 = vadd.f32 %v4252_v2, %v4251_v35  ;;  %v4254_v25 = vpop.f32.mrb[194].mxu1 }
 0x2a7   : > { %v4143_v7 = vpop.f32.mrb[195].mxu0  ;;  %v4255_v16 = vpop.f32.mrb[195].mxu1 }
 0x2a8   : > { %v3264_v19 = vadd.f32 %v4141_v23, %v6109_v1  ;;  %v4144_v11 = vadd.f32 %v4143_v7, %v4142_v15  ;;  %v4256_v32 = vadd.f32 %v4255_v16, %v4254_v25 }
 0x2aa   : > { %v3425_v6 = vadd.f32 %v4253_v10, %v3264_v19  ;;  %v3267_v31 = vadd.f32 %v4144_v11, %v6115_v54 }
 0x2ac   : > { %3551 = vst [vmem:[%s6226_s16] sm:$0xff] %v3425_v6  ;;  %v3428_v28 = vadd.f32 %v4256_v32, %v3267_v31  ;;  %v4145_v49 = vpop.f32.mrb[196].mxu0  ;;  %v4257_v46 = vpop.f32.mrb[196].mxu1 }
 0x2ad   : > { %v4146_v24 = vpop.f32.mrb[197].mxu0  ;;  %v4258_v53 = vpop.f32.mrb[197].mxu1 }
 0x2ae   : > { %3552 = vst [vmem:[%s6226_s16 + $0x8] sm:$0xff] %v3428_v28  ;;  %v4147_v17 = vadd.f32 %v4146_v24, %v4145_v49  ;;  %v4148_v1 = vpop.f32.mrb[198].mxu0  ;;  %v4259_v48 = vadd.f32 %v4258_v53, %v4257_v46  ;;  %v4260_v37 = vpop.f32.mrb[198].mxu1 }
 0x2af   : > { %v4149_v51 = vpop.f32.mrb[199].mxu0  ;;  %v4261_v61 = vpop.f32.mrb[199].mxu1 }
 0x2b0   : > { %v3272_v54 = vadd.f32 %v4147_v17, %v6119_v41  ;;  %v4150_v27 = vadd.f32 %v4149_v51, %v4148_v1  ;;  %v4262_v59 = vadd.f32 %v4261_v61, %v4260_v37 }
 0x2b2   : > { %v3433_v45 = vadd.f32 %v4259_v48, %v3272_v54  ;;  %v3275_v63 = vadd.f32 %v4150_v27, %v6125_v4 }
 0x2b4   : > { %3553 = vst [vmem:[%s6226_s16 + $0x10] sm:$0xff] %v3433_v45  ;;  %v3436_v26 = vadd.f32 %v4262_v59, %v3275_v63  ;;  %v4151_v18 = vpop.f32.mrb[200].mxu0  ;;  %v4263_v56 = vpop.f32.mrb[200].mxu1 }
 0x2b5   : > { %v4152_v5 = vpop.f32.mrb[201].mxu0  ;;  %v4264_v50 = vpop.f32.mrb[201].mxu1 }
 0x2b6   : > { %3554 = vst [vmem:[%s6226_s16 + $0x18] sm:$0xff] %v3436_v26  ;;  %v4153_v35 = vadd.f32 %v4152_v5, %v4151_v18  ;;  %v4154_v23 = vpop.f32.mrb[202].mxu0  ;;  %v4265_v2 = vadd.f32 %v4264_v50, %v4263_v56  ;;  %v4266_v15 = vpop.f32.mrb[202].mxu1 }
 0x2b7   : > { %v4155_v41 = vpop.f32.mrb[203].mxu0  ;;  %v4267_v7 = vpop.f32.mrb[203].mxu1 }
 0x2b8   : > { %v3280_v10 = vadd.f32 %v4153_v35, %v6129_v58  ;;  %v4156_v25 = vadd.f32 %v4155_v41, %v4154_v23  ;;  %v4268_v19 = vadd.f32 %v4267_v7, %v4266_v15 }
 0x2ba   : > { %v3441_v4 = vadd.f32 %v4265_v2, %v3280_v10  ;;  %v3283_v11 = vadd.f32 %v4156_v25, %v6135_v14 }
 0x2bc   : > { %3555 = vst [vmem:[%s6226_s16 + $0x20] sm:$0xff] %v3441_v4  ;;  %v3444_v16 = vadd.f32 %v4268_v19, %v3283_v11  ;;  %v4157_v32 = vpop.f32.mrb[204].mxu0  ;;  %v4269_v6 = vpop.f32.mrb[204].mxu1 }
 0x2bd   : > { %v4158_v31 = vpop.f32.mrb[205].mxu0  ;;  %v4270_v49 = vpop.f32.mrb[205].mxu1 }
 0x2be   : > { %3556 = vst [vmem:[%s6226_s16 + $0x28] sm:$0xff] %v3444_v16  ;;  %v4159_v28 = vadd.f32 %v4158_v31, %v4157_v32  ;;  %v4160_v46 = vpop.f32.mrb[206].mxu0  ;;  %v4271_v24 = vadd.f32 %v4270_v49, %v4269_v6  ;;  %v4272_v17 = vpop.f32.mrb[206].mxu1 }
 0x2bf   : > { %v4161_v58 = vpop.f32.mrb[207].mxu0  ;;  %v4273_v48 = vpop.f32.mrb[207].mxu1 }
 0x2c0   : > { %v3288_v53 = vadd.f32 %v4159_v28, %v6139_v29  ;;  %v4162_v1 = vadd.f32 %v4161_v58, %v4160_v46  ;;  %v4274_v37 = vadd.f32 %v4273_v48, %v4272_v17 }
 0x2c2   : > { %v3449_v14 = vadd.f32 %v4271_v24, %v3288_v53  ;;  %v3291_v51 = vadd.f32 %v4162_v1, %v6145_v43 }
 0x2c4   : > { %3557 = vst [vmem:[%s6226_s16 + $0x30] sm:$0xff] %v3449_v14  ;;  %v3452_v54 = vadd.f32 %v4274_v37, %v3291_v51  ;;  %v4163_v27 = vpop.f32.mrb[208].mxu0  ;;  %v4275_v61 = vpop.f32.mrb[208].mxu1 }
 0x2c5   : > { %v4164_v59 = vpop.f32.mrb[209].mxu0  ;;  %v4276_v63 = vpop.f32.mrb[209].mxu1 }
 0x2c6   : > { %3558 = vst [vmem:[%s6226_s16 + $0x38] sm:$0xff] %v3452_v54  ;;  %v4165_v45 = vadd.f32 %v4164_v59, %v4163_v27  ;;  %v4166_v26 = vpop.f32.mrb[210].mxu0  ;;  %v4277_v18 = vadd.f32 %v4276_v63, %v4275_v61  ;;  %v4278_v56 = vpop.f32.mrb[210].mxu1 }
 0x2c7   : > { %v4167_v29 = vpop.f32.mrb[211].mxu0  ;;  %v4279_v50 = vpop.f32.mrb[211].mxu1 }
 0x2c8   : > { %v3296_v5 = vadd.f32 %v4165_v45, %v6149_v33  ;;  %v4168_v35 = vadd.f32 %v4167_v29, %v4166_v26  ;;  %v4280_v23 = vadd.f32 %v4279_v50, %v4278_v56 }
 0x2ca   : > { %v3457_v43 = vadd.f32 %v4277_v18, %v3296_v5  ;;  %v3299_v2 = vadd.f32 %v4168_v35, %v6153_v12 }
 0x2cc   : > { %3559 = vst [vmem:[%s6226_s16 + $0x40] sm:$0xff] %v3457_v43  ;;  %v3460_v15 = vadd.f32 %v4280_v23, %v3299_v2  ;;  %v4169_v41 = vpop.f32.mrb[212].mxu0  ;;  %v4281_v10 = vpop.f32.mrb[212].mxu1 }
 0x2cd   : > { %v4170_v25 = vpop.f32.mrb[213].mxu0  ;;  %v4282_v19 = vpop.f32.mrb[213].mxu1 }
 0x2ce   : > { %3560 = vst [vmem:[%s6226_s16 + $0x48] sm:$0xff] %v3460_v15  ;;  %v4171_v7 = vadd.f32 %v4170_v25, %v4169_v41  ;;  %v4172_v4 = vpop.f32.mrb[214].mxu0  ;;  %v4283_v11 = vadd.f32 %v4282_v19, %v4281_v10  ;;  %v4284_v16 = vpop.f32.mrb[214].mxu1 }
 0x2cf   : > { %v4173_v33 = vpop.f32.mrb[215].mxu0  ;;  %v4285_v31 = vpop.f32.mrb[215].mxu1 }
 0x2d0   : > { %v3304_v32 = vadd.f32 %v4171_v7, %v6156_v30  ;;  %v4174_v6 = vadd.f32 %v4173_v33, %v4172_v4  ;;  %v4286_v28 = vadd.f32 %v4285_v31, %v4284_v16 }
 0x2d2   : > { %v3465_v12 = vadd.f32 %v4283_v11, %v3304_v32  ;;  %v3307_v49 = vadd.f32 %v4174_v6, %v6159_v20 }
 0x2d4   : > { %3561 = vst [vmem:[%s6226_s16 + $0x50] sm:$0xff] %v3465_v12  ;;  %v3468_v46 = vadd.f32 %v4286_v28, %v3307_v49  ;;  %v4175_v24 = vpop.f32.mrb[216].mxu0  ;;  %v4287_v17 = vpop.f32.mrb[216].mxu1 }
 0x2d5   : > { %v4176_v58 = vpop.f32.mrb[217].mxu0  ;;  %v4288_v1 = vpop.f32.mrb[217].mxu1 }
 0x2d6   : > { %3562 = vst [vmem:[%s6226_s16 + $0x58] sm:$0xff] %v3468_v46  ;;  %v4177_v53 = vadd.f32 %v4176_v58, %v4175_v24  ;;  %v4178_v48 = vpop.f32.mrb[218].mxu0  ;;  %v4289_v37 = vadd.f32 %v4288_v1, %v4287_v17  ;;  %v4290_v14 = vpop.f32.mrb[218].mxu1 }
 0x2d7   : > { %v4179_v30 = vpop.f32.mrb[219].mxu0  ;;  %v4291_v27 = vpop.f32.mrb[219].mxu1 }
 0x2d8   : > { %v3312_v51 = vadd.f32 %v4177_v53, %v6162_v13  ;;  %v4180_v54 = vadd.f32 %v4179_v30, %v4178_v48  ;;  %v4292_v61 = vadd.f32 %v4291_v27, %v4290_v14 }
 0x2da   : > { %v3473_v20 = vadd.f32 %v4289_v37, %v3312_v51  ;;  %v3315_v59 = vadd.f32 %v4180_v54, %v6165_v40 }
 0x2dc   : > { %3563 = vst [vmem:[%s6226_s16 + $0x60] sm:$0xff] %v3473_v20  ;;  %v3476_v45 = vadd.f32 %v4292_v61, %v3315_v59  ;;  %v4181_v63 = vpop.f32.mrb[220].mxu0  ;;  %v4293_v26 = vpop.f32.mrb[220].mxu1 }
 0x2dd   : > { %v4182_v18 = vpop.f32.mrb[221].mxu0  ;;  %v4294_v29 = vpop.f32.mrb[221].mxu1 }
 0x2de   : > { %3564 = vst [vmem:[%s6226_s16 + $0x68] sm:$0xff] %v3476_v45  ;;  %v4183_v56 = vadd.f32 %v4182_v18, %v4181_v63  ;;  %v4184_v5 = vpop.f32.mrb[222].mxu0  ;;  %v4295_v35 = vadd.f32 %v4294_v29, %v4293_v26  ;;  %v4296_v50 = vpop.f32.mrb[222].mxu1 }
 0x2df   : > { %v4185_v13 = vpop.f32.mrb[223].mxu0  ;;  %v4297_v2 = vpop.f32.mrb[223].mxu1 }
 0x2e0   : > { %v3320_v23 = vadd.f32 %v4183_v56, %v6168_v39  ;;  %v4186_v43 = vadd.f32 %v4185_v13, %v4184_v5  ;;  %v4298_v15 = vadd.f32 %v4297_v2, %v4296_v50 }
 0x2e2   : > { %v3481_v40 = vadd.f32 %v4295_v35, %v3320_v23  ;;  %v3323_v41 = vadd.f32 %v4186_v43, %v6171_v44 }
 0x2e4   : > { %3565 = vst [vmem:[%s6226_s16 + $0x70] sm:$0xff] %v3481_v40  ;;  %v3484_v10 = vadd.f32 %v4298_v15, %v3323_v41  ;;  %v4187_v25 = vpop.f32.mrb[224].mxu0  ;;  %v4299_v7 = vpop.f32.mrb[224].mxu1 }
 0x2e5   : > { %v4188_v19 = vpop.f32.mrb[225].mxu0  ;;  %v4300_v11 = vpop.f32.mrb[225].mxu1 }
 0x2e6   : > { %3566 = vst [vmem:[%s6226_s16 + $0x78] sm:$0xff] %v3484_v10  ;;  %v4189_v4 = vadd.f32 %v4188_v19, %v4187_v25  ;;  %v4190_v16 = vpop.f32.mrb[226].mxu0  ;;  %v4301_v33 = vadd.f32 %v4300_v11, %v4299_v7  ;;  %v4302_v32 = vpop.f32.mrb[226].mxu1 }
 0x2e7   : > { %v4191_v39 = vpop.f32.mrb[227].mxu0  ;;  %v4303_v28 = vpop.f32.mrb[227].mxu1 }
 0x2e8   : > { %v3328_v6 = vadd.f32 %v4189_v4, %v6174_v47  ;;  %v4192_v31 = vadd.f32 %v4191_v39, %v4190_v16  ;;  %v4304_v12 = vadd.f32 %v4303_v28, %v4302_v32 }
 0x2ea   : > { %v3489_v44 = vadd.f32 %v4301_v33, %v3328_v6  ;;  %v3331_v49 = vadd.f32 %v4192_v31, %v6177_v36 }
 0x2ec   : > { %3567 = vst [vmem:[%s6226_s16 + $0x80] sm:$0xff] %v3489_v44  ;;  %v3492_v46 = vadd.f32 %v4304_v12, %v3331_v49  ;;  %v4193_v24 = vpop.f32.mrb[228].mxu0  ;;  %v4305_v17 = vpop.f32.mrb[228].mxu1 }
 0x2ed   : > { %v4194_v58 = vpop.f32.mrb[229].mxu0  ;;  %v4306_v1 = vpop.f32.mrb[229].mxu1 }
 0x2ee   : > { %3568 = vst [vmem:[%s6226_s16 + $0x88] sm:$0xff] %v3492_v46  ;;  %v4195_v53 = vadd.f32 %v4194_v58, %v4193_v24  ;;  %v4196_v48 = vpop.f32.mrb[230].mxu0  ;;  %v4307_v37 = vadd.f32 %v4306_v1, %v4305_v17  ;;  %v4308_v14 = vpop.f32.mrb[230].mxu1 }
 0x2ef   : > { %v4197_v47 = vpop.f32.mrb[231].mxu0  ;;  %v4309_v54 = vpop.f32.mrb[231].mxu1 }
 0x2f0   : > { %v3336_v30 = vadd.f32 %v4195_v53, %v6180_v52  ;;  %v4198_v51 = vadd.f32 %v4197_v47, %v4196_v48  ;;  %v4310_v27 = vadd.f32 %v4309_v54, %v4308_v14 }
 0x2f2   : > { %v3497_v36 = vadd.f32 %v4307_v37, %v3336_v30  ;;  %v3339_v61 = vadd.f32 %v4198_v51, %v6183_v57 }
 0x2f4   : > { %3569 = vst [vmem:[%s6226_s16 + $0x90] sm:$0xff] %v3497_v36  ;;  %v3500_v20 = vadd.f32 %v4310_v27, %v3339_v61  ;;  %v4199_v59 = vpop.f32.mrb[232].mxu0  ;;  %v4311_v45 = vpop.f32.mrb[232].mxu1 }
 0x2f5   : > { %v4200_v63 = vpop.f32.mrb[233].mxu0  ;;  %v4312_v18 = vpop.f32.mrb[233].mxu1 }
 0x2f6   : > { %3570 = vst [vmem:[%s6226_s16 + $0x98] sm:$0xff] %v3500_v20  ;;  %v4201_v26 = vadd.f32 %v4200_v63, %v4199_v59  ;;  %v4202_v56 = vpop.f32.mrb[234].mxu0  ;;  %v4313_v29 = vadd.f32 %v4312_v18, %v4311_v45  ;;  %v4314_v5 = vpop.f32.mrb[234].mxu1 }
 0x2f7   : > { %v4203_v52 = vpop.f32.mrb[235].mxu0  ;;  %v4315_v13 = vpop.f32.mrb[235].mxu1 }
 0x2f8   : > { %v3344_v35 = vadd.f32 %v4201_v26, %v6186_v0  ;;  %v4204_v50 = vadd.f32 %v4203_v52, %v4202_v56  ;;  %v4316_v23 = vadd.f32 %v4315_v13, %v4314_v5 }
 0x2fa   : > { %v3505_v57 = vadd.f32 %v4313_v29, %v3344_v35  ;;  %v3347_v43 = vadd.f32 %v4204_v50, %v6189_v8 }
 0x2fc   : > { %3571 = vst [vmem:[%s6226_s16 + $0xa0] sm:$0xff] %v3505_v57  ;;  %v3508_v2 = vadd.f32 %v4316_v23, %v3347_v43  ;;  %v4205_v15 = vpop.f32.mrb[236].mxu0  ;;  %v4317_v40 = vpop.f32.mrb[236].mxu1 }
 0x2fd   : > { %v4206_v41 = vpop.f32.mrb[237].mxu0  ;;  %v4318_v25 = vpop.f32.mrb[237].mxu1 }
 0x2fe   : > { %3572 = vst [vmem:[%s6226_s16 + $0xa8] sm:$0xff] %v3508_v2  ;;  %v4207_v10 = vadd.f32 %v4206_v41, %v4205_v15  ;;  %v4208_v7 = vpop.f32.mrb[238].mxu0  ;;  %v4319_v19 = vadd.f32 %v4318_v25, %v4317_v40  ;;  %v4320_v4 = vpop.f32.mrb[238].mxu1 }
 0x2ff   : > { %v4209_v0 = vpop.f32.mrb[239].mxu0  ;;  %v4321_v33 = vpop.f32.mrb[239].mxu1 }
 0x300   : > { %v3352_v11 = vadd.f32 %v4207_v10, %v6192_v3  ;;  %v4210_v16 = vadd.f32 %v4209_v0, %v4208_v7  ;;  %v4322_v32 = vadd.f32 %v4321_v33, %v4320_v4 }
 0x302   : > { %v3513_v8 = vadd.f32 %v4319_v19, %v3352_v11  ;;  %v3355_v39 = vadd.f32 %v4210_v16, %v6195_v9 }
 0x304   : > { %3573 = vst [vmem:[%s6226_s16 + $0xb0] sm:$0xff] %v3513_v8  ;;  %v3516_v6 = vadd.f32 %v4322_v32, %v3355_v39  ;;  %v4211_v31 = vpop.f32.mrb[240].mxu0  ;;  %v4323_v28 = vpop.f32.mrb[240].mxu1 }
 0x305   : > { %v4212_v12 = vpop.f32.mrb[241].mxu0  ;;  %v4324_v49 = vpop.f32.mrb[241].mxu1 }
 0x306   : > { %3574 = vst [vmem:[%s6226_s16 + $0xb8] sm:$0xff] %v3516_v6  ;;  %v4213_v44 = vadd.f32 %v4212_v12, %v4211_v31  ;;  %v4214_v46 = vpop.f32.mrb[242].mxu0  ;;  %v4325_v24 = vadd.f32 %v4324_v49, %v4323_v28  ;;  %v4326_v17 = vpop.f32.mrb[242].mxu1 }
 0x307   : > { %v4215_v3 = vpop.f32.mrb[243].mxu0  ;;  %v4327_v1 = vpop.f32.mrb[243].mxu1 }
 0x308   : > { %v3360_v58 = vadd.f32 %v4213_v44, %v6198_v22  ;;  %v4216_v53 = vadd.f32 %v4215_v3, %v4214_v46  ;;  %v4328_v48 = vadd.f32 %v4327_v1, %v4326_v17 }
 0x30a   : > { %v3521_v9 = vadd.f32 %v4325_v24, %v3360_v58  ;;  %v3363_v37 = vadd.f32 %v4216_v53, %v6201_v21 }
 0x30c   : > { %3575 = vst [vmem:[%s6226_s16 + $0xc0] sm:$0xff] %v3521_v9  ;;  %v3524_v14 = vadd.f32 %v4328_v48, %v3363_v37  ;;  %v4217_v47 = vpop.f32.mrb[244].mxu0  ;;  %v4329_v30 = vpop.f32.mrb[244].mxu1 }
 0x30d   : > { %v4218_v51 = vpop.f32.mrb[245].mxu0  ;;  %v4330_v27 = vpop.f32.mrb[245].mxu1 }
 0x30e   : > { %3576 = vst [vmem:[%s6226_s16 + $0xc8] sm:$0xff] %v3524_v14  ;;  %v4219_v54 = vadd.f32 %v4218_v51, %v4217_v47  ;;  %v4220_v36 = vpop.f32.mrb[246].mxu0  ;;  %v4331_v61 = vadd.f32 %v4330_v27, %v4329_v30  ;;  %v4332_v20 = vpop.f32.mrb[246].mxu1 }
 0x30f   : > { %v4221_v22 = vpop.f32.mrb[247].mxu0  ;;  %v4333_v63 = vpop.f32.mrb[247].mxu1 }
 0x310   : > { %v3368_v59 = vadd.f32 %v4219_v54, %v6204_v62  ;;  %v4222_v45 = vadd.f32 %v4221_v22, %v4220_v36  ;;  %v4334_v26 = vadd.f32 %v4333_v63, %v4332_v20 }
 0x312   : > { %v3529_v21 = vadd.f32 %v4331_v61, %v3368_v59  ;;  %v3371_v18 = vadd.f32 %v4222_v45, %v6207_v34 }
 0x314   : > { %3577 = vst [vmem:[%s6226_s16 + $0xd0] sm:$0xff] %v3529_v21  ;;  %v3532_v56 = vadd.f32 %v4334_v26, %v3371_v18  ;;  %v4223_v29 = vpop.f32.mrb[248].mxu0  ;;  %v4335_v5 = vpop.f32.mrb[248].mxu1 }
 0x315   : > { %v4224_v52 = vpop.f32.mrb[249].mxu0  ;;  %v4336_v50 = vpop.f32.mrb[249].mxu1 }
 0x316   : > { %3578 = vst [vmem:[%s6226_s16 + $0xd8] sm:$0xff] %v3532_v56  ;;  %v4225_v35 = vadd.f32 %v4224_v52, %v4223_v29  ;;  %v4226_v13 = vpop.f32.mrb[250].mxu0  ;;  %v4337_v23 = vadd.f32 %v4336_v50, %v4335_v5  ;;  %v4338_v57 = vpop.f32.mrb[250].mxu1 }
 0x317   : > { %v4227_v62 = vpop.f32.mrb[251].mxu0  ;;  %v4339_v15 = vpop.f32.mrb[251].mxu1 }
 0x318   : > { %v3376_v43 = vadd.f32 %v4225_v35, %v6210_v55  ;;  %v4228_v2 = vadd.f32 %v4227_v62, %v4226_v13  ;;  %v4340_v40 = vadd.f32 %v4339_v15, %v4338_v57 }
 0x31a   : > { %v3537_v34 = vadd.f32 %v4337_v23, %v3376_v43  ;;  %v3379_v41 = vadd.f32 %v4228_v2, %v6213_v42 }
 0x31c   : > { %3579 = vst [vmem:[%s6226_s16 + $0xe0] sm:$0xff] %v3537_v34  ;;  %v3540_v10 = vadd.f32 %v4340_v40, %v3379_v41  ;;  %v4229_v25 = vpop.f32.mrb[252].mxu0  ;;  %v4341_v7 = vpop.f32.mrb[252].mxu1 }
 0x31d   : > { %v4230_v19 = vpop.f32.mrb[253].mxu0  ;;  %v4342_v0 = vpop.f32.mrb[253].mxu1 }
 0x31e   : > { %3580 = vst [vmem:[%s6226_s16 + $0xe8] sm:$0xff] %v3540_v10  ;;  %v4231_v4 = vadd.f32 %v4230_v19, %v4229_v25  ;;  %v4232_v11 = vpop.f32.mrb[254].mxu0  ;;  %v4343_v55 = vadd.f32 %v4342_v0, %v4341_v7  ;;  %v4344_v16 = vpop.f32.mrb[254].mxu1 }
 0x31f   : > { %v4233_v33 = vpop.f32.mrb[255].mxu0  ;;  %v4345_v8 = vpop.f32.mrb[255].mxu1 }
 0x320   : > { %v3384_v32 = vadd.f32 %v4231_v4, %v6216_v60  ;;  %v4234_v42 = vadd.f32 %v4233_v33, %v4232_v11  ;;  %v4346_v39 = vadd.f32 %v4345_v8, %v4344_v16 }
 0x322   : > { %v3545_v6 = vadd.f32 %v4343_v55, %v3384_v32  ;;  %v3387_v31 = vadd.f32 %v4234_v42, %v6220_v38 }
 0x324   : > { %3581 = vst [vmem:[%s6226_s16 + $0xf0] sm:$0xff] %v3545_v6  ;;  %v3548_v60 = vadd.f32 %v4346_v39, %v3387_v31 }
 0x326   : > { %3582 = vst [vmem:[%s6226_s16 + $0xf8] sm:$0xff] %v3548_v60 }
 0x327   : > { %4515 = shalt.err (!%p4512_p3)
}
 0x328   : > { %s4516_s10 = scalar_lea.hbm %s6293_s30, 4096  ;;  %s4520_s14 = scalar_lea.hbm %s6347_s5, 8192 }
 0x329   : > { %p4517_p4 = scmp.ne.s32.totalorder %s6293_s30, %s4516_s10  ;;  %p4521_p9 = scmp.lt.u32.totalorder %s6293_s30, %s6347_s5 }
 0x32a   : > { %p4522_p10 = scmp.lt.u32.totalorder %s4520_s14, %s4516_s10  ;;  %p4524_p12 = scmp.lt.u32.totalorder %s4516_s10, %s6293_s30 }
 0x32b   : > { %p4518_p7 = pnand %p4517_p4, %p4637_p5 }
 0x32c   : > { %p4523_p11 = por %p4522_p10, %p4521_p9 }
 0x32d   : > { %p4519_p8 = pneg %p4518_p7 }
 0x32e   : > { %p4525_p13 = por %p4524_p12, %p4523_p11 }
 0x330   : > { %p4526_p0 = pnand %p4525_p13, %p4519_p8 }
 0x332   : > { %4529 = shalt.err (!%p4526_p0)
}
 0x333   : > { %s4567_s16 = smov 128   ;;  %s4568_s17 = smov 8  }
 0x334   : > { %4347 = dma.vmem_to_hbm [thread:$0]  (%p4637_p5), %s6295_s25, 4096, %s6293_s30, %s6301_s22, %s4567_s16, %s4567_s16, %s4568_s17  }
 0x335 PF: > { %p4353_p1 = scmp.ge.s32.totalorder %s4564_s21, 2  ;;  %s3612_s26 = sand.u32 1, %s4552_s18  }
 0x336   : > { %s3613_s23 = scalar_lea.sflag [#allocation3], %s3612_s26 }
 0x337   : > { %p4350_p2 = pnand %p4353_p1, %p4641_p6 }
 0x339   : > { %4547 = dma.done.wait (!%p4350_p2), %s3613_s23, 4096  }
 0x33a   : > { %4549 = vsyncadd (!%p4350_p2), %s3613_s23, 4294963200  ;;  %p15_p3 = scmp.ge.s32.totalorder %s4624_s24, 4   ;;  %s6350_s18 = smov %s4556_s19 }
 0x33b   : > { %s6351_s19 = smov %s4560_s20  ;;  %s6352_s20 = smov %s4635_s27 }
 0x33c   : > { %s6353_s21 = smov %s4624_s24  ;;  %17 = sbr.rel (!%p15_p3) target bundleno = 3 (0x3), region = 75 }
 0x343   :  { %3618 = vsyncpa [#allocation3], 1 }
 0x344   :  { %3620 = vsyncpa [#allocation3 + $0x1], 1 }

</bundles_post_ra>
